<compile_context>
chip_gen: v6e
topology: v6e:2x2x1
jax: 0.10.0
libtpu: 0.0.40
codegen_flags: <defaults>
</compile_context>

<pallas_src>
import functools
import math

import jax
import jax.numpy as jnp
from jax.experimental import pallas as pl
from jax.experimental.pallas import tpu as pltpu


def _round_up(x, m):
    return (x + m - 1) // m * m


@functools.lru_cache(maxsize=None)
def _vmem_limit_bytes():
    # ~75% of physical VMEM: ~96 MiB on v5e/v6e (128 MiB), ~48 MiB on v7x (64 MiB).
    try:
        cap = int(pltpu.get_tpu_info().vmem_capacity_bytes)
    except Exception:
        cap = 128 * 1024 * 1024
    return max(32 * 1024 * 1024, min(cap * 3 // 4, 96 * 1024 * 1024))


def _cparams(dims):
    return pltpu.CompilerParams(dimension_semantics=dims,
                                vmem_limit_bytes=_vmem_limit_bytes())


# ------------------------- fused attention sub-layer ------------------------

def _attn_block_kernel(*refs, heads, dh, scale, causal, self_attn, eps):
    if self_attn:
        (x_ref, m_ref, wq_ref, bq_ref, wkv_ref, bkv_ref,
         wo_ref, bo_ref, g_ref, be_ref, o_ref) = refs
        kv_ref = x_ref
    else:
        (x_ref, kv_ref, m_ref, wq_ref, bq_ref, wkv_ref, bkv_ref,
         wo_ref, bo_ref, g_ref, be_ref, o_ref) = refs

    x = x_ref[0]                                  # (Sq, D) f32 residual stream
    src = x if self_attn else kv_ref[0]           # (Sk, D)
    D = x.shape[-1]
    Sq = x.shape[0]
    Sk = src.shape[0]

    # Q and fused K|V projections (bf16 MXU inputs, f32 accumulation).
    q = jnp.dot(x.astype(jnp.bfloat16), wq_ref[...],
                preferred_element_type=jnp.float32) + bq_ref[...]
    kv = jnp.dot(src.astype(jnp.bfloat16), wkv_ref[...],
                 preferred_element_type=jnp.float32) + bkv_ref[...]
    qb = q.astype(jnp.bfloat16)
    kb = kv[:, :D].astype(jnp.bfloat16)
    vb = kv[:, D:].astype(jnp.bfloat16)

    # Additive mask bias: 0 where attend, -1e9 where masked
    # (== scores.masked_fill(mask == 0, -1e9) in the reference).
    bias = (m_ref[0] - 1.0) * 1e9                 # (1, Sk) from the pad mask
    if causal:
        row = jax.lax.broadcasted_iota(jnp.int32, (Sq, Sk), 0)
        col = jax.lax.broadcasted_iota(jnp.int32, (Sq, Sk), 1)
        bias = bias + (col > row).astype(jnp.float32) * (-1e9)

    # Per-head attention with plain 2-D matmuls (static unroll; no transposes).
    ctx_parts = []
    for h in range(heads):
        sl = slice(h * dh, (h + 1) * dh)
        s = jax.lax.dot_general(qb[:, sl], kb[:, sl],
                                (((1,), (1,)), ((), ())),        # q @ k^T
                                preferred_element_type=jnp.float32) * scale
        s = s + bias
        s = s - jnp.max(s, axis=-1, keepdims=True)
        p = jnp.exp(s)
        p = p * pl.reciprocal(jnp.sum(p, axis=-1, keepdims=True), approx=True)
        ctx_parts.append(jnp.dot(p.astype(jnp.bfloat16), vb[:, sl],
                                 preferred_element_type=jnp.float32))
    ctx = jnp.concatenate(ctx_parts, axis=-1)     # (Sq, D) lane-dense context

    out = jnp.dot(ctx.astype(jnp.bfloat16), wo_ref[...],
                  preferred_element_type=jnp.float32) + bo_ref[...]

    # Fused residual add + LayerNorm epilogue.
    y = out + x
    mu = jnp.mean(y, axis=-1, keepdims=True)
    var = jnp.mean((y - mu) ** 2, axis=-1, keepdims=True)
    yn = (y - mu) * jax.lax.rsqrt(var + eps)
    o_ref[0] = (yn * g_ref[...] + be_ref[...]).astype(o_ref.dtype)


def attn_block(q_in, kv_in, pad_mask, ap, lnp, heads, *, causal, self_attn):
    """LayerNorm(q_in + MHA(q_in, kv_in, kv_in, mask)).  One grid step per batch
    element; all heads processed inside the kernel; weights stay resident."""
    B, Sq, D = q_in.shape
    Sk = kv_in.shape[1]
    dh = D // heads
    kernel = functools.partial(_attn_block_kernel, heads=heads, dh=dh,
                               scale=1.0 / math.sqrt(dh), causal=causal,
                               self_attn=self_attn, eps=1e-5)
    m3 = pad_mask.astype(jnp.float32).reshape(B, 1, Sk)

    def const(shape):  # weight / LN-param block, identical at every grid step
        return pl.BlockSpec(shape, lambda b: (0,) * len(shape))

    in_specs = [pl.BlockSpec((1, Sq, D), lambda b: (b, 0, 0))]
    args = [q_in]
    if not self_attn:
        in_specs.append(pl.BlockSpec((1, Sk, D), lambda b: (b, 0, 0)))
        args.append(kv_in)
    in_specs += [pl.BlockSpec((1, 1, Sk), lambda b: (b, 0, 0)),
                 const((D, D)), const((1, D)), const((D, 2 * D)), const((1, 2 * D)),
                 const((D, D)), const((1, D)), const((1, D)), const((1, D))]
    args += [m3, ap["wq"], ap["bq"], ap["wkv"], ap["bkv"],
             ap["wo"], ap["bo"], lnp["g"], lnp["b"]]

    return pl.pallas_call(
        kernel,
        out_shape=jax.ShapeDtypeStruct((B, Sq, D), jnp.float32),
        grid=(B,),
        in_specs=in_specs,
        out_specs=pl.BlockSpec((1, Sq, D), lambda b: (b, 0, 0)),
        compiler_params=_cparams(("parallel",)),
    )(*args)


# ---------------------------- fused FFN sub-layer ---------------------------

def _ffn_block_kernel(x_ref, w1_ref, b1_ref, w2_ref, b2_ref, g_ref, be_ref, o_ref,
                      *, eps):
    x = x_ref[...]                                 # (tm, D) f32
    h = jnp.dot(x.astype(jnp.bfloat16), w1_ref[...],
                preferred_element_type=jnp.float32) + b1_ref[...]
    h = jnp.maximum(h, 0.0)
    y = jnp.dot(h.astype(jnp.bfloat16), w2_ref[...],
                preferred_element_type=jnp.float32) + b2_ref[...]
    y = y + x                                      # fused residual
    mu = jnp.mean(y, axis=-1, keepdims=True)
    var = jnp.mean((y - mu) ** 2, axis=-1, keepdims=True)
    yn = (y - mu) * jax.lax.rsqrt(var + eps)
    o_ref[...] = (yn * g_ref[...] + be_ref[...]).astype(o_ref.dtype)


def ffn_block(x, fp, lnp):
    """LayerNorm(x + FFN(x)); row-tiled; hidden activation never leaves VMEM."""
    B, S, D = x.shape
    F = fp["w1"].shape[1]
    M = B * S
    tm = min(256, _round_up(M, 8))
    Mp = _round_up(M, tm)
    x2 = x.reshape(M, D)
    if Mp != M:
        x2 = jnp.pad(x2, ((0, Mp - M), (0, 0)))
    out = pl.pallas_call(
        functools.partial(_ffn_block_kernel, eps=1e-5),
        out_shape=jax.ShapeDtypeStruct((Mp, D), jnp.float32),
        grid=(Mp // tm,),
        in_specs=[
            pl.BlockSpec((tm, D), lambda i: (i, 0)),
            pl.BlockSpec((D, F), lambda i: (0, 0)),
            pl.BlockSpec((1, F), lambda i: (0, 0)),
            pl.BlockSpec((F, D), lambda i: (0, 0)),
            pl.BlockSpec((1, D), lambda i: (0, 0)),
            pl.BlockSpec((1, D), lambda i: (0, 0)),
            pl.BlockSpec((1, D), lambda i: (0, 0)),
        ],
        out_specs=pl.BlockSpec((tm, D), lambda i: (i, 0)),
        compiler_params=_cparams(("parallel",)),
    )(x2, fp["w1"], fp["b1"], fp["w2"], fp["b2"], lnp["g"], lnp["b"])
    return out[:M].reshape(B, S, D)


# ------------------------ tiled linear (vocab projection) -------------------

def _linear_kernel(x_ref, w_ref, b_ref, o_ref, acc_ref):
    @pl.when(pl.program_id(2) == 0)
    def _():
        acc_ref[...] = jnp.zeros_like(acc_ref)

    acc_ref[...] += jnp.dot(x_ref[...].astype(jnp.bfloat16), w_ref[...],
                            preferred_element_type=jnp.float32)

    @pl.when(pl.program_id(2) == pl.num_programs(2) - 1)
    def _():
        o_ref[...] = (acc_ref[...] + b_ref[...]).astype(o_ref.dtype)


def linear(x, w, b):
    """x:(M,K) f32 @ w:(K,Np) bf16 (pre-padded, lane-dense Np) + b:(1,Np)."""
    M, K = x.shape
    Np = w.shape[1]
    tm = min(512, _round_up(M, 8))
    Mp = _round_up(M, tm)
    tn = min(512, Np)
    if Np % tn:
        tn = Np
    tk = K if K <= 1024 or K % 512 else 512
    xp = x if Mp == M else jnp.pad(x, ((0, Mp - M), (0, 0)))
    out = pl.pallas_call(
        _linear_kernel,
        out_shape=jax.ShapeDtypeStruct((Mp, Np), jnp.float32),
        grid=(Mp // tm, Np // tn, K // tk),
        in_specs=[
            pl.BlockSpec((tm, tk), lambda i, j, k: (i, k)),
            pl.BlockSpec((tk, tn), lambda i, j, k: (k, j)),
            pl.BlockSpec((1, tn), lambda i, j, k: (0, j)),
        ],
        out_specs=pl.BlockSpec((tm, tn), lambda i, j, k: (i, j)),
        scratch_shapes=[pltpu.VMEM((tm, tn), jnp.float32)],
        compiler_params=_cparams(("parallel", "parallel", "arbitrary")),
    )(xp, w, b)
    return out[:M]


# ------------------------------- model pieces -------------------------------

def make_pos_encoding(max_positions, emb_dim):
    pos = jnp.arange(max_positions, dtype=jnp.float32)[:, None]
    i = jnp.arange(0, emb_dim, 2, dtype=jnp.float32)[None, :]
    angles = pos / jnp.power(10000.0, i / emb_dim)
    pe = jnp.zeros((max_positions, emb_dim), jnp.float32)
    pe = pe.at[:, 0::2].set(jnp.sin(angles))
    pe = pe.at[:, 1::2].set(jnp.cos(angles))
    return pe


def init_params(key, cfg):
    D, F = cfg["emb_dim"], cfg["pffn_dim"]
    Vo = cfg["output_vocab_size"]
    Vop = _round_up(Vo, 128)                       # lane-dense, padded once at init
    keys = iter(jax.random.split(key, 1024))

    def w(shape):
        return jax.random.normal(next(keys), shape, jnp.float32) * 0.02

    def attn_p():
        wq, wk, wv, wo = w((D, D)), w((D, D)), w((D, D)), w((D, D))
        return {"wq": wq.astype(jnp.bfloat16),
                "bq": jnp.zeros((1, D), jnp.float32),
                "wkv": jnp.concatenate([wk, wv], axis=1).astype(jnp.bfloat16),
                "bkv": jnp.zeros((1, 2 * D), jnp.float32),
                "wo": wo.astype(jnp.bfloat16),
                "bo": jnp.zeros((1, D), jnp.float32)}

    def ln_p():
        return {"g": jnp.ones((1, D), jnp.float32), "b": jnp.zeros((1, D), jnp.float32)}

    def ffn_p():
        return {"w1": w((D, F)).astype(jnp.bfloat16), "b1": jnp.zeros((1, F), jnp.float32),
                "w2": w((F, D)).astype(jnp.bfloat16), "b2": jnp.zeros((1, D), jnp.float32)}

    enc = [{"attn": attn_p(), "ln1": ln_p(), "ffn": ffn_p(), "ln2": ln_p()}
           for _ in range(cfg["num_blocks"])]
    dec = [{"self_attn": attn_p(), "ln1": ln_p(),
            "cross_attn": attn_p(), "ln2": ln_p(),
            "ffn": ffn_p(), "ln3": ln_p()}
           for _ in range(cfg["num_blocks"])]

    proj_w = jnp.pad(w((D, Vo)), ((0, 0), (0, Vop - Vo))).astype(jnp.bfloat16)

    return {
        "in_emb": w((cfg["input_vocab_size"], D)),
        "out_emb": w((cfg["output_vocab_size"], D)),
        "pe": make_pos_encoding(cfg["max_positions"], D),
        "enc": enc,
        "dec": dec,
        "proj_w": proj_w,
        "proj_b": jnp.zeros((1, Vop), jnp.float32),
    }


def transformer_forward(params, x_tok, x_pad_mask, y_tok, y_pad_mask, cfg):
    """x_tok/y_tok: (B,S) int32 token ids; *_pad_mask: (B,S) float, 1 = attend.
    The decoder causal mask is generated in-kernel (equivalent to the reference's
    lower-triangular ymask)."""
    D = cfg["emb_dim"]
    H = cfg["heads"]
    pe = params["pe"]
    sqrt_d = jnp.sqrt(jnp.float32(D))

    # ------------------ encode ------------------
    x = params["in_emb"][x_tok] * sqrt_d + pe[: x_tok.shape[1]][None]   # dropout = id
    for blk in params["enc"]:
        x = attn_block(x, x, x_pad_mask, blk["attn"], blk["ln1"], H,
                       causal=False, self_attn=True)
        x = ffn_block(x, blk["ffn"], blk["ln2"])

    # ------------------ decode ------------------
    y = params["out_emb"][y_tok] * sqrt_d + pe[: y_tok.shape[1]][None]
    for blk in params["dec"]:
        y = attn_block(y, y, y_pad_mask, blk["self_attn"], blk["ln1"], H,
                       causal=True, self_attn=True)
        y = attn_block(y, x, x_pad_mask, blk["cross_attn"], blk["ln2"], H,
                       causal=False, self_attn=False)
        y = ffn_block(y, blk["ffn"], blk["ln3"])

    B, Sy, _ = y.shape
    V = cfg["output_vocab_size"]
    logits = linear(y.reshape(B * Sy, D), params["proj_w"], params["proj_b"])
    return logits[:, :V].reshape(B, Sy, V)


# --------------------------------- main -------------------------------------

if __name__ == "__main__":
    cfg = dict(input_vocab_size=16, output_vocab_size=16, emb_dim=32,
               max_positions=16, drop_prob=0.1, num_blocks=2, heads=4, pffn_dim=64)

    key = jax.random.PRNGKey(0)
    kp, kx, ky = jax.random.split(key, 3)
    params = init_params(kp, cfg)

    B, Sx, Sy = 2, 8, 8
    x_tok = jax.random.randint(kx, (B, Sx), 0, cfg["input_vocab_size"], dtype=jnp.int32)
    y_tok = jax.random.randint(ky, (B, Sy), 0, cfg["output_vocab_size"], dtype=jnp.int32)
    # Source padding mask (1 = attend); mask the last source position of batch 1.
    x_pad = jnp.ones((B, Sx), jnp.float32).at[1, -1].set(0.0)
    # Target padding mask; the causal part is generated inside the kernel.
    y_pad = jnp.ones((B, Sy), jnp.float32)

    fwd = jax.jit(lambda p, xt, xm, yt, ym: transformer_forward(p, xt, xm, yt, ym, cfg))
    out = jax.block_until_ready(fwd(params, x_tok, x_pad, y_tok, y_pad))
    assert out.shape == (B, Sy, cfg["output_vocab_size"])
    assert bool(jnp.all(jnp.isfinite(out)))
    print("KERNEL_OK")
</pallas_src>

<mosaic_0001>
module attributes {stable_mosaic.version = 11 : i64} {
  func.func @_attn_block_kernel(%arg0: i32, %arg1: memref<1x8x32xf32, #tpu.memory_space<vmem>>, %arg2: memref<1x1x8xf32, #tpu.memory_space<vmem>>, %arg3: memref<32x32xbf16, #tpu.memory_space<vmem>>, %arg4: memref<1x32xf32, #tpu.memory_space<vmem>>, %arg5: memref<32x64xbf16, #tpu.memory_space<vmem>>, %arg6: memref<1x64xf32, #tpu.memory_space<vmem>>, %arg7: memref<32x32xbf16, #tpu.memory_space<vmem>>, %arg8: memref<1x32xf32, #tpu.memory_space<vmem>>, %arg9: memref<1x32xf32, #tpu.memory_space<vmem>>, %arg10: memref<1x32xf32, #tpu.memory_space<vmem>>, %arg11: memref<1x8x32xf32, #tpu.memory_space<vmem>>) attributes {dimension_semantics = [#tpu.dimension_semantics<parallel>], iteration_bounds = array<i64: 2>, scalar_prefetch = 0 : i64, scratch_operands = 0 : i64, tpu.core_type = #tpu.core_type<tc>, window_params = [{transform_indices = @transform_0, window_bounds = array<i64: 1, 8, 32>}, {transform_indices = @transform_1, window_bounds = array<i64: 1, 1, 8>}, {pipeline_mode = #tpu.pipeline_mode<synchronous>, transform_indices = @transform_2, window_bounds = array<i64: 32, 32>}, {pipeline_mode = #tpu.pipeline_mode<synchronous>, transform_indices = @transform_3, window_bounds = array<i64: 1, 32>}, {pipeline_mode = #tpu.pipeline_mode<synchronous>, transform_indices = @transform_4, window_bounds = array<i64: 32, 64>}, {pipeline_mode = #tpu.pipeline_mode<synchronous>, transform_indices = @transform_5, window_bounds = array<i64: 1, 64>}, {pipeline_mode = #tpu.pipeline_mode<synchronous>, transform_indices = @transform_6, window_bounds = array<i64: 32, 32>}, {pipeline_mode = #tpu.pipeline_mode<synchronous>, transform_indices = @transform_7, window_bounds = array<i64: 1, 32>}, {pipeline_mode = #tpu.pipeline_mode<synchronous>, transform_indices = @transform_8, window_bounds = array<i64: 1, 32>}, {pipeline_mode = #tpu.pipeline_mode<synchronous>, transform_indices = @transform_9, window_bounds = array<i64: 1, 32>}, {transform_indices = @transform_10, window_bounds = array<i64: 1, 8, 32>}]} {
    %c0 = arith.constant 0 : index
    %c0_0 = arith.constant 0 : index
    %c0_1 = arith.constant 0 : index
    %0 = vector.load %arg1[%c0, %c0_0, %c0_1] : memref<1x8x32xf32, #tpu.memory_space<vmem>>, vector<1x8x32xf32>
    %1 = vector.shape_cast %0 : vector<1x8x32xf32> to vector<8x32xf32>
    %2 = arith.truncf %1 : vector<8x32xf32> to vector<8x32xbf16>
    %c0_2 = arith.constant 0 : index
    %c0_3 = arith.constant 0 : index
    %3 = vector.load %arg3[%c0_2, %c0_3] : memref<32x32xbf16, #tpu.memory_space<vmem>>, vector<32x32xbf16>
    %cst = arith.constant dense<0.000000e+00> : vector<8x32xf32>
    %4 = tpu.matmul %2, %3, %cst {dimension_numbers = #tpu.dot_dimension_numbers<[1], [0], [0], [1], [0, 0, 1, 1], [], []>} : vector<8x32xbf16>, vector<32x32xbf16>, vector<8x32xf32> -> vector<8x32xf32>
    %c0_4 = arith.constant 0 : index
    %c0_5 = arith.constant 0 : index
    %5 = vector.load %arg4[%c0_4, %c0_5] : memref<1x32xf32, #tpu.memory_space<vmem>>, vector<1x32xf32>
    %6 = vector.broadcast %5 : vector<1x32xf32> to vector<8x32xf32>
    %7 = arith.addf %4, %6 : vector<8x32xf32>
    %8 = arith.truncf %1 : vector<8x32xf32> to vector<8x32xbf16>
    %c0_6 = arith.constant 0 : index
    %c0_7 = arith.constant 0 : index
    %9 = vector.load %arg5[%c0_6, %c0_7] : memref<32x64xbf16, #tpu.memory_space<vmem>>, vector<32x64xbf16>
    %cst_8 = arith.constant dense<0.000000e+00> : vector<8x64xf32>
    %10 = tpu.matmul %8, %9, %cst_8 {dimension_numbers = #tpu.dot_dimension_numbers<[1], [0], [0], [1], [0, 0, 1, 1], [], []>} : vector<8x32xbf16>, vector<32x64xbf16>, vector<8x64xf32> -> vector<8x64xf32>
    %c0_9 = arith.constant 0 : index
    %c0_10 = arith.constant 0 : index
    %11 = vector.load %arg6[%c0_9, %c0_10] : memref<1x64xf32, #tpu.memory_space<vmem>>, vector<1x64xf32>
    %12 = vector.broadcast %11 : vector<1x64xf32> to vector<8x64xf32>
    %13 = arith.addf %10, %12 : vector<8x64xf32>
    %14 = arith.truncf %7 : vector<8x32xf32> to vector<8x32xbf16>
    %15 = vector.extract_strided_slice %13 {offsets = [0, 0], sizes = [8, 32], strides = [1, 1]} : vector<8x64xf32> to vector<8x32xf32>
    %16 = arith.truncf %15 : vector<8x32xf32> to vector<8x32xbf16>
    %17 = vector.extract_strided_slice %13 {offsets = [0, 32], sizes = [8, 32], strides = [1, 1]} : vector<8x64xf32> to vector<8x32xf32>
    %18 = arith.truncf %17 : vector<8x32xf32> to vector<8x32xbf16>
    %c0_11 = arith.constant 0 : index
    %c0_12 = arith.constant 0 : index
    %c0_13 = arith.constant 0 : index
    %19 = vector.load %arg2[%c0_11, %c0_12, %c0_13] : memref<1x1x8xf32, #tpu.memory_space<vmem>>, vector<1x1x8xf32>
    %20 = vector.shape_cast %19 : vector<1x1x8xf32> to vector<1x8xf32>
    %cst_14 = arith.constant 1.000000e+00 : f32
    %21 = vector.broadcast %cst_14 : f32 to vector<1x8xf32>
    %22 = arith.subf %20, %21 : vector<1x8xf32>
    %cst_15 = arith.constant 1.000000e+09 : f32
    %23 = vector.broadcast %cst_15 : f32 to vector<1x8xf32>
    %24 = arith.mulf %22, %23 : vector<1x8xf32>
    %25 = vector.extract_strided_slice %14 {offsets = [0, 0], sizes = [8, 8], strides = [1, 1]} : vector<8x32xbf16> to vector<8x8xbf16>
    %26 = vector.extract_strided_slice %16 {offsets = [0, 0], sizes = [8, 8], strides = [1, 1]} : vector<8x32xbf16> to vector<8x8xbf16>
    %cst_16 = arith.constant dense<0.000000e+00> : vector<8x8xf32>
    %27 = tpu.matmul %25, %26, %cst_16 {dimension_numbers = #tpu.dot_dimension_numbers<[1], [1], [0], [0], [0, 0, 1, 0], [], []>} : vector<8x8xbf16>, vector<8x8xbf16>, vector<8x8xf32> -> vector<8x8xf32>
    %cst_17 = arith.constant 0.353553385 : f32
    %28 = vector.broadcast %cst_17 : f32 to vector<8x8xf32>
    %29 = arith.mulf %27, %28 : vector<8x8xf32>
    %30 = vector.broadcast %24 : vector<1x8xf32> to vector<8x8xf32>
    %31 = arith.addf %29, %30 : vector<8x8xf32>
    %cst_18 = arith.constant dense<0xFF800000> : vector<8xf32>
    %32 = vector.multi_reduction <maximumf>, %31, %cst_18 [1] : vector<8x8xf32> to vector<8xf32>
    %33 = vector.shape_cast %32 : vector<8xf32> to vector<8x1xf32>
    %34 = vector.broadcast %33 : vector<8x1xf32> to vector<8x8xf32>
    %35 = arith.subf %31, %34 : vector<8x8xf32>
    %36 = math.exp %35 : vector<8x8xf32>
    %cst_19 = arith.constant dense<0.000000e+00> : vector<8xf32>
    %37 = vector.multi_reduction <add>, %36, %cst_19 [1] : vector<8x8xf32> to vector<8xf32>
    %38 = vector.shape_cast %37 : vector<8xf32> to vector<8x1xf32>
    %39 = tpu.reciprocal %38 {approx = true} : vector<8x1xf32> -> vector<8x1xf32>
    %40 = vector.broadcast %39 : vector<8x1xf32> to vector<8x8xf32>
    %41 = arith.mulf %36, %40 : vector<8x8xf32>
    %42 = arith.truncf %41 : vector<8x8xf32> to vector<8x8xbf16>
    %43 = vector.extract_strided_slice %18 {offsets = [0, 0], sizes = [8, 8], strides = [1, 1]} : vector<8x32xbf16> to vector<8x8xbf16>
    %cst_20 = arith.constant dense<0.000000e+00> : vector<8x8xf32>
    %44 = tpu.matmul %42, %43, %cst_20 {dimension_numbers = #tpu.dot_dimension_numbers<[1], [0], [0], [1], [0, 0, 1, 1], [], []>} : vector<8x8xbf16>, vector<8x8xbf16>, vector<8x8xf32> -> vector<8x8xf32>
    %45 = vector.extract_strided_slice %14 {offsets = [0, 8], sizes = [8, 8], strides = [1, 1]} : vector<8x32xbf16> to vector<8x8xbf16>
    %46 = vector.extract_strided_slice %16 {offsets = [0, 8], sizes = [8, 8], strides = [1, 1]} : vector<8x32xbf16> to vector<8x8xbf16>
    %cst_21 = arith.constant dense<0.000000e+00> : vector<8x8xf32>
    %47 = tpu.matmul %45, %46, %cst_21 {dimension_numbers = #tpu.dot_dimension_numbers<[1], [1], [0], [0], [0, 0, 1, 0], [], []>} : vector<8x8xbf16>, vector<8x8xbf16>, vector<8x8xf32> -> vector<8x8xf32>
    %cst_22 = arith.constant 0.353553385 : f32
    %48 = vector.broadcast %cst_22 : f32 to vector<8x8xf32>
    %49 = arith.mulf %47, %48 : vector<8x8xf32>
    %50 = vector.broadcast %24 : vector<1x8xf32> to vector<8x8xf32>
    %51 = arith.addf %49, %50 : vector<8x8xf32>
    %cst_23 = arith.constant dense<0xFF800000> : vector<8xf32>
    %52 = vector.multi_reduction <maximumf>, %51, %cst_23 [1] : vector<8x8xf32> to vector<8xf32>
    %53 = vector.shape_cast %52 : vector<8xf32> to vector<8x1xf32>
    %54 = vector.broadcast %53 : vector<8x1xf32> to vector<8x8xf32>
    %55 = arith.subf %51, %54 : vector<8x8xf32>
    %56 = math.exp %55 : vector<8x8xf32>
    %cst_24 = arith.constant dense<0.000000e+00> : vector<8xf32>
    %57 = vector.multi_reduction <add>, %56, %cst_24 [1] : vector<8x8xf32> to vector<8xf32>
    %58 = vector.shape_cast %57 : vector<8xf32> to vector<8x1xf32>
    %59 = tpu.reciprocal %58 {approx = true} : vector<8x1xf32> -> vector<8x1xf32>
    %60 = vector.broadcast %59 : vector<8x1xf32> to vector<8x8xf32>
    %61 = arith.mulf %56, %60 : vector<8x8xf32>
    %62 = arith.truncf %61 : vector<8x8xf32> to vector<8x8xbf16>
    %63 = vector.extract_strided_slice %18 {offsets = [0, 8], sizes = [8, 8], strides = [1, 1]} : vector<8x32xbf16> to vector<8x8xbf16>
    %cst_25 = arith.constant dense<0.000000e+00> : vector<8x8xf32>
    %64 = tpu.matmul %62, %63, %cst_25 {dimension_numbers = #tpu.dot_dimension_numbers<[1], [0], [0], [1], [0, 0, 1, 1], [], []>} : vector<8x8xbf16>, vector<8x8xbf16>, vector<8x8xf32> -> vector<8x8xf32>
    %65 = vector.extract_strided_slice %14 {offsets = [0, 16], sizes = [8, 8], strides = [1, 1]} : vector<8x32xbf16> to vector<8x8xbf16>
    %66 = vector.extract_strided_slice %16 {offsets = [0, 16], sizes = [8, 8], strides = [1, 1]} : vector<8x32xbf16> to vector<8x8xbf16>
    %cst_26 = arith.constant dense<0.000000e+00> : vector<8x8xf32>
    %67 = tpu.matmul %65, %66, %cst_26 {dimension_numbers = #tpu.dot_dimension_numbers<[1], [1], [0], [0], [0, 0, 1, 0], [], []>} : vector<8x8xbf16>, vector<8x8xbf16>, vector<8x8xf32> -> vector<8x8xf32>
    %cst_27 = arith.constant 0.353553385 : f32
    %68 = vector.broadcast %cst_27 : f32 to vector<8x8xf32>
    %69 = arith.mulf %67, %68 : vector<8x8xf32>
    %70 = vector.broadcast %24 : vector<1x8xf32> to vector<8x8xf32>
    %71 = arith.addf %69, %70 : vector<8x8xf32>
    %cst_28 = arith.constant dense<0xFF800000> : vector<8xf32>
    %72 = vector.multi_reduction <maximumf>, %71, %cst_28 [1] : vector<8x8xf32> to vector<8xf32>
    %73 = vector.shape_cast %72 : vector<8xf32> to vector<8x1xf32>
    %74 = vector.broadcast %73 : vector<8x1xf32> to vector<8x8xf32>
    %75 = arith.subf %71, %74 : vector<8x8xf32>
    %76 = math.exp %75 : vector<8x8xf32>
    %cst_29 = arith.constant dense<0.000000e+00> : vector<8xf32>
    %77 = vector.multi_reduction <add>, %76, %cst_29 [1] : vector<8x8xf32> to vector<8xf32>
    %78 = vector.shape_cast %77 : vector<8xf32> to vector<8x1xf32>
    %79 = tpu.reciprocal %78 {approx = true} : vector<8x1xf32> -> vector<8x1xf32>
    %80 = vector.broadcast %79 : vector<8x1xf32> to vector<8x8xf32>
    %81 = arith.mulf %76, %80 : vector<8x8xf32>
    %82 = arith.truncf %81 : vector<8x8xf32> to vector<8x8xbf16>
    %83 = vector.extract_strided_slice %18 {offsets = [0, 16], sizes = [8, 8], strides = [1, 1]} : vector<8x32xbf16> to vector<8x8xbf16>
    %cst_30 = arith.constant dense<0.000000e+00> : vector<8x8xf32>
    %84 = tpu.matmul %82, %83, %cst_30 {dimension_numbers = #tpu.dot_dimension_numbers<[1], [0], [0], [1], [0, 0, 1, 1], [], []>} : vector<8x8xbf16>, vector<8x8xbf16>, vector<8x8xf32> -> vector<8x8xf32>
    %85 = vector.extract_strided_slice %14 {offsets = [0, 24], sizes = [8, 8], strides = [1, 1]} : vector<8x32xbf16> to vector<8x8xbf16>
    %86 = vector.extract_strided_slice %16 {offsets = [0, 24], sizes = [8, 8], strides = [1, 1]} : vector<8x32xbf16> to vector<8x8xbf16>
    %cst_31 = arith.constant dense<0.000000e+00> : vector<8x8xf32>
    %87 = tpu.matmul %85, %86, %cst_31 {dimension_numbers = #tpu.dot_dimension_numbers<[1], [1], [0], [0], [0, 0, 1, 0], [], []>} : vector<8x8xbf16>, vector<8x8xbf16>, vector<8x8xf32> -> vector<8x8xf32>
    %cst_32 = arith.constant 0.353553385 : f32
    %88 = vector.broadcast %cst_32 : f32 to vector<8x8xf32>
    %89 = arith.mulf %87, %88 : vector<8x8xf32>
    %90 = vector.broadcast %24 : vector<1x8xf32> to vector<8x8xf32>
    %91 = arith.addf %89, %90 : vector<8x8xf32>
    %cst_33 = arith.constant dense<0xFF800000> : vector<8xf32>
    %92 = vector.multi_reduction <maximumf>, %91, %cst_33 [1] : vector<8x8xf32> to vector<8xf32>
    %93 = vector.shape_cast %92 : vector<8xf32> to vector<8x1xf32>
    %94 = vector.broadcast %93 : vector<8x1xf32> to vector<8x8xf32>
    %95 = arith.subf %91, %94 : vector<8x8xf32>
    %96 = math.exp %95 : vector<8x8xf32>
    %cst_34 = arith.constant dense<0.000000e+00> : vector<8xf32>
    %97 = vector.multi_reduction <add>, %96, %cst_34 [1] : vector<8x8xf32> to vector<8xf32>
    %98 = vector.shape_cast %97 : vector<8xf32> to vector<8x1xf32>
    %99 = tpu.reciprocal %98 {approx = true} : vector<8x1xf32> -> vector<8x1xf32>
    %100 = vector.broadcast %99 : vector<8x1xf32> to vector<8x8xf32>
    %101 = arith.mulf %96, %100 : vector<8x8xf32>
    %102 = arith.truncf %101 : vector<8x8xf32> to vector<8x8xbf16>
    %103 = vector.extract_strided_slice %18 {offsets = [0, 24], sizes = [8, 8], strides = [1, 1]} : vector<8x32xbf16> to vector<8x8xbf16>
    %cst_35 = arith.constant dense<0.000000e+00> : vector<8x8xf32>
    %104 = tpu.matmul %102, %103, %cst_35 {dimension_numbers = #tpu.dot_dimension_numbers<[1], [0], [0], [1], [0, 0, 1, 1], [], []>} : vector<8x8xbf16>, vector<8x8xbf16>, vector<8x8xf32> -> vector<8x8xf32>
    %105 = tpu.concatenate %44, %64, %84, %104 in 1 : vector<8x8xf32>, vector<8x8xf32>, vector<8x8xf32>, vector<8x8xf32> -> vector<8x32xf32>
    %106 = arith.truncf %105 : vector<8x32xf32> to vector<8x32xbf16>
    %c0_36 = arith.constant 0 : index
    %c0_37 = arith.constant 0 : index
    %107 = vector.load %arg7[%c0_36, %c0_37] : memref<32x32xbf16, #tpu.memory_space<vmem>>, vector<32x32xbf16>
    %cst_38 = arith.constant dense<0.000000e+00> : vector<8x32xf32>
    %108 = tpu.matmul %106, %107, %cst_38 {dimension_numbers = #tpu.dot_dimension_numbers<[1], [0], [0], [1], [0, 0, 1, 1], [], []>} : vector<8x32xbf16>, vector<32x32xbf16>, vector<8x32xf32> -> vector<8x32xf32>
    %c0_39 = arith.constant 0 : index
    %c0_40 = arith.constant 0 : index
    %109 = vector.load %arg8[%c0_39, %c0_40] : memref<1x32xf32, #tpu.memory_space<vmem>>, vector<1x32xf32>
    %110 = vector.broadcast %109 : vector<1x32xf32> to vector<8x32xf32>
    %111 = arith.addf %108, %110 : vector<8x32xf32>
    %112 = arith.addf %111, %1 : vector<8x32xf32>
    %cst_41 = arith.constant dense<0.000000e+00> : vector<8xf32>
    %113 = vector.multi_reduction <add>, %112, %cst_41 [1] : vector<8x32xf32> to vector<8xf32>
    %114 = vector.shape_cast %113 : vector<8xf32> to vector<8x1xf32>
    %cst_42 = arith.constant 3.200000e+01 : f32
    %115 = vector.broadcast %cst_42 : f32 to vector<8x1xf32>
    %116 = arith.divf %114, %115 : vector<8x1xf32>
    %117 = vector.broadcast %116 : vector<8x1xf32> to vector<8x32xf32>
    %118 = arith.subf %112, %117 : vector<8x32xf32>
    %119 = arith.mulf %118, %118 : vector<8x32xf32>
    %cst_43 = arith.constant dense<0.000000e+00> : vector<8xf32>
    %120 = vector.multi_reduction <add>, %119, %cst_43 [1] : vector<8x32xf32> to vector<8xf32>
    %121 = vector.shape_cast %120 : vector<8xf32> to vector<8x1xf32>
    %cst_44 = arith.constant 3.200000e+01 : f32
    %122 = vector.broadcast %cst_44 : f32 to vector<8x1xf32>
    %123 = arith.divf %121, %122 : vector<8x1xf32>
    %124 = vector.broadcast %116 : vector<8x1xf32> to vector<8x32xf32>
    %125 = arith.subf %112, %124 : vector<8x32xf32>
    %cst_45 = arith.constant 9.99999974E-6 : f32
    %126 = vector.broadcast %cst_45 : f32 to vector<8x1xf32>
    %127 = arith.addf %123, %126 : vector<8x1xf32>
    %128 = math.rsqrt %127 : vector<8x1xf32>
    %129 = vector.broadcast %128 : vector<8x1xf32> to vector<8x32xf32>
    %130 = arith.mulf %125, %129 : vector<8x32xf32>
    %c0_46 = arith.constant 0 : index
    %c0_47 = arith.constant 0 : index
    %131 = vector.load %arg9[%c0_46, %c0_47] : memref<1x32xf32, #tpu.memory_space<vmem>>, vector<1x32xf32>
    %132 = vector.broadcast %131 : vector<1x32xf32> to vector<8x32xf32>
    %133 = arith.mulf %130, %132 : vector<8x32xf32>
    %c0_48 = arith.constant 0 : index
    %c0_49 = arith.constant 0 : index
    %134 = vector.load %arg10[%c0_48, %c0_49] : memref<1x32xf32, #tpu.memory_space<vmem>>, vector<1x32xf32>
    %135 = vector.broadcast %134 : vector<1x32xf32> to vector<8x32xf32>
    %136 = arith.addf %133, %135 : vector<8x32xf32>
    %c0_50 = arith.constant 0 : index
    %c0_51 = arith.constant 0 : index
    %c0_52 = arith.constant 0 : index
    %137 = vector.load %arg11[%c0_50, %c0_51, %c0_52] : memref<1x8x32xf32, #tpu.memory_space<vmem>>, vector<1x8x32xf32>
    %138 = vector.shape_cast %137 : vector<1x8x32xf32> to vector<8x32xf32>
    %139 = vector.shape_cast %136 : vector<8x32xf32> to vector<1x8x32xf32>
    tpu.vector_store %arg11[%c0_50, %c0_51, %c0_52], %139 {strides = array<i32>} : memref<1x8x32xf32, #tpu.memory_space<vmem>>, vector<1x8x32xf32>,
    return
  }
  func.func @transform_0(%arg0: i32) -> (i32, i32, i32) {
    %c0_i32 = arith.constant 0 : i32
    %c0_i32_0 = arith.constant 0 : i32
    %c0_i32_1 = arith.constant 0 : i32
    return %arg0, %c0_i32, %c0_i32_0 : i32, i32, i32
  }
  func.func @transform_1(%arg0: i32) -> (i32, i32, i32) {
    %c0_i32 = arith.constant 0 : i32
    %c0_i32_0 = arith.constant 0 : i32
    %c0_i32_1 = arith.constant 0 : i32
    return %arg0, %c0_i32, %c0_i32_0 : i32, i32, i32
  }
  func.func @transform_2(%arg0: i32) -> (i32, i32) {
    %c0_i32 = arith.constant 0 : i32
    %c0_i32_0 = arith.constant 0 : i32
    %c0_i32_1 = arith.constant 0 : i32
    return %c0_i32, %c0_i32_0 : i32, i32
  }
  func.func @transform_3(%arg0: i32) -> (i32, i32) {
    %c0_i32 = arith.constant 0 : i32
    %c0_i32_0 = arith.constant 0 : i32
    %c0_i32_1 = arith.constant 0 : i32
    return %c0_i32, %c0_i32_0 : i32, i32
  }
  func.func @transform_4(%arg0: i32) -> (i32, i32) {
    %c0_i32 = arith.constant 0 : i32
    %c0_i32_0 = arith.constant 0 : i32
    %c0_i32_1 = arith.constant 0 : i32
    return %c0_i32, %c0_i32_0 : i32, i32
  }
  func.func @transform_5(%arg0: i32) -> (i32, i32) {
    %c0_i32 = arith.constant 0 : i32
    %c0_i32_0 = arith.constant 0 : i32
    %c0_i32_1 = arith.constant 0 : i32
    return %c0_i32, %c0_i32_0 : i32, i32
  }
  func.func @transform_6(%arg0: i32) -> (i32, i32) {
    %c0_i32 = arith.constant 0 : i32
    %c0_i32_0 = arith.constant 0 : i32
    %c0_i32_1 = arith.constant 0 : i32
    return %c0_i32, %c0_i32_0 : i32, i32
  }
  func.func @transform_7(%arg0: i32) -> (i32, i32) {
    %c0_i32 = arith.constant 0 : i32
    %c0_i32_0 = arith.constant 0 : i32
    %c0_i32_1 = arith.constant 0 : i32
    return %c0_i32, %c0_i32_0 : i32, i32
  }
  func.func @transform_8(%arg0: i32) -> (i32, i32) {
    %c0_i32 = arith.constant 0 : i32
    %c0_i32_0 = arith.constant 0 : i32
    %c0_i32_1 = arith.constant 0 : i32
    return %c0_i32, %c0_i32_0 : i32, i32
  }
  func.func @transform_9(%arg0: i32) -> (i32, i32) {
    %c0_i32 = arith.constant 0 : i32
    %c0_i32_0 = arith.constant 0 : i32
    %c0_i32_1 = arith.constant 0 : i32
    return %c0_i32, %c0_i32_0 : i32, i32
  }
  func.func @transform_10(%arg0: i32) -> (i32, i32, i32) {
    %c0_i32 = arith.constant 0 : i32
    %c0_i32_0 = arith.constant 0 : i32
    %c0_i32_1 = arith.constant 0 : i32
    return %arg0, %c0_i32, %c0_i32_0 : i32, i32, i32
  }
}

module attributes {stable_mosaic.version = 11 : i64} {
  func.func @_attn_block_kernel(%arg0: i32, %arg1: memref<1x8x32xf32, #tpu.memory_space<vmem>>, %arg2: memref<1x1x8xf32, #tpu.memory_space<vmem>>, %arg3: memref<32x32xbf16, #tpu.memory_space<vmem>>, %arg4: memref<1x32xf32, #tpu.memory_space<vmem>>, %arg5: memref<32x64xbf16, #tpu.memory_space<vmem>>, %arg6: memref<1x64xf32, #tpu.memory_space<vmem>>, %arg7: memref<32x32xbf16, #tpu.memory_space<vmem>>, %arg8: memref<1x32xf32, #tpu.memory_space<vmem>>, %arg9: memref<1x32xf32, #tpu.memory_space<vmem>>, %arg10: memref<1x32xf32, #tpu.memory_space<vmem>>, %arg11: memref<1x8x32xf32, #tpu.memory_space<vmem>>) attributes {dimension_semantics = [#tpu.dimension_semantics<parallel>], iteration_bounds = array<i64: 2>, scalar_prefetch = 0 : i64, scratch_operands = 0 : i64, tpu.core_type = #tpu.core_type<tc>, window_params = [{transform_indices = @transform_0, window_bounds = array<i64: 1, 8, 32>}, {transform_indices = @transform_1, window_bounds = array<i64: 1, 1, 8>}, {pipeline_mode = #tpu.pipeline_mode<synchronous>, transform_indices = @transform_2, window_bounds = array<i64: 32, 32>}, {pipeline_mode = #tpu.pipeline_mode<synchronous>, transform_indices = @transform_3, window_bounds = array<i64: 1, 32>}, {pipeline_mode = #tpu.pipeline_mode<synchronous>, transform_indices = @transform_4, window_bounds = array<i64: 32, 64>}, {pipeline_mode = #tpu.pipeline_mode<synchronous>, transform_indices = @transform_5, window_bounds = array<i64: 1, 64>}, {pipeline_mode = #tpu.pipeline_mode<synchronous>, transform_indices = @transform_6, window_bounds = array<i64: 32, 32>}, {pipeline_mode = #tpu.pipeline_mode<synchronous>, transform_indices = @transform_7, window_bounds = array<i64: 1, 32>}, {pipeline_mode = #tpu.pipeline_mode<synchronous>, transform_indices = @transform_8, window_bounds = array<i64: 1, 32>}, {pipeline_mode = #tpu.pipeline_mode<synchronous>, transform_indices = @transform_9, window_bounds = array<i64: 1, 32>}, {transform_indices = @transform_10, window_bounds = array<i64: 1, 8, 32>}]} {
    %c0 = arith.constant 0 : index
    %c0_0 = arith.constant 0 : index
    %c0_1 = arith.constant 0 : index
    %0 = vector.load %arg1[%c0, %c0_0, %c0_1] : memref<1x8x32xf32, #tpu.memory_space<vmem>>, vector<1x8x32xf32>
    %1 = vector.shape_cast %0 : vector<1x8x32xf32> to vector<8x32xf32>
    %2 = arith.truncf %1 : vector<8x32xf32> to vector<8x32xbf16>
    %c0_2 = arith.constant 0 : index
    %c0_3 = arith.constant 0 : index
    %3 = vector.load %arg3[%c0_2, %c0_3] : memref<32x32xbf16, #tpu.memory_space<vmem>>, vector<32x32xbf16>
    %cst = arith.constant dense<0.000000e+00> : vector<8x32xf32>
    %4 = tpu.matmul %2, %3, %cst {dimension_numbers = #tpu.dot_dimension_numbers<[1], [0], [0], [1], [0, 0, 1, 1], [], []>} : vector<8x32xbf16>, vector<32x32xbf16>, vector<8x32xf32> -> vector<8x32xf32>
    %c0_4 = arith.constant 0 : index
    %c0_5 = arith.constant 0 : index
    %5 = vector.load %arg4[%c0_4, %c0_5] : memref<1x32xf32, #tpu.memory_space<vmem>>, vector<1x32xf32>
    %6 = vector.broadcast %5 : vector<1x32xf32> to vector<8x32xf32>
    %7 = arith.addf %4, %6 : vector<8x32xf32>
    %8 = arith.truncf %1 : vector<8x32xf32> to vector<8x32xbf16>
    %c0_6 = arith.constant 0 : index
    %c0_7 = arith.constant 0 : index
    %9 = vector.load %arg5[%c0_6, %c0_7] : memref<32x64xbf16, #tpu.memory_space<vmem>>, vector<32x64xbf16>
    %cst_8 = arith.constant dense<0.000000e+00> : vector<8x64xf32>
    %10 = tpu.matmul %8, %9, %cst_8 {dimension_numbers = #tpu.dot_dimension_numbers<[1], [0], [0], [1], [0, 0, 1, 1], [], []>} : vector<8x32xbf16>, vector<32x64xbf16>, vector<8x64xf32> -> vector<8x64xf32>
    %c0_9 = arith.constant 0 : index
    %c0_10 = arith.constant 0 : index
    %11 = vector.load %arg6[%c0_9, %c0_10] : memref<1x64xf32, #tpu.memory_space<vmem>>, vector<1x64xf32>
    %12 = vector.broadcast %11 : vector<1x64xf32> to vector<8x64xf32>
    %13 = arith.addf %10, %12 : vector<8x64xf32>
    %14 = arith.truncf %7 : vector<8x32xf32> to vector<8x32xbf16>
    %15 = vector.extract_strided_slice %13 {offsets = [0, 0], sizes = [8, 32], strides = [1, 1]} : vector<8x64xf32> to vector<8x32xf32>
    %16 = arith.truncf %15 : vector<8x32xf32> to vector<8x32xbf16>
    %17 = vector.extract_strided_slice %13 {offsets = [0, 32], sizes = [8, 32], strides = [1, 1]} : vector<8x64xf32> to vector<8x32xf32>
    %18 = arith.truncf %17 : vector<8x32xf32> to vector<8x32xbf16>
    %c0_11 = arith.constant 0 : index
    %c0_12 = arith.constant 0 : index
    %c0_13 = arith.constant 0 : index
    %19 = vector.load %arg2[%c0_11, %c0_12, %c0_13] : memref<1x1x8xf32, #tpu.memory_space<vmem>>, vector<1x1x8xf32>
    %20 = vector.shape_cast %19 : vector<1x1x8xf32> to vector<1x8xf32>
    %cst_14 = arith.constant 1.000000e+00 : f32
    %21 = vector.broadcast %cst_14 : f32 to vector<1x8xf32>
    %22 = arith.subf %20, %21 : vector<1x8xf32>
    %cst_15 = arith.constant 1.000000e+09 : f32
    %23 = vector.broadcast %cst_15 : f32 to vector<1x8xf32>
    %24 = arith.mulf %22, %23 : vector<1x8xf32>
    %25 = tpu.iota {dimensions = array<i32: 0>} : vector<8x8xi32>
    %26 = tpu.iota {dimensions = array<i32: 1>} : vector<8x8xi32>
    %27 = arith.cmpi sgt, %26, %25 : vector<8x8xi32>
    %28 = arith.extui %27 : vector<8x8xi1> to vector<8x8xi32>
    %29 = arith.sitofp %28 : vector<8x8xi32> to vector<8x8xf32>
    %cst_16 = arith.constant -1.000000e+09 : f32
    %30 = vector.broadcast %cst_16 : f32 to vector<8x8xf32>
    %31 = arith.mulf %29, %30 : vector<8x8xf32>
    %32 = vector.broadcast %24 : vector<1x8xf32> to vector<8x8xf32>
    %33 = arith.addf %32, %31 : vector<8x8xf32>
    %34 = vector.extract_strided_slice %14 {offsets = [0, 0], sizes = [8, 8], strides = [1, 1]} : vector<8x32xbf16> to vector<8x8xbf16>
    %35 = vector.extract_strided_slice %16 {offsets = [0, 0], sizes = [8, 8], strides = [1, 1]} : vector<8x32xbf16> to vector<8x8xbf16>
    %cst_17 = arith.constant dense<0.000000e+00> : vector<8x8xf32>
    %36 = tpu.matmul %34, %35, %cst_17 {dimension_numbers = #tpu.dot_dimension_numbers<[1], [1], [0], [0], [0, 0, 1, 0], [], []>} : vector<8x8xbf16>, vector<8x8xbf16>, vector<8x8xf32> -> vector<8x8xf32>
    %cst_18 = arith.constant 0.353553385 : f32
    %37 = vector.broadcast %cst_18 : f32 to vector<8x8xf32>
    %38 = arith.mulf %36, %37 : vector<8x8xf32>
    %39 = arith.addf %38, %33 : vector<8x8xf32>
    %cst_19 = arith.constant dense<0xFF800000> : vector<8xf32>
    %40 = vector.multi_reduction <maximumf>, %39, %cst_19 [1] : vector<8x8xf32> to vector<8xf32>
    %41 = vector.shape_cast %40 : vector<8xf32> to vector<8x1xf32>
    %42 = vector.broadcast %41 : vector<8x1xf32> to vector<8x8xf32>
    %43 = arith.subf %39, %42 : vector<8x8xf32>
    %44 = math.exp %43 : vector<8x8xf32>
    %cst_20 = arith.constant dense<0.000000e+00> : vector<8xf32>
    %45 = vector.multi_reduction <add>, %44, %cst_20 [1] : vector<8x8xf32> to vector<8xf32>
    %46 = vector.shape_cast %45 : vector<8xf32> to vector<8x1xf32>
    %47 = tpu.reciprocal %46 {approx = true} : vector<8x1xf32> -> vector<8x1xf32>
    %48 = vector.broadcast %47 : vector<8x1xf32> to vector<8x8xf32>
    %49 = arith.mulf %44, %48 : vector<8x8xf32>
    %50 = arith.truncf %49 : vector<8x8xf32> to vector<8x8xbf16>
    %51 = vector.extract_strided_slice %18 {offsets = [0, 0], sizes = [8, 8], strides = [1, 1]} : vector<8x32xbf16> to vector<8x8xbf16>
    %cst_21 = arith.constant dense<0.000000e+00> : vector<8x8xf32>
    %52 = tpu.matmul %50, %51, %cst_21 {dimension_numbers = #tpu.dot_dimension_numbers<[1], [0], [0], [1], [0, 0, 1, 1], [], []>} : vector<8x8xbf16>, vector<8x8xbf16>, vector<8x8xf32> -> vector<8x8xf32>
    %53 = vector.extract_strided_slice %14 {offsets = [0, 8], sizes = [8, 8], strides = [1, 1]} : vector<8x32xbf16> to vector<8x8xbf16>
    %54 = vector.extract_strided_slice %16 {offsets = [0, 8], sizes = [8, 8], strides = [1, 1]} : vector<8x32xbf16> to vector<8x8xbf16>
    %cst_22 = arith.constant dense<0.000000e+00> : vector<8x8xf32>
    %55 = tpu.matmul %53, %54, %cst_22 {dimension_numbers = #tpu.dot_dimension_numbers<[1], [1], [0], [0], [0, 0, 1, 0], [], []>} : vector<8x8xbf16>, vector<8x8xbf16>, vector<8x8xf32> -> vector<8x8xf32>
    %cst_23 = arith.constant 0.353553385 : f32
    %56 = vector.broadcast %cst_23 : f32 to vector<8x8xf32>
    %57 = arith.mulf %55, %56 : vector<8x8xf32>
    %58 = arith.addf %57, %33 : vector<8x8xf32>
    %cst_24 = arith.constant dense<0xFF800000> : vector<8xf32>
    %59 = vector.multi_reduction <maximumf>, %58, %cst_24 [1] : vector<8x8xf32> to vector<8xf32>
    %60 = vector.shape_cast %59 : vector<8xf32> to vector<8x1xf32>
    %61 = vector.broadcast %60 : vector<8x1xf32> to vector<8x8xf32>
    %62 = arith.subf %58, %61 : vector<8x8xf32>
    %63 = math.exp %62 : vector<8x8xf32>
    %cst_25 = arith.constant dense<0.000000e+00> : vector<8xf32>
    %64 = vector.multi_reduction <add>, %63, %cst_25 [1] : vector<8x8xf32> to vector<8xf32>
    %65 = vector.shape_cast %64 : vector<8xf32> to vector<8x1xf32>
    %66 = tpu.reciprocal %65 {approx = true} : vector<8x1xf32> -> vector<8x1xf32>
    %67 = vector.broadcast %66 : vector<8x1xf32> to vector<8x8xf32>
    %68 = arith.mulf %63, %67 : vector<8x8xf32>
    %69 = arith.truncf %68 : vector<8x8xf32> to vector<8x8xbf16>
    %70 = vector.extract_strided_slice %18 {offsets = [0, 8], sizes = [8, 8], strides = [1, 1]} : vector<8x32xbf16> to vector<8x8xbf16>
    %cst_26 = arith.constant dense<0.000000e+00> : vector<8x8xf32>
    %71 = tpu.matmul %69, %70, %cst_26 {dimension_numbers = #tpu.dot_dimension_numbers<[1], [0], [0], [1], [0, 0, 1, 1], [], []>} : vector<8x8xbf16>, vector<8x8xbf16>, vector<8x8xf32> -> vector<8x8xf32>
    %72 = vector.extract_strided_slice %14 {offsets = [0, 16], sizes = [8, 8], strides = [1, 1]} : vector<8x32xbf16> to vector<8x8xbf16>
    %73 = vector.extract_strided_slice %16 {offsets = [0, 16], sizes = [8, 8], strides = [1, 1]} : vector<8x32xbf16> to vector<8x8xbf16>
    %cst_27 = arith.constant dense<0.000000e+00> : vector<8x8xf32>
    %74 = tpu.matmul %72, %73, %cst_27 {dimension_numbers = #tpu.dot_dimension_numbers<[1], [1], [0], [0], [0, 0, 1, 0], [], []>} : vector<8x8xbf16>, vector<8x8xbf16>, vector<8x8xf32> -> vector<8x8xf32>
    %cst_28 = arith.constant 0.353553385 : f32
    %75 = vector.broadcast %cst_28 : f32 to vector<8x8xf32>
    %76 = arith.mulf %74, %75 : vector<8x8xf32>
    %77 = arith.addf %76, %33 : vector<8x8xf32>
    %cst_29 = arith.constant dense<0xFF800000> : vector<8xf32>
    %78 = vector.multi_reduction <maximumf>, %77, %cst_29 [1] : vector<8x8xf32> to vector<8xf32>
    %79 = vector.shape_cast %78 : vector<8xf32> to vector<8x1xf32>
    %80 = vector.broadcast %79 : vector<8x1xf32> to vector<8x8xf32>
    %81 = arith.subf %77, %80 : vector<8x8xf32>
    %82 = math.exp %81 : vector<8x8xf32>
    %cst_30 = arith.constant dense<0.000000e+00> : vector<8xf32>
    %83 = vector.multi_reduction <add>, %82, %cst_30 [1] : vector<8x8xf32> to vector<8xf32>
    %84 = vector.shape_cast %83 : vector<8xf32> to vector<8x1xf32>
    %85 = tpu.reciprocal %84 {approx = true} : vector<8x1xf32> -> vector<8x1xf32>
    %86 = vector.broadcast %85 : vector<8x1xf32> to vector<8x8xf32>
    %87 = arith.mulf %82, %86 : vector<8x8xf32>
    %88 = arith.truncf %87 : vector<8x8xf32> to vector<8x8xbf16>
    %89 = vector.extract_strided_slice %18 {offsets = [0, 16], sizes = [8, 8], strides = [1, 1]} : vector<8x32xbf16> to vector<8x8xbf16>
    %cst_31 = arith.constant dense<0.000000e+00> : vector<8x8xf32>
    %90 = tpu.matmul %88, %89, %cst_31 {dimension_numbers = #tpu.dot_dimension_numbers<[1], [0], [0], [1], [0, 0, 1, 1], [], []>} : vector<8x8xbf16>, vector<8x8xbf16>, vector<8x8xf32> -> vector<8x8xf32>
    %91 = vector.extract_strided_slice %14 {offsets = [0, 24], sizes = [8, 8], strides = [1, 1]} : vector<8x32xbf16> to vector<8x8xbf16>
    %92 = vector.extract_strided_slice %16 {offsets = [0, 24], sizes = [8, 8], strides = [1, 1]} : vector<8x32xbf16> to vector<8x8xbf16>
    %cst_32 = arith.constant dense<0.000000e+00> : vector<8x8xf32>
    %93 = tpu.matmul %91, %92, %cst_32 {dimension_numbers = #tpu.dot_dimension_numbers<[1], [1], [0], [0], [0, 0, 1, 0], [], []>} : vector<8x8xbf16>, vector<8x8xbf16>, vector<8x8xf32> -> vector<8x8xf32>
    %cst_33 = arith.constant 0.353553385 : f32
    %94 = vector.broadcast %cst_33 : f32 to vector<8x8xf32>
    %95 = arith.mulf %93, %94 : vector<8x8xf32>
    %96 = arith.addf %95, %33 : vector<8x8xf32>
    %cst_34 = arith.constant dense<0xFF800000> : vector<8xf32>
    %97 = vector.multi_reduction <maximumf>, %96, %cst_34 [1] : vector<8x8xf32> to vector<8xf32>
    %98 = vector.shape_cast %97 : vector<8xf32> to vector<8x1xf32>
    %99 = vector.broadcast %98 : vector<8x1xf32> to vector<8x8xf32>
    %100 = arith.subf %96, %99 : vector<8x8xf32>
    %101 = math.exp %100 : vector<8x8xf32>
    %cst_35 = arith.constant dense<0.000000e+00> : vector<8xf32>
    %102 = vector.multi_reduction <add>, %101, %cst_35 [1] : vector<8x8xf32> to vector<8xf32>
    %103 = vector.shape_cast %102 : vector<8xf32> to vector<8x1xf32>
    %104 = tpu.reciprocal %103 {approx = true} : vector<8x1xf32> -> vector<8x1xf32>
    %105 = vector.broadcast %104 : vector<8x1xf32> to vector<8x8xf32>
    %106 = arith.mulf %101, %105 : vector<8x8xf32>
    %107 = arith.truncf %106 : vector<8x8xf32> to vector<8x8xbf16>
    %108 = vector.extract_strided_slice %18 {offsets = [0, 24], sizes = [8, 8], strides = [1, 1]} : vector<8x32xbf16> to vector<8x8xbf16>
    %cst_36 = arith.constant dense<0.000000e+00> : vector<8x8xf32>
    %109 = tpu.matmul %107, %108, %cst_36 {dimension_numbers = #tpu.dot_dimension_numbers<[1], [0], [0], [1], [0, 0, 1, 1], [], []>} : vector<8x8xbf16>, vector<8x8xbf16>, vector<8x8xf32> -> vector<8x8xf32>
    %110 = tpu.concatenate %52, %71, %90, %109 in 1 : vector<8x8xf32>, vector<8x8xf32>, vector<8x8xf32>, vector<8x8xf32> -> vector<8x32xf32>
    %111 = arith.truncf %110 : vector<8x32xf32> to vector<8x32xbf16>
    %c0_37 = arith.constant 0 : index
    %c0_38 = arith.constant 0 : index
    %112 = vector.load %arg7[%c0_37, %c0_38] : memref<32x32xbf16, #tpu.memory_space<vmem>>, vector<32x32xbf16>
    %cst_39 = arith.constant dense<0.000000e+00> : vector<8x32xf32>
    %113 = tpu.matmul %111, %112, %cst_39 {dimension_numbers = #tpu.dot_dimension_numbers<[1], [0], [0], [1], [0, 0, 1, 1], [], []>} : vector<8x32xbf16>, vector<32x32xbf16>, vector<8x32xf32> -> vector<8x32xf32>
    %c0_40 = arith.constant 0 : index
    %c0_41 = arith.constant 0 : index
    %114 = vector.load %arg8[%c0_40, %c0_41] : memref<1x32xf32, #tpu.memory_space<vmem>>, vector<1x32xf32>
    %115 = vector.broadcast %114 : vector<1x32xf32> to vector<8x32xf32>
    %116 = arith.addf %113, %115 : vector<8x32xf32>
    %117 = arith.addf %116, %1 : vector<8x32xf32>
    %cst_42 = arith.constant dense<0.000000e+00> : vector<8xf32>
    %118 = vector.multi_reduction <add>, %117, %cst_42 [1] : vector<8x32xf32> to vector<8xf32>
    %119 = vector.shape_cast %118 : vector<8xf32> to vector<8x1xf32>
    %cst_43 = arith.constant 3.200000e+01 : f32
    %120 = vector.broadcast %cst_43 : f32 to vector<8x1xf32>
    %121 = arith.divf %119, %120 : vector<8x1xf32>
    %122 = vector.broadcast %121 : vector<8x1xf32> to vector<8x32xf32>
    %123 = arith.subf %117, %122 : vector<8x32xf32>
    %124 = arith.mulf %123, %123 : vector<8x32xf32>
    %cst_44 = arith.constant dense<0.000000e+00> : vector<8xf32>
    %125 = vector.multi_reduction <add>, %124, %cst_44 [1] : vector<8x32xf32> to vector<8xf32>
    %126 = vector.shape_cast %125 : vector<8xf32> to vector<8x1xf32>
    %cst_45 = arith.constant 3.200000e+01 : f32
    %127 = vector.broadcast %cst_45 : f32 to vector<8x1xf32>
    %128 = arith.divf %126, %127 : vector<8x1xf32>
    %129 = vector.broadcast %121 : vector<8x1xf32> to vector<8x32xf32>
    %130 = arith.subf %117, %129 : vector<8x32xf32>
    %cst_46 = arith.constant 9.99999974E-6 : f32
    %131 = vector.broadcast %cst_46 : f32 to vector<8x1xf32>
    %132 = arith.addf %128, %131 : vector<8x1xf32>
    %133 = math.rsqrt %132 : vector<8x1xf32>
    %134 = vector.broadcast %133 : vector<8x1xf32> to vector<8x32xf32>
    %135 = arith.mulf %130, %134 : vector<8x32xf32>
    %c0_47 = arith.constant 0 : index
    %c0_48 = arith.constant 0 : index
    %136 = vector.load %arg9[%c0_47, %c0_48] : memref<1x32xf32, #tpu.memory_space<vmem>>, vector<1x32xf32>
    %137 = vector.broadcast %136 : vector<1x32xf32> to vector<8x32xf32>
    %138 = arith.mulf %135, %137 : vector<8x32xf32>
    %c0_49 = arith.constant 0 : index
    %c0_50 = arith.constant 0 : index
    %139 = vector.load %arg10[%c0_49, %c0_50] : memref<1x32xf32, #tpu.memory_space<vmem>>, vector<1x32xf32>
    %140 = vector.broadcast %139 : vector<1x32xf32> to vector<8x32xf32>
    %141 = arith.addf %138, %140 : vector<8x32xf32>
    %c0_51 = arith.constant 0 : index
    %c0_52 = arith.constant 0 : index
    %c0_53 = arith.constant 0 : index
    %142 = vector.load %arg11[%c0_51, %c0_52, %c0_53] : memref<1x8x32xf32, #tpu.memory_space<vmem>>, vector<1x8x32xf32>
    %143 = vector.shape_cast %142 : vector<1x8x32xf32> to vector<8x32xf32>
    %144 = vector.shape_cast %141 : vector<8x32xf32> to vector<1x8x32xf32>
    tpu.vector_store %arg11[%c0_51, %c0_52, %c0_53], %144 {strides = array<i32>} : memref<1x8x32xf32, #tpu.memory_space<vmem>>, vector<1x8x32xf32>,
    return
  }
  func.func @transform_0(%arg0: i32) -> (i32, i32, i32) {
    %c0_i32 = arith.constant 0 : i32
    %c0_i32_0 = arith.constant 0 : i32
    %c0_i32_1 = arith.constant 0 : i32
    return %arg0, %c0_i32, %c0_i32_0 : i32, i32, i32
  }
  func.func @transform_1(%arg0: i32) -> (i32, i32, i32) {
    %c0_i32 = arith.constant 0 : i32
    %c0_i32_0 = arith.constant 0 : i32
    %c0_i32_1 = arith.constant 0 : i32
    return %arg0, %c0_i32, %c0_i32_0 : i32, i32, i32
  }
  func.func @transform_2(%arg0: i32) -> (i32, i32) {
    %c0_i32 = arith.constant 0 : i32
    %c0_i32_0 = arith.constant 0 : i32
    %c0_i32_1 = arith.constant 0 : i32
    return %c0_i32, %c0_i32_0 : i32, i32
  }
  func.func @transform_3(%arg0: i32) -> (i32, i32) {
    %c0_i32 = arith.constant 0 : i32
    %c0_i32_0 = arith.constant 0 : i32
    %c0_i32_1 = arith.constant 0 : i32
    return %c0_i32, %c0_i32_0 : i32, i32
  }
  func.func @transform_4(%arg0: i32) -> (i32, i32) {
    %c0_i32 = arith.constant 0 : i32
    %c0_i32_0 = arith.constant 0 : i32
    %c0_i32_1 = arith.constant 0 : i32
    return %c0_i32, %c0_i32_0 : i32, i32
  }
  func.func @transform_5(%arg0: i32) -> (i32, i32) {
    %c0_i32 = arith.constant 0 : i32
    %c0_i32_0 = arith.constant 0 : i32
    %c0_i32_1 = arith.constant 0 : i32
    return %c0_i32, %c0_i32_0 : i32, i32
  }
  func.func @transform_6(%arg0: i32) -> (i32, i32) {
    %c0_i32 = arith.constant 0 : i32
    %c0_i32_0 = arith.constant 0 : i32
    %c0_i32_1 = arith.constant 0 : i32
    return %c0_i32, %c0_i32_0 : i32, i32
  }
  func.func @transform_7(%arg0: i32) -> (i32, i32) {
    %c0_i32 = arith.constant 0 : i32
    %c0_i32_0 = arith.constant 0 : i32
    %c0_i32_1 = arith.constant 0 : i32
    return %c0_i32, %c0_i32_0 : i32, i32
  }
  func.func @transform_8(%arg0: i32) -> (i32, i32) {
    %c0_i32 = arith.constant 0 : i32
    %c0_i32_0 = arith.constant 0 : i32
    %c0_i32_1 = arith.constant 0 : i32
    return %c0_i32, %c0_i32_0 : i32, i32
  }
  func.func @transform_9(%arg0: i32) -> (i32, i32) {
    %c0_i32 = arith.constant 0 : i32
    %c0_i32_0 = arith.constant 0 : i32
    %c0_i32_1 = arith.constant 0 : i32
    return %c0_i32, %c0_i32_0 : i32, i32
  }
  func.func @transform_10(%arg0: i32) -> (i32, i32, i32) {
    %c0_i32 = arith.constant 0 : i32
    %c0_i32_0 = arith.constant 0 : i32
    %c0_i32_1 = arith.constant 0 : i32
    return %arg0, %c0_i32, %c0_i32_0 : i32, i32, i32
  }
}

module attributes {stable_mosaic.version = 11 : i64} {
  func.func @_ffn_block_kernel(%arg0: i32, %arg1: memref<16x32xf32, #tpu.memory_space<vmem>>, %arg2: memref<32x64xbf16, #tpu.memory_space<vmem>>, %arg3: memref<1x64xf32, #tpu.memory_space<vmem>>, %arg4: memref<64x32xbf16, #tpu.memory_space<vmem>>, %arg5: memref<1x32xf32, #tpu.memory_space<vmem>>, %arg6: memref<1x32xf32, #tpu.memory_space<vmem>>, %arg7: memref<1x32xf32, #tpu.memory_space<vmem>>, %arg8: memref<16x32xf32, #tpu.memory_space<vmem>>) attributes {dimension_semantics = [#tpu.dimension_semantics<parallel>], iteration_bounds = array<i64: 1>, scalar_prefetch = 0 : i64, scratch_operands = 0 : i64, tpu.core_type = #tpu.core_type<tc>, window_params = [{transform_indices = @transform_0, window_bounds = array<i64: 16, 32>}, {pipeline_mode = #tpu.pipeline_mode<synchronous>, transform_indices = @transform_1, window_bounds = array<i64: 32, 64>}, {pipeline_mode = #tpu.pipeline_mode<synchronous>, transform_indices = @transform_2, window_bounds = array<i64: 1, 64>}, {pipeline_mode = #tpu.pipeline_mode<synchronous>, transform_indices = @transform_3, window_bounds = array<i64: 64, 32>}, {pipeline_mode = #tpu.pipeline_mode<synchronous>, transform_indices = @transform_4, window_bounds = array<i64: 1, 32>}, {pipeline_mode = #tpu.pipeline_mode<synchronous>, transform_indices = @transform_5, window_bounds = array<i64: 1, 32>}, {pipeline_mode = #tpu.pipeline_mode<synchronous>, transform_indices = @transform_6, window_bounds = array<i64: 1, 32>}, {transform_indices = @transform_7, window_bounds = array<i64: 16, 32>}]} {
    %c0 = arith.constant 0 : index
    %c0_0 = arith.constant 0 : index
    %0 = vector.load %arg1[%c0, %c0_0] : memref<16x32xf32, #tpu.memory_space<vmem>>, vector<16x32xf32>
    %1 = arith.truncf %0 : vector<16x32xf32> to vector<16x32xbf16>
    %c0_1 = arith.constant 0 : index
    %c0_2 = arith.constant 0 : index
    %2 = vector.load %arg2[%c0_1, %c0_2] : memref<32x64xbf16, #tpu.memory_space<vmem>>, vector<32x64xbf16>
    %cst = arith.constant dense<0.000000e+00> : vector<16x64xf32>
    %3 = tpu.matmul %1, %2, %cst {dimension_numbers = #tpu.dot_dimension_numbers<[1], [0], [0], [1], [0, 0, 1, 1], [], []>} : vector<16x32xbf16>, vector<32x64xbf16>, vector<16x64xf32> -> vector<16x64xf32>
    %c0_3 = arith.constant 0 : index
    %c0_4 = arith.constant 0 : index
    %4 = vector.load %arg3[%c0_3, %c0_4] : memref<1x64xf32, #tpu.memory_space<vmem>>, vector<1x64xf32>
    %5 = vector.broadcast %4 : vector<1x64xf32> to vector<16x64xf32>
    %6 = arith.addf %3, %5 : vector<16x64xf32>
    %cst_5 = arith.constant 0.000000e+00 : f32
    %7 = vector.broadcast %cst_5 : f32 to vector<16x64xf32>
    %8 = arith.maximumf %6, %7 : vector<16x64xf32>
    %9 = arith.truncf %8 : vector<16x64xf32> to vector<16x64xbf16>
    %c0_6 = arith.constant 0 : index
    %c0_7 = arith.constant 0 : index
    %10 = vector.load %arg4[%c0_6, %c0_7] : memref<64x32xbf16, #tpu.memory_space<vmem>>, vector<64x32xbf16>
    %cst_8 = arith.constant dense<0.000000e+00> : vector<16x32xf32>
    %11 = tpu.matmul %9, %10, %cst_8 {dimension_numbers = #tpu.dot_dimension_numbers<[1], [0], [0], [1], [0, 0, 1, 1], [], []>} : vector<16x64xbf16>, vector<64x32xbf16>, vector<16x32xf32> -> vector<16x32xf32>
    %c0_9 = arith.constant 0 : index
    %c0_10 = arith.constant 0 : index
    %12 = vector.load %arg5[%c0_9, %c0_10] : memref<1x32xf32, #tpu.memory_space<vmem>>, vector<1x32xf32>
    %13 = vector.broadcast %12 : vector<1x32xf32> to vector<16x32xf32>
    %14 = arith.addf %11, %13 : vector<16x32xf32>
    %15 = arith.addf %14, %0 : vector<16x32xf32>
    %cst_11 = arith.constant dense<0.000000e+00> : vector<16xf32>
    %16 = vector.multi_reduction <add>, %15, %cst_11 [1] : vector<16x32xf32> to vector<16xf32>
    %17 = vector.shape_cast %16 : vector<16xf32> to vector<16x1xf32>
    %cst_12 = arith.constant 3.200000e+01 : f32
    %18 = vector.broadcast %cst_12 : f32 to vector<16x1xf32>
    %19 = arith.divf %17, %18 : vector<16x1xf32>
    %20 = vector.broadcast %19 : vector<16x1xf32> to vector<16x32xf32>
    %21 = arith.subf %15, %20 : vector<16x32xf32>
    %22 = arith.mulf %21, %21 : vector<16x32xf32>
    %cst_13 = arith.constant dense<0.000000e+00> : vector<16xf32>
    %23 = vector.multi_reduction <add>, %22, %cst_13 [1] : vector<16x32xf32> to vector<16xf32>
    %24 = vector.shape_cast %23 : vector<16xf32> to vector<16x1xf32>
    %cst_14 = arith.constant 3.200000e+01 : f32
    %25 = vector.broadcast %cst_14 : f32 to vector<16x1xf32>
    %26 = arith.divf %24, %25 : vector<16x1xf32>
    %27 = vector.broadcast %19 : vector<16x1xf32> to vector<16x32xf32>
    %28 = arith.subf %15, %27 : vector<16x32xf32>
    %cst_15 = arith.constant 9.99999974E-6 : f32
    %29 = vector.broadcast %cst_15 : f32 to vector<16x1xf32>
    %30 = arith.addf %26, %29 : vector<16x1xf32>
    %31 = math.rsqrt %30 : vector<16x1xf32>
    %32 = vector.broadcast %31 : vector<16x1xf32> to vector<16x32xf32>
    %33 = arith.mulf %28, %32 : vector<16x32xf32>
    %c0_16 = arith.constant 0 : index
    %c0_17 = arith.constant 0 : index
    %34 = vector.load %arg6[%c0_16, %c0_17] : memref<1x32xf32, #tpu.memory_space<vmem>>, vector<1x32xf32>
    %35 = vector.broadcast %34 : vector<1x32xf32> to vector<16x32xf32>
    %36 = arith.mulf %33, %35 : vector<16x32xf32>
    %c0_18 = arith.constant 0 : index
    %c0_19 = arith.constant 0 : index
    %37 = vector.load %arg7[%c0_18, %c0_19] : memref<1x32xf32, #tpu.memory_space<vmem>>, vector<1x32xf32>
    %38 = vector.broadcast %37 : vector<1x32xf32> to vector<16x32xf32>
    %39 = arith.addf %36, %38 : vector<16x32xf32>
    %c0_20 = arith.constant 0 : index
    %c0_21 = arith.constant 0 : index
    %40 = vector.load %arg8[%c0_20, %c0_21] : memref<16x32xf32, #tpu.memory_space<vmem>>, vector<16x32xf32>
    tpu.vector_store %arg8[%c0_20, %c0_21], %39 {strides = array<i32>} : memref<16x32xf32, #tpu.memory_space<vmem>>, vector<16x32xf32>,
    return
  }
  func.func @transform_0(%arg0: i32) -> (i32, i32) {
    %c0_i32 = arith.constant 0 : i32
    %c0_i32_0 = arith.constant 0 : i32
    return %arg0, %c0_i32 : i32, i32
  }
  func.func @transform_1(%arg0: i32) -> (i32, i32) {
    %c0_i32 = arith.constant 0 : i32
    %c0_i32_0 = arith.constant 0 : i32
    %c0_i32_1 = arith.constant 0 : i32
    return %c0_i32, %c0_i32_0 : i32, i32
  }
  func.func @transform_2(%arg0: i32) -> (i32, i32) {
    %c0_i32 = arith.constant 0 : i32
    %c0_i32_0 = arith.constant 0 : i32
    %c0_i32_1 = arith.constant 0 : i32
    return %c0_i32, %c0_i32_0 : i32, i32
  }
  func.func @transform_3(%arg0: i32) -> (i32, i32) {
    %c0_i32 = arith.constant 0 : i32
    %c0_i32_0 = arith.constant 0 : i32
    %c0_i32_1 = arith.constant 0 : i32
    return %c0_i32, %c0_i32_0 : i32, i32
  }
  func.func @transform_4(%arg0: i32) -> (i32, i32) {
    %c0_i32 = arith.constant 0 : i32
    %c0_i32_0 = arith.constant 0 : i32
    %c0_i32_1 = arith.constant 0 : i32
    return %c0_i32, %c0_i32_0 : i32, i32
  }
  func.func @transform_5(%arg0: i32) -> (i32, i32) {
    %c0_i32 = arith.constant 0 : i32
    %c0_i32_0 = arith.constant 0 : i32
    %c0_i32_1 = arith.constant 0 : i32
    return %c0_i32, %c0_i32_0 : i32, i32
  }
  func.func @transform_6(%arg0: i32) -> (i32, i32) {
    %c0_i32 = arith.constant 0 : i32
    %c0_i32_0 = arith.constant 0 : i32
    %c0_i32_1 = arith.constant 0 : i32
    return %c0_i32, %c0_i32_0 : i32, i32
  }
  func.func @transform_7(%arg0: i32) -> (i32, i32) {
    %c0_i32 = arith.constant 0 : i32
    %c0_i32_0 = arith.constant 0 : i32
    return %arg0, %c0_i32 : i32, i32
  }
}

module attributes {stable_mosaic.version = 11 : i64} {
  func.func @_attn_block_kernel(%arg0: i32, %arg1: memref<1x8x32xf32, #tpu.memory_space<vmem>>, %arg2: memref<1x8x32xf32, #tpu.memory_space<vmem>>, %arg3: memref<1x1x8xf32, #tpu.memory_space<vmem>>, %arg4: memref<32x32xbf16, #tpu.memory_space<vmem>>, %arg5: memref<1x32xf32, #tpu.memory_space<vmem>>, %arg6: memref<32x64xbf16, #tpu.memory_space<vmem>>, %arg7: memref<1x64xf32, #tpu.memory_space<vmem>>, %arg8: memref<32x32xbf16, #tpu.memory_space<vmem>>, %arg9: memref<1x32xf32, #tpu.memory_space<vmem>>, %arg10: memref<1x32xf32, #tpu.memory_space<vmem>>, %arg11: memref<1x32xf32, #tpu.memory_space<vmem>>, %arg12: memref<1x8x32xf32, #tpu.memory_space<vmem>>) attributes {dimension_semantics = [#tpu.dimension_semantics<parallel>], iteration_bounds = array<i64: 2>, scalar_prefetch = 0 : i64, scratch_operands = 0 : i64, tpu.core_type = #tpu.core_type<tc>, window_params = [{transform_indices = @transform_0, window_bounds = array<i64: 1, 8, 32>}, {transform_indices = @transform_1, window_bounds = array<i64: 1, 8, 32>}, {transform_indices = @transform_2, window_bounds = array<i64: 1, 1, 8>}, {pipeline_mode = #tpu.pipeline_mode<synchronous>, transform_indices = @transform_3, window_bounds = array<i64: 32, 32>}, {pipeline_mode = #tpu.pipeline_mode<synchronous>, transform_indices = @transform_4, window_bounds = array<i64: 1, 32>}, {pipeline_mode = #tpu.pipeline_mode<synchronous>, transform_indices = @transform_5, window_bounds = array<i64: 32, 64>}, {pipeline_mode = #tpu.pipeline_mode<synchronous>, transform_indices = @transform_6, window_bounds = array<i64: 1, 64>}, {pipeline_mode = #tpu.pipeline_mode<synchronous>, transform_indices = @transform_7, window_bounds = array<i64: 32, 32>}, {pipeline_mode = #tpu.pipeline_mode<synchronous>, transform_indices = @transform_8, window_bounds = array<i64: 1, 32>}, {pipeline_mode = #tpu.pipeline_mode<synchronous>, transform_indices = @transform_9, window_bounds = array<i64: 1, 32>}, {pipeline_mode = #tpu.pipeline_mode<synchronous>, transform_indices = @transform_10, window_bounds = array<i64: 1, 32>}, {transform_indices = @transform_11, window_bounds = array<i64: 1, 8, 32>}]} {
    %c0 = arith.constant 0 : index
    %c0_0 = arith.constant 0 : index
    %c0_1 = arith.constant 0 : index
    %0 = vector.load %arg1[%c0, %c0_0, %c0_1] : memref<1x8x32xf32, #tpu.memory_space<vmem>>, vector<1x8x32xf32>
    %1 = vector.shape_cast %0 : vector<1x8x32xf32> to vector<8x32xf32>
    %c0_2 = arith.constant 0 : index
    %c0_3 = arith.constant 0 : index
    %c0_4 = arith.constant 0 : index
    %2 = vector.load %arg2[%c0_2, %c0_3, %c0_4] : memref<1x8x32xf32, #tpu.memory_space<vmem>>, vector<1x8x32xf32>
    %3 = vector.shape_cast %2 : vector<1x8x32xf32> to vector<8x32xf32>
    %4 = arith.truncf %1 : vector<8x32xf32> to vector<8x32xbf16>
    %c0_5 = arith.constant 0 : index
    %c0_6 = arith.constant 0 : index
    %5 = vector.load %arg4[%c0_5, %c0_6] : memref<32x32xbf16, #tpu.memory_space<vmem>>, vector<32x32xbf16>
    %cst = arith.constant dense<0.000000e+00> : vector<8x32xf32>
    %6 = tpu.matmul %4, %5, %cst {dimension_numbers = #tpu.dot_dimension_numbers<[1], [0], [0], [1], [0, 0, 1, 1], [], []>} : vector<8x32xbf16>, vector<32x32xbf16>, vector<8x32xf32> -> vector<8x32xf32>
    %c0_7 = arith.constant 0 : index
    %c0_8 = arith.constant 0 : index
    %7 = vector.load %arg5[%c0_7, %c0_8] : memref<1x32xf32, #tpu.memory_space<vmem>>, vector<1x32xf32>
    %8 = vector.broadcast %7 : vector<1x32xf32> to vector<8x32xf32>
    %9 = arith.addf %6, %8 : vector<8x32xf32>
    %10 = arith.truncf %3 : vector<8x32xf32> to vector<8x32xbf16>
    %c0_9 = arith.constant 0 : index
    %c0_10 = arith.constant 0 : index
    %11 = vector.load %arg6[%c0_9, %c0_10] : memref<32x64xbf16, #tpu.memory_space<vmem>>, vector<32x64xbf16>
    %cst_11 = arith.constant dense<0.000000e+00> : vector<8x64xf32>
    %12 = tpu.matmul %10, %11, %cst_11 {dimension_numbers = #tpu.dot_dimension_numbers<[1], [0], [0], [1], [0, 0, 1, 1], [], []>} : vector<8x32xbf16>, vector<32x64xbf16>, vector<8x64xf32> -> vector<8x64xf32>
    %c0_12 = arith.constant 0 : index
    %c0_13 = arith.constant 0 : index
    %13 = vector.load %arg7[%c0_12, %c0_13] : memref<1x64xf32, #tpu.memory_space<vmem>>, vector<1x64xf32>
    %14 = vector.broadcast %13 : vector<1x64xf32> to vector<8x64xf32>
    %15 = arith.addf %12, %14 : vector<8x64xf32>
    %16 = arith.truncf %9 : vector<8x32xf32> to vector<8x32xbf16>
    %17 = vector.extract_strided_slice %15 {offsets = [0, 0], sizes = [8, 32], strides = [1, 1]} : vector<8x64xf32> to vector<8x32xf32>
    %18 = arith.truncf %17 : vector<8x32xf32> to vector<8x32xbf16>
    %19 = vector.extract_strided_slice %15 {offsets = [0, 32], sizes = [8, 32], strides = [1, 1]} : vector<8x64xf32> to vector<8x32xf32>
    %20 = arith.truncf %19 : vector<8x32xf32> to vector<8x32xbf16>
    %c0_14 = arith.constant 0 : index
    %c0_15 = arith.constant 0 : index
    %c0_16 = arith.constant 0 : index
    %21 = vector.load %arg3[%c0_14, %c0_15, %c0_16] : memref<1x1x8xf32, #tpu.memory_space<vmem>>, vector<1x1x8xf32>
    %22 = vector.shape_cast %21 : vector<1x1x8xf32> to vector<1x8xf32>
    %cst_17 = arith.constant 1.000000e+00 : f32
    %23 = vector.broadcast %cst_17 : f32 to vector<1x8xf32>
    %24 = arith.subf %22, %23 : vector<1x8xf32>
    %cst_18 = arith.constant 1.000000e+09 : f32
    %25 = vector.broadcast %cst_18 : f32 to vector<1x8xf32>
    %26 = arith.mulf %24, %25 : vector<1x8xf32>
    %27 = vector.extract_strided_slice %16 {offsets = [0, 0], sizes = [8, 8], strides = [1, 1]} : vector<8x32xbf16> to vector<8x8xbf16>
    %28 = vector.extract_strided_slice %18 {offsets = [0, 0], sizes = [8, 8], strides = [1, 1]} : vector<8x32xbf16> to vector<8x8xbf16>
    %cst_19 = arith.constant dense<0.000000e+00> : vector<8x8xf32>
    %29 = tpu.matmul %27, %28, %cst_19 {dimension_numbers = #tpu.dot_dimension_numbers<[1], [1], [0], [0], [0, 0, 1, 0], [], []>} : vector<8x8xbf16>, vector<8x8xbf16>, vector<8x8xf32> -> vector<8x8xf32>
    %cst_20 = arith.constant 0.353553385 : f32
    %30 = vector.broadcast %cst_20 : f32 to vector<8x8xf32>
    %31 = arith.mulf %29, %30 : vector<8x8xf32>
    %32 = vector.broadcast %26 : vector<1x8xf32> to vector<8x8xf32>
    %33 = arith.addf %31, %32 : vector<8x8xf32>
    %cst_21 = arith.constant dense<0xFF800000> : vector<8xf32>
    %34 = vector.multi_reduction <maximumf>, %33, %cst_21 [1] : vector<8x8xf32> to vector<8xf32>
    %35 = vector.shape_cast %34 : vector<8xf32> to vector<8x1xf32>
    %36 = vector.broadcast %35 : vector<8x1xf32> to vector<8x8xf32>
    %37 = arith.subf %33, %36 : vector<8x8xf32>
    %38 = math.exp %37 : vector<8x8xf32>
    %cst_22 = arith.constant dense<0.000000e+00> : vector<8xf32>
    %39 = vector.multi_reduction <add>, %38, %cst_22 [1] : vector<8x8xf32> to vector<8xf32>
    %40 = vector.shape_cast %39 : vector<8xf32> to vector<8x1xf32>
    %41 = tpu.reciprocal %40 {approx = true} : vector<8x1xf32> -> vector<8x1xf32>
    %42 = vector.broadcast %41 : vector<8x1xf32> to vector<8x8xf32>
    %43 = arith.mulf %38, %42 : vector<8x8xf32>
    %44 = arith.truncf %43 : vector<8x8xf32> to vector<8x8xbf16>
    %45 = vector.extract_strided_slice %20 {offsets = [0, 0], sizes = [8, 8], strides = [1, 1]} : vector<8x32xbf16> to vector<8x8xbf16>
    %cst_23 = arith.constant dense<0.000000e+00> : vector<8x8xf32>
    %46 = tpu.matmul %44, %45, %cst_23 {dimension_numbers = #tpu.dot_dimension_numbers<[1], [0], [0], [1], [0, 0, 1, 1], [], []>} : vector<8x8xbf16>, vector<8x8xbf16>, vector<8x8xf32> -> vector<8x8xf32>
    %47 = vector.extract_strided_slice %16 {offsets = [0, 8], sizes = [8, 8], strides = [1, 1]} : vector<8x32xbf16> to vector<8x8xbf16>
    %48 = vector.extract_strided_slice %18 {offsets = [0, 8], sizes = [8, 8], strides = [1, 1]} : vector<8x32xbf16> to vector<8x8xbf16>
    %cst_24 = arith.constant dense<0.000000e+00> : vector<8x8xf32>
    %49 = tpu.matmul %47, %48, %cst_24 {dimension_numbers = #tpu.dot_dimension_numbers<[1], [1], [0], [0], [0, 0, 1, 0], [], []>} : vector<8x8xbf16>, vector<8x8xbf16>, vector<8x8xf32> -> vector<8x8xf32>
    %cst_25 = arith.constant 0.353553385 : f32
    %50 = vector.broadcast %cst_25 : f32 to vector<8x8xf32>
    %51 = arith.mulf %49, %50 : vector<8x8xf32>
    %52 = vector.broadcast %26 : vector<1x8xf32> to vector<8x8xf32>
    %53 = arith.addf %51, %52 : vector<8x8xf32>
    %cst_26 = arith.constant dense<0xFF800000> : vector<8xf32>
    %54 = vector.multi_reduction <maximumf>, %53, %cst_26 [1] : vector<8x8xf32> to vector<8xf32>
    %55 = vector.shape_cast %54 : vector<8xf32> to vector<8x1xf32>
    %56 = vector.broadcast %55 : vector<8x1xf32> to vector<8x8xf32>
    %57 = arith.subf %53, %56 : vector<8x8xf32>
    %58 = math.exp %57 : vector<8x8xf32>
    %cst_27 = arith.constant dense<0.000000e+00> : vector<8xf32>
    %59 = vector.multi_reduction <add>, %58, %cst_27 [1] : vector<8x8xf32> to vector<8xf32>
    %60 = vector.shape_cast %59 : vector<8xf32> to vector<8x1xf32>
    %61 = tpu.reciprocal %60 {approx = true} : vector<8x1xf32> -> vector<8x1xf32>
    %62 = vector.broadcast %61 : vector<8x1xf32> to vector<8x8xf32>
    %63 = arith.mulf %58, %62 : vector<8x8xf32>
    %64 = arith.truncf %63 : vector<8x8xf32> to vector<8x8xbf16>
    %65 = vector.extract_strided_slice %20 {offsets = [0, 8], sizes = [8, 8], strides = [1, 1]} : vector<8x32xbf16> to vector<8x8xbf16>
    %cst_28 = arith.constant dense<0.000000e+00> : vector<8x8xf32>
    %66 = tpu.matmul %64, %65, %cst_28 {dimension_numbers = #tpu.dot_dimension_numbers<[1], [0], [0], [1], [0, 0, 1, 1], [], []>} : vector<8x8xbf16>, vector<8x8xbf16>, vector<8x8xf32> -> vector<8x8xf32>
    %67 = vector.extract_strided_slice %16 {offsets = [0, 16], sizes = [8, 8], strides = [1, 1]} : vector<8x32xbf16> to vector<8x8xbf16>
    %68 = vector.extract_strided_slice %18 {offsets = [0, 16], sizes = [8, 8], strides = [1, 1]} : vector<8x32xbf16> to vector<8x8xbf16>
    %cst_29 = arith.constant dense<0.000000e+00> : vector<8x8xf32>
    %69 = tpu.matmul %67, %68, %cst_29 {dimension_numbers = #tpu.dot_dimension_numbers<[1], [1], [0], [0], [0, 0, 1, 0], [], []>} : vector<8x8xbf16>, vector<8x8xbf16>, vector<8x8xf32> -> vector<8x8xf32>
    %cst_30 = arith.constant 0.353553385 : f32
    %70 = vector.broadcast %cst_30 : f32 to vector<8x8xf32>
    %71 = arith.mulf %69, %70 : vector<8x8xf32>
    %72 = vector.broadcast %26 : vector<1x8xf32> to vector<8x8xf32>
    %73 = arith.addf %71, %72 : vector<8x8xf32>
    %cst_31 = arith.constant dense<0xFF800000> : vector<8xf32>
    %74 = vector.multi_reduction <maximumf>, %73, %cst_31 [1] : vector<8x8xf32> to vector<8xf32>
    %75 = vector.shape_cast %74 : vector<8xf32> to vector<8x1xf32>
    %76 = vector.broadcast %75 : vector<8x1xf32> to vector<8x8xf32>
    %77 = arith.subf %73, %76 : vector<8x8xf32>
    %78 = math.exp %77 : vector<8x8xf32>
    %cst_32 = arith.constant dense<0.000000e+00> : vector<8xf32>
    %79 = vector.multi_reduction <add>, %78, %cst_32 [1] : vector<8x8xf32> to vector<8xf32>
    %80 = vector.shape_cast %79 : vector<8xf32> to vector<8x1xf32>
    %81 = tpu.reciprocal %80 {approx = true} : vector<8x1xf32> -> vector<8x1xf32>
    %82 = vector.broadcast %81 : vector<8x1xf32> to vector<8x8xf32>
    %83 = arith.mulf %78, %82 : vector<8x8xf32>
    %84 = arith.truncf %83 : vector<8x8xf32> to vector<8x8xbf16>
    %85 = vector.extract_strided_slice %20 {offsets = [0, 16], sizes = [8, 8], strides = [1, 1]} : vector<8x32xbf16> to vector<8x8xbf16>
    %cst_33 = arith.constant dense<0.000000e+00> : vector<8x8xf32>
    %86 = tpu.matmul %84, %85, %cst_33 {dimension_numbers = #tpu.dot_dimension_numbers<[1], [0], [0], [1], [0, 0, 1, 1], [], []>} : vector<8x8xbf16>, vector<8x8xbf16>, vector<8x8xf32> -> vector<8x8xf32>
    %87 = vector.extract_strided_slice %16 {offsets = [0, 24], sizes = [8, 8], strides = [1, 1]} : vector<8x32xbf16> to vector<8x8xbf16>
    %88 = vector.extract_strided_slice %18 {offsets = [0, 24], sizes = [8, 8], strides = [1, 1]} : vector<8x32xbf16> to vector<8x8xbf16>
    %cst_34 = arith.constant dense<0.000000e+00> : vector<8x8xf32>
    %89 = tpu.matmul %87, %88, %cst_34 {dimension_numbers = #tpu.dot_dimension_numbers<[1], [1], [0], [0], [0, 0, 1, 0], [], []>} : vector<8x8xbf16>, vector<8x8xbf16>, vector<8x8xf32> -> vector<8x8xf32>
    %cst_35 = arith.constant 0.353553385 : f32
    %90 = vector.broadcast %cst_35 : f32 to vector<8x8xf32>
    %91 = arith.mulf %89, %90 : vector<8x8xf32>
    %92 = vector.broadcast %26 : vector<1x8xf32> to vector<8x8xf32>
    %93 = arith.addf %91, %92 : vector<8x8xf32>
    %cst_36 = arith.constant dense<0xFF800000> : vector<8xf32>
    %94 = vector.multi_reduction <maximumf>, %93, %cst_36 [1] : vector<8x8xf32> to vector<8xf32>
    %95 = vector.shape_cast %94 : vector<8xf32> to vector<8x1xf32>
    %96 = vector.broadcast %95 : vector<8x1xf32> to vector<8x8xf32>
    %97 = arith.subf %93, %96 : vector<8x8xf32>
    %98 = math.exp %97 : vector<8x8xf32>
    %cst_37 = arith.constant dense<0.000000e+00> : vector<8xf32>
    %99 = vector.multi_reduction <add>, %98, %cst_37 [1] : vector<8x8xf32> to vector<8xf32>
    %100 = vector.shape_cast %99 : vector<8xf32> to vector<8x1xf32>
    %101 = tpu.reciprocal %100 {approx = true} : vector<8x1xf32> -> vector<8x1xf32>
    %102 = vector.broadcast %101 : vector<8x1xf32> to vector<8x8xf32>
    %103 = arith.mulf %98, %102 : vector<8x8xf32>
    %104 = arith.truncf %103 : vector<8x8xf32> to vector<8x8xbf16>
    %105 = vector.extract_strided_slice %20 {offsets = [0, 24], sizes = [8, 8], strides = [1, 1]} : vector<8x32xbf16> to vector<8x8xbf16>
    %cst_38 = arith.constant dense<0.000000e+00> : vector<8x8xf32>
    %106 = tpu.matmul %104, %105, %cst_38 {dimension_numbers = #tpu.dot_dimension_numbers<[1], [0], [0], [1], [0, 0, 1, 1], [], []>} : vector<8x8xbf16>, vector<8x8xbf16>, vector<8x8xf32> -> vector<8x8xf32>
    %107 = tpu.concatenate %46, %66, %86, %106 in 1 : vector<8x8xf32>, vector<8x8xf32>, vector<8x8xf32>, vector<8x8xf32> -> vector<8x32xf32>
    %108 = arith.truncf %107 : vector<8x32xf32> to vector<8x32xbf16>
    %c0_39 = arith.constant 0 : index
    %c0_40 = arith.constant 0 : index
    %109 = vector.load %arg8[%c0_39, %c0_40] : memref<32x32xbf16, #tpu.memory_space<vmem>>, vector<32x32xbf16>
    %cst_41 = arith.constant dense<0.000000e+00> : vector<8x32xf32>
    %110 = tpu.matmul %108, %109, %cst_41 {dimension_numbers = #tpu.dot_dimension_numbers<[1], [0], [0], [1], [0, 0, 1, 1], [], []>} : vector<8x32xbf16>, vector<32x32xbf16>, vector<8x32xf32> -> vector<8x32xf32>
    %c0_42 = arith.constant 0 : index
    %c0_43 = arith.constant 0 : index
    %111 = vector.load %arg9[%c0_42, %c0_43] : memref<1x32xf32, #tpu.memory_space<vmem>>, vector<1x32xf32>
    %112 = vector.broadcast %111 : vector<1x32xf32> to vector<8x32xf32>
    %113 = arith.addf %110, %112 : vector<8x32xf32>
    %114 = arith.addf %113, %1 : vector<8x32xf32>
    %cst_44 = arith.constant dense<0.000000e+00> : vector<8xf32>
    %115 = vector.multi_reduction <add>, %114, %cst_44 [1] : vector<8x32xf32> to vector<8xf32>
    %116 = vector.shape_cast %115 : vector<8xf32> to vector<8x1xf32>
    %cst_45 = arith.constant 3.200000e+01 : f32
    %117 = vector.broadcast %cst_45 : f32 to vector<8x1xf32>
    %118 = arith.divf %116, %117 : vector<8x1xf32>
    %119 = vector.broadcast %118 : vector<8x1xf32> to vector<8x32xf32>
    %120 = arith.subf %114, %119 : vector<8x32xf32>
    %121 = arith.mulf %120, %120 : vector<8x32xf32>
    %cst_46 = arith.constant dense<0.000000e+00> : vector<8xf32>
    %122 = vector.multi_reduction <add>, %121, %cst_46 [1] : vector<8x32xf32> to vector<8xf32>
    %123 = vector.shape_cast %122 : vector<8xf32> to vector<8x1xf32>
    %cst_47 = arith.constant 3.200000e+01 : f32
    %124 = vector.broadcast %cst_47 : f32 to vector<8x1xf32>
    %125 = arith.divf %123, %124 : vector<8x1xf32>
    %126 = vector.broadcast %118 : vector<8x1xf32> to vector<8x32xf32>
    %127 = arith.subf %114, %126 : vector<8x32xf32>
    %cst_48 = arith.constant 9.99999974E-6 : f32
    %128 = vector.broadcast %cst_48 : f32 to vector<8x1xf32>
    %129 = arith.addf %125, %128 : vector<8x1xf32>
    %130 = math.rsqrt %129 : vector<8x1xf32>
    %131 = vector.broadcast %130 : vector<8x1xf32> to vector<8x32xf32>
    %132 = arith.mulf %127, %131 : vector<8x32xf32>
    %c0_49 = arith.constant 0 : index
    %c0_50 = arith.constant 0 : index
    %133 = vector.load %arg10[%c0_49, %c0_50] : memref<1x32xf32, #tpu.memory_space<vmem>>, vector<1x32xf32>
    %134 = vector.broadcast %133 : vector<1x32xf32> to vector<8x32xf32>
    %135 = arith.mulf %132, %134 : vector<8x32xf32>
    %c0_51 = arith.constant 0 : index
    %c0_52 = arith.constant 0 : index
    %136 = vector.load %arg11[%c0_51, %c0_52] : memref<1x32xf32, #tpu.memory_space<vmem>>, vector<1x32xf32>
    %137 = vector.broadcast %136 : vector<1x32xf32> to vector<8x32xf32>
    %138 = arith.addf %135, %137 : vector<8x32xf32>
    %c0_53 = arith.constant 0 : index
    %c0_54 = arith.constant 0 : index
    %c0_55 = arith.constant 0 : index
    %139 = vector.load %arg12[%c0_53, %c0_54, %c0_55] : memref<1x8x32xf32, #tpu.memory_space<vmem>>, vector<1x8x32xf32>
    %140 = vector.shape_cast %139 : vector<1x8x32xf32> to vector<8x32xf32>
    %141 = vector.shape_cast %138 : vector<8x32xf32> to vector<1x8x32xf32>
    tpu.vector_store %arg12[%c0_53, %c0_54, %c0_55], %141 {strides = array<i32>} : memref<1x8x32xf32, #tpu.memory_space<vmem>>, vector<1x8x32xf32>,
    return
  }
  func.func @transform_0(%arg0: i32) -> (i32, i32, i32) {
    %c0_i32 = arith.constant 0 : i32
    %c0_i32_0 = arith.constant 0 : i32
    %c0_i32_1 = arith.constant 0 : i32
    return %arg0, %c0_i32, %c0_i32_0 : i32, i32, i32
  }
  func.func @transform_1(%arg0: i32) -> (i32, i32, i32) {
    %c0_i32 = arith.constant 0 : i32
    %c0_i32_0 = arith.constant 0 : i32
    %c0_i32_1 = arith.constant 0 : i32
    return %arg0, %c0_i32, %c0_i32_0 : i32, i32, i32
  }
  func.func @transform_2(%arg0: i32) -> (i32, i32, i32) {
    %c0_i32 = arith.constant 0 : i32
    %c0_i32_0 = arith.constant 0 : i32
    %c0_i32_1 = arith.constant 0 : i32
    return %arg0, %c0_i32, %c0_i32_0 : i32, i32, i32
  }
  func.func @transform_3(%arg0: i32) -> (i32, i32) {
    %c0_i32 = arith.constant 0 : i32
    %c0_i32_0 = arith.constant 0 : i32
    %c0_i32_1 = arith.constant 0 : i32
    return %c0_i32, %c0_i32_0 : i32, i32
  }
  func.func @transform_4(%arg0: i32) -> (i32, i32) {
    %c0_i32 = arith.constant 0 : i32
    %c0_i32_0 = arith.constant 0 : i32
    %c0_i32_1 = arith.constant 0 : i32
    return %c0_i32, %c0_i32_0 : i32, i32
  }
  func.func @transform_5(%arg0: i32) -> (i32, i32) {
    %c0_i32 = arith.constant 0 : i32
    %c0_i32_0 = arith.constant 0 : i32
    %c0_i32_1 = arith.constant 0 : i32
    return %c0_i32, %c0_i32_0 : i32, i32
  }
  func.func @transform_6(%arg0: i32) -> (i32, i32) {
    %c0_i32 = arith.constant 0 : i32
    %c0_i32_0 = arith.constant 0 : i32
    %c0_i32_1 = arith.constant 0 : i32
    return %c0_i32, %c0_i32_0 : i32, i32
  }
  func.func @transform_7(%arg0: i32) -> (i32, i32) {
    %c0_i32 = arith.constant 0 : i32
    %c0_i32_0 = arith.constant 0 : i32
    %c0_i32_1 = arith.constant 0 : i32
    return %c0_i32, %c0_i32_0 : i32, i32
  }
  func.func @transform_8(%arg0: i32) -> (i32, i32) {
    %c0_i32 = arith.constant 0 : i32
    %c0_i32_0 = arith.constant 0 : i32
    %c0_i32_1 = arith.constant 0 : i32
    return %c0_i32, %c0_i32_0 : i32, i32
  }
  func.func @transform_9(%arg0: i32) -> (i32, i32) {
    %c0_i32 = arith.constant 0 : i32
    %c0_i32_0 = arith.constant 0 : i32
    %c0_i32_1 = arith.constant 0 : i32
    return %c0_i32, %c0_i32_0 : i32, i32
  }
  func.func @transform_10(%arg0: i32) -> (i32, i32) {
    %c0_i32 = arith.constant 0 : i32
    %c0_i32_0 = arith.constant 0 : i32
    %c0_i32_1 = arith.constant 0 : i32
    return %c0_i32, %c0_i32_0 : i32, i32
  }
  func.func @transform_11(%arg0: i32) -> (i32, i32, i32) {
    %c0_i32 = arith.constant 0 : i32
    %c0_i32_0 = arith.constant 0 : i32
    %c0_i32_1 = arith.constant 0 : i32
    return %arg0, %c0_i32, %c0_i32_0 : i32, i32, i32
  }
}

module attributes {stable_mosaic.version = 11 : i64} {
  func.func @_linear_kernel(%arg0: i32, %arg1: i32, %arg2: i32, %arg3: memref<16x32xf32, #tpu.memory_space<vmem>>, %arg4: memref<32x128xbf16, #tpu.memory_space<vmem>>, %arg5: memref<1x128xf32, #tpu.memory_space<vmem>>, %arg6: memref<16x128xf32, #tpu.memory_space<vmem>>, %arg7: memref<16x128xf32, #tpu.memory_space<vmem>>) attributes {dimension_semantics = [#tpu.dimension_semantics<parallel>, #tpu.dimension_semantics<parallel>, #tpu.dimension_semantics<arbitrary>], iteration_bounds = array<i64: 1, 1, 1>, scalar_prefetch = 0 : i64, scratch_operands = 1 : i64, tpu.core_type = #tpu.core_type<tc>, window_params = [{transform_indices = @transform_0, window_bounds = array<i64: 16, 32>}, {transform_indices = @transform_1, window_bounds = array<i64: 32, 128>}, {transform_indices = @transform_2, window_bounds = array<i64: 1, 128>}, {transform_indices = @transform_3, window_bounds = array<i64: 16, 128>}]} {
    %c0_i32 = arith.constant 0 : i32
    %0 = arith.cmpi eq, %arg2, %c0_i32 : i32
    %1 = arith.extui %0 : i1 to i32
    %c0_i32_0 = arith.constant 0 : i32
    %2 = arith.cmpi ne, %1, %c0_i32_0 : i32
    scf.if %2 {
      %cst_10 = arith.constant 0.000000e+00 : f32
      %13 = vector.broadcast %cst_10 : f32 to vector<16x128xf32>
      %c0_11 = arith.constant 0 : index
      %c0_12 = arith.constant 0 : index
      %14 = vector.load %arg7[%c0_11, %c0_12] : memref<16x128xf32, #tpu.memory_space<vmem>>, vector<16x128xf32>
      tpu.vector_store %arg7[%c0_11, %c0_12], %13 {strides = array<i32>} : memref<16x128xf32, #tpu.memory_space<vmem>>, vector<16x128xf32>,
    } else {
    }
    %c0 = arith.constant 0 : index
    %c0_1 = arith.constant 0 : index
    %3 = vector.load %arg7[%c0, %c0_1] : memref<16x128xf32, #tpu.memory_space<vmem>>, vector<16x128xf32>
    %c0_2 = arith.constant 0 : index
    %c0_3 = arith.constant 0 : index
    %4 = vector.load %arg3[%c0_2, %c0_3] : memref<16x32xf32, #tpu.memory_space<vmem>>, vector<16x32xf32>
    %5 = arith.truncf %4 : vector<16x32xf32> to vector<16x32xbf16>
    %c0_4 = arith.constant 0 : index
    %c0_5 = arith.constant 0 : index
    %6 = vector.load %arg4[%c0_4, %c0_5] : memref<32x128xbf16, #tpu.memory_space<vmem>>, vector<32x128xbf16>
    %cst = arith.constant dense<0.000000e+00> : vector<16x128xf32>
    %7 = tpu.matmul %5, %6, %cst {dimension_numbers = #tpu.dot_dimension_numbers<[1], [0], [0], [1], [0, 0, 1, 1], [], []>} : vector<16x32xbf16>, vector<32x128xbf16>, vector<16x128xf32> -> vector<16x128xf32>
    %8 = arith.addf %3, %7 : vector<16x128xf32>
    %c0_6 = arith.constant 0 : index
    %c0_7 = arith.constant 0 : index
    %9 = vector.load %arg7[%c0_6, %c0_7] : memref<16x128xf32, #tpu.memory_space<vmem>>, vector<16x128xf32>
    tpu.vector_store %arg7[%c0_6, %c0_7], %8 {strides = array<i32>} : memref<16x128xf32, #tpu.memory_space<vmem>>, vector<16x128xf32>,
    %c0_i32_8 = arith.constant 0 : i32
    %10 = arith.cmpi eq, %arg2, %c0_i32_8 : i32
    %11 = arith.extui %10 : i1 to i32
    %c0_i32_9 = arith.constant 0 : i32
    %12 = arith.cmpi ne, %11, %c0_i32_9 : i32
    scf.if %12 {
      %c0_10 = arith.constant 0 : index
      %c0_11 = arith.constant 0 : index
      %13 = vector.load %arg7[%c0_10, %c0_11] : memref<16x128xf32, #tpu.memory_space<vmem>>, vector<16x128xf32>
      %c0_12 = arith.constant 0 : index
      %c0_13 = arith.constant 0 : index
      %14 = vector.load %arg5[%c0_12, %c0_13] : memref<1x128xf32, #tpu.memory_space<vmem>>, vector<1x128xf32>
      %15 = vector.broadcast %14 : vector<1x128xf32> to vector<16x128xf32>
      %16 = arith.addf %13, %15 : vector<16x128xf32>
      %c0_14 = arith.constant 0 : index
      %c0_15 = arith.constant 0 : index
      %17 = vector.load %arg6[%c0_14, %c0_15] : memref<16x128xf32, #tpu.memory_space<vmem>>, vector<16x128xf32>
      tpu.vector_store %arg6[%c0_14, %c0_15], %16 {strides = array<i32>} : memref<16x128xf32, #tpu.memory_space<vmem>>, vector<16x128xf32>,
    } else {
    }
    return
  }
  func.func @transform_0(%arg0: i32, %arg1: i32, %arg2: i32) -> (i32, i32) {
    %c0_i32 = arith.constant 0 : i32
    return %arg0, %arg2 : i32, i32
  }
  func.func @transform_1(%arg0: i32, %arg1: i32, %arg2: i32) -> (i32, i32) {
    %c0_i32 = arith.constant 0 : i32
    return %arg2, %arg1 : i32, i32
  }
  func.func @transform_2(%arg0: i32, %arg1: i32, %arg2: i32) -> (i32, i32) {
    %c0_i32 = arith.constant 0 : i32
    %c0_i32_0 = arith.constant 0 : i32
    return %c0_i32, %arg1 : i32, i32
  }
  func.func @transform_3(%arg0: i32, %arg1: i32, %arg2: i32) -> (i32, i32) {
    %c0_i32 = arith.constant 0 : i32
    return %arg0, %arg1 : i32, i32
  }
}

</mosaic_0001>

<bundles_post_ra>
// kernel: _lambda_.12
= control target key start
LH: loop header
LB: loop body
LE: loop exit
PB: predicated region body
PF: predicated region fallthrough
CT: control target
= control target key end

     0   :  { %v290_v0 = vmov 0.0   ;;  %vm291_vm0 = vmmov 0   ;;  %vm53_vm1 = vcmask 261120   ;;  %vm140_vm2 = vcmask 523264   ;;  %s381_s1 = inlined_call_operand.vmem [shape: bf16[32,64], index: 1, kind: input, shape index: {}]   ;;  %s382_s0 = inlined_call_operand.vmem [shape: f32[16,32], index: 0, kind: input, shape index: {}]   ;;  %s383_s3 = inlined_call_operand.vmem [shape: bf16[64,32], index: 3, kind: input, shape index: {}]   ;;  %s384_s2 = inlined_call_operand.vmem [shape: f32[1,64], index: 2, kind: input, shape index: {}]   ;;  %s385_s4 = inlined_call_operand.vmem [shape: f32[1,32], index: 4, kind: input, shape index: {}]   ;;  %s386_s5 = inlined_call_operand.vmem [shape: f32[1,32], index: 5, kind: input, shape index: {}]   ;;  %s387_s6 = inlined_call_operand.vmem [shape: f32[1,32], index: 6, kind: input, shape index: {}]   ;;  %s388_s7 = inlined_call_operand.vmem [shape: f32[16,32], index: 7, kind: output, shape index: {}]  }
   0x1   :  { %258 = vmatprep.subr.bf16.mxu0 %v290_v0  ;;  %v280_v1 = vld [vmem:[%s381_s1 + $0x8] sm:$0xff]   ;;  %262 = vmatprep.mubr.msk.bf16.mxu0 %vm291_vm0, %v290_v0  ;;  %v281_v2 = vld [vmem:[%s381_s1] sm:$0xff]   ;;  %v282_v5 = vld [vmem:[%s383_s3 + $0x18] sm:$0xff]  }
   0x2   :  { %266 = vmatprep.subr.bf16.mxu1 %v290_v0  ;;  %274 = vmatprep.mubr.msk.bf16.mxu1 %vm291_vm0, %v290_v0  ;;  %v27_v3 = vld [vmem:[%s382_s0] sm:$0xff]  ;;  %v28_v4 = vld [vmem:[%s382_s0 + $0x8] sm:$0xff]  ;;  %v283_v7 = vld [vmem:[%s383_s3 + $0x10] sm:$0xff]  }
   0x3   :  { %259 = vmatpush3.bf16.msra.mxu0 %v280_v1  ;;  %v29_v6 = vpack.c.bf16 %v28_v4, %v27_v3  ;;  %267 = vmatpush3.bf16.msra.mxu1 %v282_v5  ;;  %v284_v8 = vld [vmem:[%s383_s3 + $0x8] sm:$0xff]   ;;  %v285_v9 = vld [vmem:[%s383_s3] sm:$0xff]  }
   0x4   :  { %260 = vmatprep.subr.bf16.mxu0 %v290_v0  ;;  %268 = vmatprep.subr.bf16.mxu1 %v290_v0  ;;  %v238_v10 = vld [vmem:[%s384_s2] ss:$0 sm:$0xff] }
   0x5   :  { %v242_v20 = vld [vmem:[%s385_s4] ss:$0 sm:$0xff] }
   0x6   :  { %v248_v48 = vld [vmem:[%s386_s5] ss:$0 sm:$0xff] }
   0x7   :  { %261 = vmatpush3.bf16.msra.mxu0 %v281_v2  ;;  %269 = vmatpush3.bf16.msra.mxu1 %v283_v7  ;;  %v249_v50 = vld [vmem:[%s387_s6] ss:$0 sm:$0xff] }
   0x8   :  { %270 = vmatprep.subr.bf16.mxu1 %v290_v0 }
   0xa   :  { %263 = vmatmul.mubr.msk.bf16.vlgmr.msra.gmra.mxu0 %vm53_vm1, %v29_v6 }
   0xb   :  { %271 = vmatpush3.bf16.msra.mxu1 %v284_v8 }
   0xc   :  { %272 = vmatprep.subr.bf16.mxu1 %v290_v0 }
   0xf   :  { %273 = vmatpush3.bf16.msra.mxu1 %v285_v9 }
  0xca   :  { %v91_v11 = vpop.f32.mrf.mxu0 }
  0xcb   :  { %v92_v13 = vadd.f32 %v238_v10, %v91_v11 }
  0xcc   :  { %v264_v12 = vpop.f32.mrf.mxu0 }
  0xcd   :  { %v98_v17 = vmax.f32 %v92_v13, 0.0 }
  0xce   :  { %v94_v14 = vpop.f32.mrf.mxu0 }
  0xcf   :  { %v95_v15 = vadd.f32 %v238_v10, %v94_v14 }
  0xd0   :  { %v265_v16 = vpop.f32.mrf.mxu0 }
  0xd1   :  { %v99_v18 = vmax.f32 %v95_v15, 0.0 }
  0xd3   :  { %v100_v19 = vpack.c.bf16 %v99_v18, %v98_v17 }
  0xd5   :  { %275 = vmatmul.mubr.msk.bf16.vlgmr.msra.gmra.mxu1 %vm140_vm2, %v100_v19 }
 0x195   :  { %v178_v21 = vpop.f32.mrf.mxu1 }
 0x196   :  { %v179_v22 = vadd.f32 %v242_v20, %v178_v21 }
 0x197   :  { %v276_v23 = vpop.f32.mrf.mxu1 }
 0x198   :  { %v185_v24 = vadd.f32 %v179_v22, %v27_v3 }
 0x199   :  { %v181_v25 = vpop.f32.mrf.mxu1 }
 0x19a   :  { %v182_v26 = vadd.f32 %v242_v20, %v181_v25  ;;  %v187_v27 = vsel %vm53_vm1, %v185_v24, 0.0 }
 0x19b   :  { %188 = vadd.xlane.f32.xlu0 %v187_v27  ;;  %v277_v28 = vpop.f32.mrf.mxu1 }
 0x19c   :  { %v186_v29 = vadd.f32 %v182_v26, %v28_v4 }
 0x19e   :  { %v190_v30 = vsel %vm53_vm1, %v186_v29, 0.0 }
 0x19f   :  { %191 = vadd.xlane.f32.xlu0 %v190_v30 }
 0x224   :  { %v189_v31 = vpop.xlane.xlu0 %188 }
 0x225   :  { %v194_v32 = vmul.f32 0.03125, %v189_v31 }
 0x227   :  { %v196_v33 = vsub.f32 %v185_v24, %v194_v32 }
 0x228   :  { %v192_v34 = vpop.xlane.xlu0 %191 }
 0x229   :  { %v195_v35 = vmul.f32 0.03125, %v192_v34  ;;  %v198_v36 = vmul.f32 %v196_v33, %v196_v33 }
 0x22b   :  { %v197_v37 = vsub.f32 %v186_v29, %v195_v35  ;;  %v200_v38 = vsel %vm53_vm1, %v198_v36, 0.0 }
 0x22c   :  { %201 = vadd.xlane.f32.xlu1 %v200_v38 }
 0x22d   :  { %v199_v39 = vmul.f32 %v197_v37, %v197_v37 }
 0x22f   :  { %v203_v40 = vsel %vm53_vm1, %v199_v39, 0.0 }
 0x230   :  { %204 = vadd.xlane.f32.xlu1 %v203_v40 }
 0x2b5   :  { %v202_v41 = vpop.xlane.xlu1 %201 }
 0x2b6   :  { %v206_v42 = vmul.f32 0.03125, %v202_v41 }
 0x2b8   :  { %v208_v43 = vadd.f32 1e-05, %v206_v42 }
 0x2b9   :  { %v205_v44 = vpop.xlane.xlu1 %204 }
 0x2ba   :  { %286 = vrsqrt.f32 %v208_v43  ;;  %v207_v45 = vmul.f32 0.03125, %v205_v44 }
 0x2bc   :  { %v209_v46 = vadd.f32 1e-05, %v207_v45 }
 0x2be   :  { %288 = vrsqrt.f32 %v209_v46 }
 0x2c7   :  { %v287_v47 = vpop.eup %286 }
 0x2c8   :  { %v212_v49 = vmul.f32 %v287_v47, %v196_v33 }
 0x2ca   :  { %v221_v51 = vmul.f32 %v248_v48, %v212_v49 }
 0x2cb   :  { %v289_v52 = vpop.eup %288 }
 0x2cc   :  { %v230_v53 = vadd.f32 %v249_v50, %v221_v51  ;;  %v213_v54 = vmul.f32 %v289_v52, %v197_v37 }
 0x2ce   :  { %232 = vst.msk [vmem:[%s388_s7] sm:$0xff] %vm53_vm1, %v230_v53  ;;  %v222_v55 = vmul.f32 %v248_v48, %v213_v54 }
 0x2d0   :  { %v231_v56 = vadd.f32 %v249_v50, %v222_v55 }
 0x2d2   :  { %233 = vst.msk [vmem:[%s388_s7 + $0x8] sm:$0xff] %vm53_vm1, %v231_v56 }

// kernel: _lambda_.11
= control target key start
LH: loop header
LB: loop body
LE: loop exit
PB: predicated region body
PF: predicated region fallthrough
CT: control target
= control target key end

     0   :  { %s1387_s13 = smov 0   ;;  %s1530_s0 = inlined_call_operand.vmem [shape: f32[2,8,32], index: 0, kind: input, shape index: {}]   ;;  %s1531_s1 = inlined_call_operand.vmem [shape: f32[2,1,8], index: 1, kind: input, shape index: {}]   ;;  %s1532_s2 = inlined_call_operand.vmem [shape: bf16[32,32], index: 2, kind: input, shape index: {}]   ;;  %s1533_s3 = inlined_call_operand.vmem [shape: f32[1,32], index: 3, kind: input, shape index: {}]   ;;  %s1534_s4 = inlined_call_operand.vmem [shape: bf16[32,64], index: 4, kind: input, shape index: {}]   ;;  %s1535_s5 = inlined_call_operand.vmem [shape: f32[1,64], index: 5, kind: input, shape index: {}]   ;;  %s1536_s6 = inlined_call_operand.vmem [shape: bf16[32,32], index: 6, kind: input, shape index: {}]   ;;  %s1537_s7 = inlined_call_operand.vmem [shape: f32[1,32], index: 7, kind: input, shape index: {}]   ;;  %s1538_s8 = inlined_call_operand.vmem [shape: f32[1,32], index: 8, kind: input, shape index: {}]   ;;  %s1539_s9 = inlined_call_operand.vmem [shape: f32[1,32], index: 9, kind: input, shape index: {}]   ;;  %s1540_s10 = inlined_call_operand.vmem [shape: f32[2,8,32], index: 10, kind: output, shape index: {}]  }
   0x1 LB: > { %s1139_s14 = sadd.s32 4294967295, %s1318_s13   ;;  %p1143_p0 = scmp.ge.s32.totalorder %s1318_s13, 1  ;;  %s1318_s13 = sphi %s1387_s13, %s20_s13  }
   0x2   : > { %p319_p1 = scmp.lt.s32.totalorder %s1318_s13, 3 }
   0x4   : > { %p320_p2 = pnand %p1143_p0, %p319_p1 }
   0x5   : > { %p358_p3 = scmp.lt.s32.totalorder (!%p320_p2), %s1139_s14, 1  ;;  %s1322_s11 = smov (!%p320_p2), 112  }
   0x6   : > { %323 = sbr.rel (%p320_p2) target bundleno = 1690 (0x69a), region = 60  ;;  %s1323_s12 = smov (!%p320_p2), 120  }
   0x7   : > { %s1324_s15 = smov (!%p320_p2), 104   ;;  %s1325_s19 = smov (!%p320_p2), 96  }
   0x8   : > { %s1326_s20 = smov (!%p320_p2), 80   ;;  %s1327_s21 = smov (!%p320_p2), 72  }
   0x9   : > { %s1328_s22 = smov (!%p320_p2), 88   ;;  %s1330_s29 = smov (!%p320_p2), 16  }
   0xa   : > { %s1331_s30 = smov (!%p320_p2), 24  }
   0xb   : > { %v1288_v0 = vld [vmem:[%s1534_s4 + $0x8] sm:$0xff]   ;;  %v1320_v1 = vmov 0.0   ;;  %v1290_v3 = vld [vmem:[%s1534_s4] sm:$0xff]   ;;  %vm1321_vm0 = vmmov 0   ;;  %s1542_s14 = smov (!%p358_p3, %s1139_s14), 1  ;;  %vm395_vm1 = vcmask 261120   ;;  %v556_v31 = vlaneseq }
   0xc   : > { %1204 = vmatprep.subr.bf16.mxu1 %v1320_v1  ;;  %1196 = vmatprep.subr.bf16.mxu0 %v1320_v1  ;;  %v1289_v2 = vld [vmem:[%s1532_s2 + $0x8] sm:$0xff]   ;;  %v1291_v4 = vld [vmem:[%s1532_s2] sm:$0xff]   ;;  %s1144_s23 = sshll.u32 %s1542_s14, 3  ;;  %vm507_vm2 = vcmask 64512   ;;  %s364_s18 = scalar_lea.vmem %s1531_s1, %s1542_s14  ;;  %vm580_vm3 = vcmask 1043456   ;;  %vm974_vm4 = vcmask 130048  }
   0xd   : > { %1205 = vmatpush3.bf16.msra.mxu1 %v1288_v0  ;;  %1208 = vmatprep.mubr.msk.bf16.mxu1 %vm1321_vm0, %v1320_v1  ;;  %s361_s26 = scalar_lea.vmem %s1530_s0, %s1144_s23  ;;  %v1150_v7 = vld [vmem:[%s1535_s5] ss:$0 sm:$0xff]  ;;  %v557_v34 = vshrl.u32 %v556_v31, 7  ;;  %vm976_vm5 = vcmask 195584  }
   0xe   : > { %1197 = vmatpush3.bf16.msra.mxu0 %v1289_v2  ;;  %1206 = vmatprep.subr.bf16.mxu1 %v1320_v1  ;;  %v1424_v5 = vld [vmem:[%s361_s26] sm:$0xff]  ;;  %s1329_s26 = smov 8  }
   0xf   : > { %1198 = vmatprep.subr.bf16.mxu0 %v1320_v1  ;;  %1200 = vmatprep.mubr.msk.bf16.mxu0 %vm1321_vm0, %v1320_v1  ;;  %v371_v6 = vpack.c.bf16 %v1424_v5, %v1424_v5  ;;  %v1146_v8 = vld [vmem:[%s1533_s3] ss:$0 sm:$0xff]  ;;  %v558_v36 = vsub.s32 0, %v557_v34 }
  0x10   : > { %v504_v32 = vld [vmem:[%s364_s18] sm:$0x1] }
  0x11   : > { %1207 = vmatpush3.bf16.msra.mxu1 %v1290_v3  ;;  %v1154_v33 = vadd.f32 -1.0, %v504_v32 }
  0x12   : > { %1199 = vmatpush3.bf16.msra.mxu0 %v1291_v4  ;;  %1218 = vmatprep.subr.bf16.mxu1 %v1320_v1 }
  0x13   : > { %1212 = vmatprep.subr.bf16.mxu0 %v1320_v1  ;;  %v506_v35 = vmul.f32 1e+09, %v1154_v33 }
  0x14   : > { %1209 = vmatmul.mubr.msk.bf16.vlgmr.msra.gmra.mxu1 %vm395_vm1, %v371_v6 }
  0x15   : > { %1201 = vmatmul.mubr.msk.bf16.vlgmr.msra.gmra.mxu0 %vm395_vm1, %v371_v6  ;;  %1220 = vmatprep.mubr.msk.bf16.mxu1 %vm1321_vm0, %v1320_v1  ;;  %v559_v37 = vrot.slane %v506_v35, %v558_v36 }
  0x16   : > { %1214 = vmatprep.mubr.msk.bf16.mxu0 %vm1321_vm0, %v1320_v1 }
  0xd4   : > { %v496_v9 = vpop.f32.mrf.mxu1 }
  0xd5   : > { %v433_v10 = vpop.f32.mrf.mxu0  ;;  %v497_v11 = vadd.f32 %v1150_v7, %v496_v9 }
  0xd6   : > { %v434_v12 = vadd.f32 %v1146_v8, %v433_v10  ;;  %v1210_v13 = vpop.f32.mrf.mxu1 }
  0xd7   : > { %v1202_v14 = vpop.f32.mrf.mxu0  ;;  %v1441_v15 = vpack.c.bf16 %v497_v11, %v497_v11 }
  0xd8   : > { %v499_v16 = vpop.f32.mrf.mxu1  ;;  %v502_v18 = vpack.c.bf16 %v434_v12, %v434_v12 }
  0xd9   : > { %v436_v17 = vpop.f32.mrf.mxu0  ;;  %739 = vrot.lane.b32.xlu1 %v1441_v15, %s1322_s11  ;;  %627 = vrot.lane.b32.xlu0 %v1441_v15, %s1323_s12  ;;  %v512_v19 = vsel %vm507_vm2, %v1441_v15, 0 }
  0xda   : > { %v1211_v20 = vpop.f32.mrf.mxu1  ;;  %1213 = vmatpush3.bf16.xpose.msra.mxu0 %v512_v19 }
  0xdb   : > { %v1203_v21 = vpop.f32.mrf.mxu0  ;;  %1224 = vmatprep.subr.bf16.mxu0 %v1320_v1 }
  0xdd   : > { %737 = vrot.lane.b32.xlu1 %v502_v18, %s1322_s11  ;;  %625 = vrot.lane.b32.xlu0 %v502_v18, %s1323_s12 }
  0xe1   : > { %849 = vrot.lane.b32.xlu1 %v502_v18, %s1324_s15  ;;  %851 = vrot.lane.b32.xlu0 %v1441_v15, %s1324_s15 }
  0xe2   : > { %1215 = vmatmul.mubr.msk.bf16.vlgmr.msra.gmra.mxu0 %vm507_vm2, %v502_v18 }
  0xe3   : > { %1226 = vmatprep.mubr.msk.bf16.mxu0 %vm1321_vm0, %v1320_v1 }
 0x14b   : > { %v628_v22 = vpop.permute.xlu0 %627  ;;  %v740_v24 = vpop.permute.xlu1 %739 }
 0x14c   : > { %v633_v23 = vsel %vm507_vm2, %v628_v22, 0  ;;  %v745_v26 = vsel %vm507_vm2, %v740_v24, 0 }
 0x14d   : > { %1225 = vmatpush3.bf16.xpose.msra.mxu0 %v633_v23 }
 0x14e   : > { %1236 = vmatprep.subr.bf16.mxu0 %v1320_v1 }
 0x14f   : > { %v626_v25 = vpop.permute.xlu0 %625  ;;  %v738_v28 = vpop.permute.xlu1 %737 }
 0x153   : > { %v852_v27 = vpop.permute.xlu0 %851  ;;  %v850_v30 = vpop.permute.xlu1 %849 }
 0x154   : > { %1227 = vmatmul.mubr.msk.bf16.vlgmr.msra.gmra.mxu0 %vm507_vm2, %v626_v25  ;;  %v857_v29 = vsel %vm507_vm2, %v852_v27, 0 }
 0x155   : > { %1237 = vmatpush3.bf16.xpose.msra.mxu0 %v745_v26  ;;  %1238 = vmatprep.mubr.msk.bf16.mxu0 %vm1321_vm0, %v1320_v1 }
 0x156   : > { %1248 = vmatprep.subr.bf16.mxu0 %v1320_v1 }
 0x15c   : > { %1239 = vmatmul.mubr.msk.bf16.vlgmr.msra.gmra.mxu0 %vm507_vm2, %v738_v28 }
 0x15d   : > { %1249 = vmatpush3.bf16.xpose.msra.mxu0 %v857_v29  ;;  %1250 = vmatprep.mubr.msk.bf16.mxu0 %vm1321_vm0, %v1320_v1 }
 0x15e   : > { %1260 = vmatprep.subr.bf16.mxu0 %v1320_v1 }
 0x164   : > { %1251 = vmatmul.mubr.msk.bf16.vlgmr.msra.gmra.mxu0 %vm507_vm2, %v850_v30 }
 0x165   : > { %1264 = vmatprep.mubr.msk.bf16.mxu0 %vm1321_vm0, %v1320_v1 }
 0x1a2   : > { %v548_v38 = vpop.f32.mrf.mxu0 }
 0x1a3   : > { %v554_v39 = vmul.f32 0.35355338, %v548_v38 }
 0x1a4   : > { %v1216_v40 = vpop.f32.mrf.mxu0 }
 0x1a5   : > { %v561_v41 = vadd.f32 %v559_v37, %v554_v39 }
 0x1a6   : > { %v551_v42 = vpop.f32.mrf.mxu0 }
 0x1a7   : > { %v562_v43 = vsel %vm507_vm2, %v561_v41, -inf }
 0x1a8   : > { %563 = vmax.xlane.f32.xlu0 %v562_v43  ;;  %v1217_v44 = vpop.f32.mrf.mxu0 }
 0x214   : > { %v669_v45 = vpop.f32.mrf.mxu0 }
 0x215   : > { %v675_v46 = vmul.f32 0.35355338, %v669_v45 }
 0x216   : > { %v1228_v47 = vpop.f32.mrf.mxu0 }
 0x217   : > { %v676_v48 = vadd.f32 %v675_v46, %v559_v37 }
 0x218   : > { %v672_v49 = vpop.f32.mrf.mxu0 }
 0x219   : > { %v677_v50 = vsel %vm507_vm2, %v676_v48, -inf }
 0x21a   : > { %678 = vmax.xlane.f32.xlu1 %v677_v50  ;;  %v1229_v51 = vpop.f32.mrf.mxu0 }
 0x21c   : > { %v781_v52 = vpop.f32.mrf.mxu0 }
 0x21d   : > { %v787_v53 = vmul.f32 0.35355338, %v781_v52  ;;  %v1292_v52 = vld [vmem:[%s1536_s6 + $0x8] sm:$0xff]  }
 0x21e   : > { %v1240_v54 = vpop.f32.mrf.mxu0  ;;  %1261 = vmatpush3.bf16.msra.mxu0 %v1292_v52 }
 0x21f   : > { %v788_v55 = vadd.f32 %v787_v53, %v559_v37  ;;  %1262 = vmatprep.subr.bf16.mxu0 %v1320_v1 }
 0x220   : > { %v784_v56 = vpop.f32.mrf.mxu0 }
 0x221   : > { %v789_v57 = vsel %vm507_vm2, %v788_v55, -inf }
 0x222   : > { %790 = vmax.xlane.f32.xlu0 %v789_v57  ;;  %v1241_v58 = vpop.f32.mrf.mxu0 }
 0x224   : > { %v893_v59 = vpop.f32.mrf.mxu0 }
 0x225   : > { %v899_v60 = vmul.f32 0.35355338, %v893_v59 }
 0x226   : > { %v1252_v61 = vpop.f32.mrf.mxu0 }
 0x227   : > { %v900_v62 = vadd.f32 %v899_v60, %v559_v37 }
 0x228   : > { %v896_v63 = vpop.f32.mrf.mxu0 }
 0x229   : > { %v901_v0 = vsel %vm507_vm2, %v900_v62, -inf }
 0x22a   : > { %902 = vmax.xlane.f32.xlu0 %v901_v0  ;;  %v1253_v2 = vpop.f32.mrf.mxu0 }
 0x231   : > { %v564_v3 = vpop.xlane.xlu0 %563 }
 0x232   : > { %v565_v4 = vsub.f32 %v561_v41, %v564_v3 }
 0x234   : > { %v566_v6 = vmul.f32 1.442695, %v565_v4 }
 0x236   : > { %1294 = vpow2.f32 %v566_v6 }
 0x243   : > { %v1295_v7 = vpop.eup %1294 }
 0x244   : > { %v568_v8 = vsel %vm507_vm2, %v1295_v7, 0.0 }
 0x245   : > { %569 = vadd.xlane.f32.xlu1 %v568_v8 }
 0x256   : > { %575 = vrot.lane.b32.xlu1 %v1441_v15, %s1325_s19 }
 0x2a3   : > { %v679_v9 = vpop.xlane.xlu1 %678 }
 0x2a4   : > { %v680_v10 = vsub.f32 %v676_v48, %v679_v9 }
 0x2a6   : > { %v681_v11 = vmul.f32 1.442695, %v680_v10  ;;  %v1163_v10 = vld [vmem:[%s1537_s7] ss:$0 sm:$0xff] }
 0x2a8   : > { %1296 = vpow2.f32 %v681_v11 }
 0x2ab   : > { %v791_v12 = vpop.xlane.xlu0 %790 }
 0x2ac   : > { %v792_v13 = vsub.f32 %v788_v55, %v791_v12  ;;  %v1293_v55 = vld [vmem:[%s1536_s6] sm:$0xff]  }
 0x2ad   : > { %1263 = vmatpush3.bf16.msra.mxu0 %v1293_v55 }
 0x2ae   : > { %v793_v14 = vmul.f32 1.442695, %v792_v13 }
 0x2b0   : > { %1298 = vpow2.f32 %v793_v14 }
 0x2b3   : > { %v903_v16 = vpop.xlane.xlu0 %902 }
 0x2b4   : > { %v904_v17 = vsub.f32 %v900_v62, %v903_v16 }
 0x2b5   : > { %v1297_v18 = vpop.eup %1296 }
 0x2b6   : > { %v905_v19 = vmul.f32 1.442695, %v904_v17  ;;  %v683_v20 = vsel %vm507_vm2, %v1297_v18, 0.0 }
 0x2b7   : > { %684 = vadd.xlane.f32.xlu0 %v683_v20 }
 0x2b8   : > { %1300 = vpow2.f32 %v905_v19 }
 0x2bd   : > { %v1299_v21 = vpop.eup %1298 }
 0x2be   : > { %v795_v22 = vsel %vm507_vm2, %v1299_v21, 0.0 }
 0x2bf   : > { %796 = vadd.xlane.f32.xlu1 %v795_v22 }
 0x2c5   : > { %v1301_v23 = vpop.eup %1300 }
 0x2c6   : > { %v907_v24 = vsel %vm507_vm2, %v1301_v23, 0.0 }
 0x2c7   : > { %908 = vadd.xlane.f32.xlu0 %v907_v24 }
 0x2ce   : > { %v570_v25 = vpop.xlane.xlu1 %569 }
 0x2cf   : > { %1302 = vrcp.f32 %v570_v25 }
 0x2d0   : > { %801 = vrot.lane.b32.xlu1 %v1441_v15, %s1326_s20 }
 0x2d2   : > { %v576_v26 = vpop.permute.xlu1 %575 }
 0x2d3   : > { %v582_v27 = vsel %vm580_vm3, %v576_v26, 0 }
 0x2d4   : > { %1219 = vmatpush3.bf16.msra.mxu1 %v582_v27  ;;  %913 = vrot.lane.b32.xlu1 %v1441_v15, %s1327_s21  ;;  %s368_s21 = scalar_lea.vmem %s1540_s10, %s1144_s23 }
 0x2d5   : > { %1230 = vmatprep.subr.bf16.mxu1 %v1320_v1 }
 0x2dc   : > { %v1303_v28 = vpop.eup %1302 }
 0x2dd   : > { %689 = vrot.lane.b32.xlu0 %v1441_v15, %s1328_s22  ;;  %v572_v29 = vmul.f32 %v1303_v28, %v1295_v7 }
 0x2df   : > { %v573_v30 = vpack.c.bf16 %v572_v29, %v572_v29  ;;  %v1168_v29 = vld [vmem:[%s1539_s9] ss:$0 sm:$0xff] }
 0x2e1   : > { %1221 = vmatmul.mubr.msk.bf16.vlgmr.msra.gmra.mxu1 %vm507_vm2, %v573_v30 }
 0x2e2   : > { %1232 = vmatprep.mubr.msk.bf16.mxu1 %vm1321_vm0, %v1320_v1 }
 0x340   : > { %v685_v31 = vpop.xlane.xlu0 %684 }
 0x341   : > { %1304 = vrcp.f32 %v685_v31 }
 0x348   : > { %v797_v32 = vpop.xlane.xlu1 %796 }
 0x349   : > { %1306 = vrcp.f32 %v797_v32 }
 0x34c   : > { %v802_v38 = vpop.permute.xlu1 %801 }
 0x34d   : > { %v807_v40 = vsel %vm580_vm3, %v802_v38, 0 }
 0x34e   : > { %v1305_v33 = vpop.eup %1304 }
 0x34f   : > { %v687_v35 = vmul.f32 %v1305_v33, %v1297_v18 }
 0x350   : > { %v909_v34 = vpop.xlane.xlu0 %908  ;;  %v914_v42 = vpop.permute.xlu1 %913 }
 0x351   : > { %1308 = vrcp.f32 %v909_v34  ;;  %v688_v15 = vpack.c.bf16 %v687_v35, %v687_v35  ;;  %v919_v45 = vsel %vm580_vm3, %v914_v42, 0 }
 0x354   : > { %v690_v36 = vpop.permute.xlu0 %689 }
 0x355   : > { %v695_v37 = vsel %vm580_vm3, %v690_v36, 0 }
 0x356   : > { %1231 = vmatpush3.bf16.msra.mxu1 %v695_v37  ;;  %v1307_v39 = vpop.eup %1306 }
 0x357   : > { %1242 = vmatprep.subr.bf16.mxu1 %v1320_v1  ;;  %v799_v41 = vmul.f32 %v1307_v39, %v1299_v21 }
 0x359   : > { %1233 = vmatmul.mubr.msk.bf16.vlgmr.msra.gmra.mxu1 %vm507_vm2, %v688_v15  ;;  %v800_v43 = vpack.c.bf16 %v799_v41, %v799_v41 }
 0x35a   : > { %1243 = vmatpush3.bf16.msra.mxu1 %v807_v40  ;;  %1244 = vmatprep.mubr.msk.bf16.mxu1 %vm1321_vm0, %v1320_v1 }
 0x35b   : > { %1254 = vmatprep.subr.bf16.mxu1 %v1320_v1 }
 0x35e   : > { %v1309_v44 = vpop.eup %1308 }
 0x35f   : > { %v911_v46 = vmul.f32 %v1309_v44, %v1301_v23 }
 0x361   : > { %1245 = vmatmul.mubr.msk.bf16.vlgmr.msra.gmra.mxu1 %vm507_vm2, %v800_v43  ;;  %v912_v47 = vpack.c.bf16 %v911_v46, %v911_v46 }
 0x362   : > { %1255 = vmatpush3.bf16.msra.mxu1 %v919_v45  ;;  %1256 = vmatprep.mubr.msk.bf16.mxu1 %vm1321_vm0, %v1320_v1 }
 0x369   : > { %1257 = vmatmul.mubr.msk.bf16.vlgmr.msra.gmra.mxu1 %vm507_vm2, %v912_v47 }
 0x3a1   : > { %v618_v48 = vpop.f32.mrf.mxu1 }
 0x3a3   : > { %v1222_v49 = vpop.f32.mrf.mxu1 }
 0x3a5   : > { %v621_v50 = vpop.f32.mrf.mxu1 }
 0x3a7   : > { %v1223_v51 = vpop.f32.mrf.mxu1 }
 0x419   : > { %v731_v53 = vpop.f32.mrf.mxu1 }
 0x41a   : > { %962 = vrot.lane.b32.xlu0 %v731_v53, %s1329_s26 }
 0x41b   : > { %v1234_v54 = vpop.f32.mrf.mxu1 }
 0x41d   : > { %v734_v56 = vpop.f32.mrf.mxu1 }
 0x41f   : > { %v1235_v57 = vpop.f32.mrf.mxu1 }
 0x421   : > { %v843_v58 = vpop.f32.mrf.mxu1 }
 0x422   : > { %966 = vrot.lane.b32.xlu1 %v843_v58, %s1330_s29 }
 0x423   : > { %v1246_v59 = vpop.f32.mrf.mxu1 }
 0x425   : > { %v846_v60 = vpop.f32.mrf.mxu1 }
 0x427   : > { %v1247_v61 = vpop.f32.mrf.mxu1 }
 0x429   : > { %v955_v62 = vpop.f32.mrf.mxu1 }
 0x42a   : > { %970 = vrot.lane.b32.xlu0 %v955_v62, %s1331_s30 }
 0x42b   : > { %v1258_v1 = vpop.f32.mrf.mxu1 }
 0x42d   : > { %v958_v63 = vpop.f32.mrf.mxu1 }
 0x42f   : > { %v1259_v0 = vpop.f32.mrf.mxu1 }
 0x48c   : > { %v963_v2 = vpop.permute.xlu0 %962 }
 0x48d   : > { %v973_v4 = vsel %vm507_vm2, %v618_v48, %v963_v2 }
 0x494   : > { %v967_v3 = vpop.permute.xlu1 %966 }
 0x495   : > { %v975_v6 = vsel %vm974_vm4, %v973_v4, %v967_v3 }
 0x49c   : > { %v971_v7 = vpop.permute.xlu0 %970 }
 0x49d   : > { %v977_v8 = vsel %vm976_vm5, %v975_v6, %v971_v7 }
 0x49e   : > { %v978_v9 = vpack.c.bf16 %v977_v8, %v977_v8 }
 0x4a0   : > { %1265 = vmatmul.mubr.msk.bf16.vlgmr.msra.gmra.mxu0 %vm395_vm1, %v978_v9 }
 0x560   : > { %v1039_v11 = vpop.f32.mrf.mxu0 }
 0x561   : > { %v1040_v12 = vadd.f32 %v1163_v10, %v1039_v11 }
 0x562   : > { %v1266_v13 = vpop.f32.mrf.mxu0 }
 0x563   : > { %v1045_v14 = vadd.f32 %v1040_v12, %v1424_v5  ;;  %v1167_v5 = vld [vmem:[%s1538_s8] ss:$0 sm:$0xff] }
 0x564   : > { %v1042_v16 = vpop.f32.mrf.mxu0 }
 0x565   : > { %v1046_v17 = vsel %vm395_vm1, %v1045_v14, 0.0 }
 0x566   : > { %1047 = vadd.xlane.f32.xlu1 %v1046_v17  ;;  %v1267_v18 = vpop.f32.mrf.mxu0 }
 0x5ef   : > { %v1048_v19 = vpop.xlane.xlu1 %1047 }
 0x5f0   : > { %v1050_v20 = vmul.f32 0.03125, %v1048_v19 }
 0x5f2   : > { %v1051_v21 = vsub.f32 %v1045_v14, %v1050_v20 }
 0x5f4   : > { %v1052_v22 = vmul.f32 %v1051_v21, %v1051_v21 }
 0x5f6   : > { %v1053_v23 = vsel %vm395_vm1, %v1052_v22, 0.0 }
 0x5f7   : > { %1054 = vadd.xlane.f32.xlu0 %v1053_v23 }
 0x680   : > { %v1055_v24 = vpop.xlane.xlu0 %1054 }
 0x681   : > { %v1056_v25 = vmul.f32 0.03125, %v1055_v24 }
 0x683   : > { %v1057_v26 = vadd.f32 1e-05, %v1056_v25 }
 0x685   : > { %1310 = vrsqrt.f32 %v1057_v26 }
 0x692   : > { %v1311_v27 = vpop.eup %1310 }
 0x693   : > { %v1059_v28 = vmul.f32 %v1311_v27, %v1051_v21 }
 0x695   : > { %v1067_v30 = vmul.f32 %v1167_v5, %v1059_v28 }
 0x697   : > { %v1075_v31 = vadd.f32 %v1168_v29, %v1067_v30 }
 0x699   : > { %1076 = vst.msk [vmem:[%s368_s21] sm:$0xff] %vm395_vm1, %v1075_v31 }
 0x69a PF: > { %s20_s13 = sadd.s32 1, %s1318_s13  }
 0x69b   : > { %p17_p4 = scmp.ge.s32.totalorder %s20_s13, 4  }
 0x69d   :  { %19 = sbr.rel (!%p17_p4) target bundleno = 1 (0x1), region = 93 }

// kernel: _lambda_.15
= control target key start
LH: loop header
LB: loop body
LE: loop exit
PB: predicated region body
PF: predicated region fallthrough
CT: control target
= control target key end

     0   :  { %s1397_s13 = smov 0   ;;  %s1541_s0 = inlined_call_operand.vmem [shape: f32[2,8,32], index: 0, kind: input, shape index: {}]   ;;  %s1542_s1 = inlined_call_operand.vmem [shape: f32[2,1,8], index: 1, kind: input, shape index: {}]   ;;  %s1543_s2 = inlined_call_operand.vmem [shape: bf16[32,32], index: 2, kind: input, shape index: {}]   ;;  %s1544_s3 = inlined_call_operand.vmem [shape: f32[1,32], index: 3, kind: input, shape index: {}]   ;;  %s1545_s4 = inlined_call_operand.vmem [shape: bf16[32,64], index: 4, kind: input, shape index: {}]   ;;  %s1546_s5 = inlined_call_operand.vmem [shape: f32[1,64], index: 5, kind: input, shape index: {}]   ;;  %s1547_s6 = inlined_call_operand.vmem [shape: bf16[32,32], index: 6, kind: input, shape index: {}]   ;;  %s1548_s7 = inlined_call_operand.vmem [shape: f32[1,32], index: 7, kind: input, shape index: {}]   ;;  %s1549_s8 = inlined_call_operand.vmem [shape: f32[1,32], index: 8, kind: input, shape index: {}]   ;;  %s1550_s9 = inlined_call_operand.vmem [shape: f32[1,32], index: 9, kind: input, shape index: {}]   ;;  %s1551_s10 = inlined_call_operand.vmem [shape: f32[2,8,32], index: 10, kind: output, shape index: {}]  }
   0x1 LB: > { %s1148_s14 = sadd.s32 4294967295, %s1328_s13   ;;  %p1152_p0 = scmp.ge.s32.totalorder %s1328_s13, 1  ;;  %s1328_s13 = sphi %s1397_s13, %s20_s13  }
   0x2   : > { %p319_p1 = scmp.lt.s32.totalorder %s1328_s13, 3 }
   0x4   : > { %p320_p2 = pnand %p1152_p0, %p319_p1 }
   0x5   : > { %p358_p3 = scmp.lt.s32.totalorder (!%p320_p2), %s1148_s14, 1  ;;  %s1332_s11 = smov (!%p320_p2), 112  }
   0x6   : > { %323 = sbr.rel (%p320_p2) target bundleno = 1690 (0x69a), region = 60  ;;  %s1333_s12 = smov (!%p320_p2), 120  }
   0x7   : > { %s1334_s15 = smov (!%p320_p2), 104   ;;  %s1335_s19 = smov (!%p320_p2), 96  }
   0x8   : > { %s1336_s20 = smov (!%p320_p2), 80   ;;  %s1337_s21 = smov (!%p320_p2), 72  }
   0x9   : > { %s1338_s22 = smov (!%p320_p2), 88   ;;  %s1340_s29 = smov (!%p320_p2), 16  }
   0xa   : > { %s1341_s30 = smov (!%p320_p2), 24  }
   0xb   : > { %v1298_v0 = vld [vmem:[%s1545_s4 + $0x8] sm:$0xff]   ;;  %v1330_v1 = vmov 0.0   ;;  %v1300_v3 = vld [vmem:[%s1545_s4] sm:$0xff]   ;;  %vm1331_vm0 = vmmov 0   ;;  %s1553_s14 = smov (!%p358_p3, %s1148_s14), 1  ;;  %vm395_vm1 = vcmask 261120   ;;  %v507_v31 = vlaneseq }
   0xc   : > { %1214 = vmatprep.subr.bf16.mxu1 %v1330_v1  ;;  %1206 = vmatprep.subr.bf16.mxu0 %v1330_v1  ;;  %v1299_v2 = vld [vmem:[%s1543_s2 + $0x8] sm:$0xff]   ;;  %v1301_v4 = vld [vmem:[%s1543_s2] sm:$0xff]   ;;  %s1153_s23 = sshll.u32 %s1553_s14, 3  ;;  %vm522_vm2 = vcmask 64512   ;;  %s364_s18 = scalar_lea.vmem %s1542_s1, %s1553_s14  ;;  %vm589_vm4 = vcmask 1043456   ;;  %vm983_vm5 = vcmask 130048  }
   0xd   : > { %1215 = vmatpush3.bf16.msra.mxu1 %v1298_v0  ;;  %1218 = vmatprep.mubr.msk.bf16.mxu1 %vm1331_vm0, %v1330_v1  ;;  %s361_s26 = scalar_lea.vmem %s1541_s0, %s1153_s23  ;;  %v1159_v7 = vld [vmem:[%s1546_s5] ss:$0 sm:$0xff]  ;;  %v508_v33 = vshrl.u32 %v507_v31, 7  ;;  %v510_v34 = vand.u32 127, %v507_v31  ;;  %vm985_vm6 = vcmask 195584  }
   0xe   : > { %1207 = vmatpush3.bf16.msra.mxu0 %v1299_v2  ;;  %1216 = vmatprep.subr.bf16.mxu1 %v1330_v1  ;;  %v1434_v5 = vld [vmem:[%s361_s26] sm:$0xff]  ;;  %s1339_s26 = smov 8  }
   0xf   : > { %1208 = vmatprep.subr.bf16.mxu0 %v1330_v1  ;;  %1210 = vmatprep.mubr.msk.bf16.mxu0 %vm1331_vm0, %v1330_v1  ;;  %v371_v6 = vpack.c.bf16 %v1434_v5, %v1434_v5  ;;  %v1155_v8 = vld [vmem:[%s1544_s3] ss:$0 sm:$0xff]  ;;  %vm511_vm3 = vcmp.gt.s32.totalorder %v510_v34, %v508_v33  ;;  %v518_v37 = vsub.s32 0, %v508_v33 }
  0x10   : > { %v504_v32 = vld [vmem:[%s364_s18] sm:$0x1]  ;;  %v1164_v38 = vsel %vm511_vm3, 1.0, %v1330_v1 }
  0x11   : > { %1217 = vmatpush3.bf16.msra.mxu1 %v1300_v3  ;;  %v1163_v35 = vadd.f32 -1.0, %v504_v32  ;;  %v514_v39 = vmul.f32 -1e+09, %v1164_v38 }
  0x12   : > { %1209 = vmatpush3.bf16.msra.mxu0 %v1301_v4  ;;  %1228 = vmatprep.subr.bf16.mxu1 %v1330_v1 }
  0x13   : > { %1222 = vmatprep.subr.bf16.mxu0 %v1330_v1  ;;  %v506_v36 = vmul.f32 1e+09, %v1163_v35 }
  0x14   : > { %1219 = vmatmul.mubr.msk.bf16.vlgmr.msra.gmra.mxu1 %vm395_vm1, %v371_v6 }
  0x15   : > { %1211 = vmatmul.mubr.msk.bf16.vlgmr.msra.gmra.mxu0 %vm395_vm1, %v371_v6  ;;  %1230 = vmatprep.mubr.msk.bf16.mxu1 %vm1331_vm0, %v1330_v1  ;;  %v519_v40 = vrot.slane %v506_v36, %v518_v37 }
  0x16   : > { %1224 = vmatprep.mubr.msk.bf16.mxu0 %vm1331_vm0, %v1330_v1 }
  0x17   : > { %v521_v41 = vadd.f32 %v519_v40, %v514_v39 }
  0xd4   : > { %v496_v9 = vpop.f32.mrf.mxu1 }
  0xd5   : > { %v433_v10 = vpop.f32.mrf.mxu0  ;;  %v497_v11 = vadd.f32 %v1159_v7, %v496_v9 }
  0xd6   : > { %v434_v12 = vadd.f32 %v1155_v8, %v433_v10  ;;  %v1220_v13 = vpop.f32.mrf.mxu1 }
  0xd7   : > { %v1212_v14 = vpop.f32.mrf.mxu0  ;;  %v1451_v15 = vpack.c.bf16 %v497_v11, %v497_v11 }
  0xd8   : > { %v499_v16 = vpop.f32.mrf.mxu1  ;;  %v502_v18 = vpack.c.bf16 %v434_v12, %v434_v12 }
  0xd9   : > { %v436_v17 = vpop.f32.mrf.mxu0  ;;  %748 = vrot.lane.b32.xlu1 %v1451_v15, %s1332_s11  ;;  %636 = vrot.lane.b32.xlu0 %v1451_v15, %s1333_s12  ;;  %v527_v19 = vsel %vm522_vm2, %v1451_v15, 0 }
  0xda   : > { %v1221_v20 = vpop.f32.mrf.mxu1  ;;  %1223 = vmatpush3.bf16.xpose.msra.mxu0 %v527_v19 }
  0xdb   : > { %v1213_v21 = vpop.f32.mrf.mxu0  ;;  %1234 = vmatprep.subr.bf16.mxu0 %v1330_v1 }
  0xdd   : > { %746 = vrot.lane.b32.xlu1 %v502_v18, %s1332_s11  ;;  %634 = vrot.lane.b32.xlu0 %v502_v18, %s1333_s12 }
  0xe1   : > { %858 = vrot.lane.b32.xlu1 %v502_v18, %s1334_s15  ;;  %860 = vrot.lane.b32.xlu0 %v1451_v15, %s1334_s15 }
  0xe2   : > { %1225 = vmatmul.mubr.msk.bf16.vlgmr.msra.gmra.mxu0 %vm522_vm2, %v502_v18 }
  0xe3   : > { %1236 = vmatprep.mubr.msk.bf16.mxu0 %vm1331_vm0, %v1330_v1 }
 0x14b   : > { %v637_v22 = vpop.permute.xlu0 %636  ;;  %v749_v24 = vpop.permute.xlu1 %748 }
 0x14c   : > { %v642_v23 = vsel %vm522_vm2, %v637_v22, 0  ;;  %v754_v26 = vsel %vm522_vm2, %v749_v24, 0 }
 0x14d   : > { %1235 = vmatpush3.bf16.xpose.msra.mxu0 %v642_v23 }
 0x14e   : > { %1246 = vmatprep.subr.bf16.mxu0 %v1330_v1 }
 0x14f   : > { %v635_v25 = vpop.permute.xlu0 %634  ;;  %v747_v28 = vpop.permute.xlu1 %746 }
 0x153   : > { %v861_v27 = vpop.permute.xlu0 %860  ;;  %v859_v30 = vpop.permute.xlu1 %858 }
 0x154   : > { %1237 = vmatmul.mubr.msk.bf16.vlgmr.msra.gmra.mxu0 %vm522_vm2, %v635_v25  ;;  %v866_v29 = vsel %vm522_vm2, %v861_v27, 0 }
 0x155   : > { %1247 = vmatpush3.bf16.xpose.msra.mxu0 %v754_v26  ;;  %1248 = vmatprep.mubr.msk.bf16.mxu0 %vm1331_vm0, %v1330_v1 }
 0x156   : > { %1258 = vmatprep.subr.bf16.mxu0 %v1330_v1 }
 0x15c   : > { %1249 = vmatmul.mubr.msk.bf16.vlgmr.msra.gmra.mxu0 %vm522_vm2, %v747_v28 }
 0x15d   : > { %1259 = vmatpush3.bf16.xpose.msra.mxu0 %v866_v29  ;;  %1260 = vmatprep.mubr.msk.bf16.mxu0 %vm1331_vm0, %v1330_v1 }
 0x15e   : > { %1270 = vmatprep.subr.bf16.mxu0 %v1330_v1 }
 0x164   : > { %1261 = vmatmul.mubr.msk.bf16.vlgmr.msra.gmra.mxu0 %vm522_vm2, %v859_v30 }
 0x165   : > { %1274 = vmatprep.mubr.msk.bf16.mxu0 %vm1331_vm0, %v1330_v1 }
 0x1a2   : > { %v563_v42 = vpop.f32.mrf.mxu0 }
 0x1a3   : > { %v569_v43 = vmul.f32 0.35355338, %v563_v42 }
 0x1a4   : > { %v1226_v44 = vpop.f32.mrf.mxu0 }
 0x1a5   : > { %v570_v45 = vadd.f32 %v569_v43, %v521_v41 }
 0x1a6   : > { %v566_v46 = vpop.f32.mrf.mxu0 }
 0x1a7   : > { %v571_v47 = vsel %vm522_vm2, %v570_v45, -inf }
 0x1a8   : > { %572 = vmax.xlane.f32.xlu0 %v571_v47  ;;  %v1227_v48 = vpop.f32.mrf.mxu0 }
 0x214   : > { %v678_v49 = vpop.f32.mrf.mxu0 }
 0x215   : > { %v684_v50 = vmul.f32 0.35355338, %v678_v49 }
 0x216   : > { %v1238_v51 = vpop.f32.mrf.mxu0 }
 0x217   : > { %v685_v52 = vadd.f32 %v684_v50, %v521_v41 }
 0x218   : > { %v681_v53 = vpop.f32.mrf.mxu0 }
 0x219   : > { %v686_v54 = vsel %vm522_vm2, %v685_v52, -inf }
 0x21a   : > { %687 = vmax.xlane.f32.xlu1 %v686_v54  ;;  %v1239_v55 = vpop.f32.mrf.mxu0 }
 0x21c   : > { %v790_v56 = vpop.f32.mrf.mxu0 }
 0x21d   : > { %v796_v57 = vmul.f32 0.35355338, %v790_v56  ;;  %v1302_v56 = vld [vmem:[%s1547_s6 + $0x8] sm:$0xff]  }
 0x21e   : > { %v1250_v58 = vpop.f32.mrf.mxu0  ;;  %1271 = vmatpush3.bf16.msra.mxu0 %v1302_v56 }
 0x21f   : > { %v797_v59 = vadd.f32 %v796_v57, %v521_v41  ;;  %1272 = vmatprep.subr.bf16.mxu0 %v1330_v1 }
 0x220   : > { %v793_v60 = vpop.f32.mrf.mxu0 }
 0x221   : > { %v798_v61 = vsel %vm522_vm2, %v797_v59, -inf }
 0x222   : > { %799 = vmax.xlane.f32.xlu0 %v798_v61  ;;  %v1251_v62 = vpop.f32.mrf.mxu0 }
 0x224   : > { %v902_v63 = vpop.f32.mrf.mxu0 }
 0x225   : > { %v908_v0 = vmul.f32 0.35355338, %v902_v63 }
 0x226   : > { %v1262_v2 = vpop.f32.mrf.mxu0 }
 0x227   : > { %v909_v3 = vadd.f32 %v908_v0, %v521_v41 }
 0x228   : > { %v905_v4 = vpop.f32.mrf.mxu0 }
 0x229   : > { %v910_v6 = vsel %vm522_vm2, %v909_v3, -inf }
 0x22a   : > { %911 = vmax.xlane.f32.xlu0 %v910_v6  ;;  %v1263_v7 = vpop.f32.mrf.mxu0 }
 0x231   : > { %v573_v8 = vpop.xlane.xlu0 %572 }
 0x232   : > { %v574_v9 = vsub.f32 %v570_v45, %v573_v8 }
 0x234   : > { %v575_v10 = vmul.f32 1.442695, %v574_v9 }
 0x236   : > { %1304 = vpow2.f32 %v575_v10 }
 0x243   : > { %v1305_v11 = vpop.eup %1304 }
 0x244   : > { %v577_v12 = vsel %vm522_vm2, %v1305_v11, 0.0 }
 0x245   : > { %578 = vadd.xlane.f32.xlu1 %v577_v12 }
 0x256   : > { %584 = vrot.lane.b32.xlu1 %v1451_v15, %s1335_s19 }
 0x2a3   : > { %v688_v13 = vpop.xlane.xlu1 %687 }
 0x2a4   : > { %v689_v14 = vsub.f32 %v685_v52, %v688_v13 }
 0x2a6   : > { %v690_v16 = vmul.f32 1.442695, %v689_v14  ;;  %v1173_v14 = vld [vmem:[%s1548_s7] ss:$0 sm:$0xff] }
 0x2a8   : > { %1306 = vpow2.f32 %v690_v16 }
 0x2ab   : > { %v800_v17 = vpop.xlane.xlu0 %799 }
 0x2ac   : > { %v801_v18 = vsub.f32 %v797_v59, %v800_v17  ;;  %v1303_v59 = vld [vmem:[%s1547_s6] sm:$0xff]  }
 0x2ad   : > { %1273 = vmatpush3.bf16.msra.mxu0 %v1303_v59 }
 0x2ae   : > { %v802_v19 = vmul.f32 1.442695, %v801_v18 }
 0x2b0   : > { %1308 = vpow2.f32 %v802_v19 }
 0x2b3   : > { %v912_v20 = vpop.xlane.xlu0 %911 }
 0x2b4   : > { %v913_v21 = vsub.f32 %v909_v3, %v912_v20 }
 0x2b5   : > { %v1307_v22 = vpop.eup %1306 }
 0x2b6   : > { %v914_v23 = vmul.f32 1.442695, %v913_v21  ;;  %v692_v24 = vsel %vm522_vm2, %v1307_v22, 0.0 }
 0x2b7   : > { %693 = vadd.xlane.f32.xlu0 %v692_v24 }
 0x2b8   : > { %1310 = vpow2.f32 %v914_v23 }
 0x2bd   : > { %v1309_v25 = vpop.eup %1308 }
 0x2be   : > { %v804_v26 = vsel %vm522_vm2, %v1309_v25, 0.0 }
 0x2bf   : > { %805 = vadd.xlane.f32.xlu1 %v804_v26 }
 0x2c5   : > { %v1311_v27 = vpop.eup %1310 }
 0x2c6   : > { %v916_v28 = vsel %vm522_vm2, %v1311_v27, 0.0 }
 0x2c7   : > { %917 = vadd.xlane.f32.xlu0 %v916_v28 }
 0x2ce   : > { %v579_v29 = vpop.xlane.xlu1 %578 }
 0x2cf   : > { %1312 = vrcp.f32 %v579_v29 }
 0x2d0   : > { %810 = vrot.lane.b32.xlu1 %v1451_v15, %s1336_s20 }
 0x2d2   : > { %v585_v30 = vpop.permute.xlu1 %584 }
 0x2d3   : > { %v591_v31 = vsel %vm589_vm4, %v585_v30, 0 }
 0x2d4   : > { %1229 = vmatpush3.bf16.msra.mxu1 %v591_v31  ;;  %922 = vrot.lane.b32.xlu1 %v1451_v15, %s1337_s21  ;;  %s368_s21 = scalar_lea.vmem %s1551_s10, %s1153_s23 }
 0x2d5   : > { %1240 = vmatprep.subr.bf16.mxu1 %v1330_v1 }
 0x2dc   : > { %v1313_v32 = vpop.eup %1312 }
 0x2dd   : > { %698 = vrot.lane.b32.xlu0 %v1451_v15, %s1338_s22  ;;  %v581_v33 = vmul.f32 %v1313_v32, %v1305_v11 }
 0x2df   : > { %v582_v34 = vpack.c.bf16 %v581_v33, %v581_v33  ;;  %v1178_v33 = vld [vmem:[%s1550_s9] ss:$0 sm:$0xff] }
 0x2e1   : > { %1231 = vmatmul.mubr.msk.bf16.vlgmr.msra.gmra.mxu1 %vm522_vm2, %v582_v34 }
 0x2e2   : > { %1242 = vmatprep.mubr.msk.bf16.mxu1 %vm1331_vm0, %v1330_v1 }
 0x340   : > { %v694_v35 = vpop.xlane.xlu0 %693 }
 0x341   : > { %1314 = vrcp.f32 %v694_v35 }
 0x348   : > { %v806_v36 = vpop.xlane.xlu1 %805 }
 0x349   : > { %1316 = vrcp.f32 %v806_v36 }
 0x34c   : > { %v811_v42 = vpop.permute.xlu1 %810 }
 0x34d   : > { %v816_v44 = vsel %vm589_vm4, %v811_v42, 0 }
 0x34e   : > { %v1315_v37 = vpop.eup %1314 }
 0x34f   : > { %v696_v39 = vmul.f32 %v1315_v37, %v1307_v22 }
 0x350   : > { %v918_v38 = vpop.xlane.xlu0 %917  ;;  %v923_v46 = vpop.permute.xlu1 %922 }
 0x351   : > { %1318 = vrcp.f32 %v918_v38  ;;  %v697_v15 = vpack.c.bf16 %v696_v39, %v696_v39  ;;  %v928_v49 = vsel %vm589_vm4, %v923_v46, 0 }
 0x354   : > { %v699_v40 = vpop.permute.xlu0 %698 }
 0x355   : > { %v704_v41 = vsel %vm589_vm4, %v699_v40, 0 }
 0x356   : > { %1241 = vmatpush3.bf16.msra.mxu1 %v704_v41  ;;  %v1317_v43 = vpop.eup %1316 }
 0x357   : > { %1252 = vmatprep.subr.bf16.mxu1 %v1330_v1  ;;  %v808_v45 = vmul.f32 %v1317_v43, %v1309_v25 }
 0x359   : > { %1243 = vmatmul.mubr.msk.bf16.vlgmr.msra.gmra.mxu1 %vm522_vm2, %v697_v15  ;;  %v809_v47 = vpack.c.bf16 %v808_v45, %v808_v45 }
 0x35a   : > { %1253 = vmatpush3.bf16.msra.mxu1 %v816_v44  ;;  %1254 = vmatprep.mubr.msk.bf16.mxu1 %vm1331_vm0, %v1330_v1 }
 0x35b   : > { %1264 = vmatprep.subr.bf16.mxu1 %v1330_v1 }
 0x35e   : > { %v1319_v48 = vpop.eup %1318 }
 0x35f   : > { %v920_v50 = vmul.f32 %v1319_v48, %v1311_v27 }
 0x361   : > { %1255 = vmatmul.mubr.msk.bf16.vlgmr.msra.gmra.mxu1 %vm522_vm2, %v809_v47  ;;  %v921_v51 = vpack.c.bf16 %v920_v50, %v920_v50 }
 0x362   : > { %1265 = vmatpush3.bf16.msra.mxu1 %v928_v49  ;;  %1266 = vmatprep.mubr.msk.bf16.mxu1 %vm1331_vm0, %v1330_v1 }
 0x369   : > { %1267 = vmatmul.mubr.msk.bf16.vlgmr.msra.gmra.mxu1 %vm522_vm2, %v921_v51 }
 0x3a1   : > { %v627_v52 = vpop.f32.mrf.mxu1 }
 0x3a3   : > { %v1232_v53 = vpop.f32.mrf.mxu1 }
 0x3a5   : > { %v630_v54 = vpop.f32.mrf.mxu1 }
 0x3a7   : > { %v1233_v55 = vpop.f32.mrf.mxu1 }
 0x419   : > { %v740_v57 = vpop.f32.mrf.mxu1 }
 0x41a   : > { %971 = vrot.lane.b32.xlu0 %v740_v57, %s1339_s26 }
 0x41b   : > { %v1244_v58 = vpop.f32.mrf.mxu1 }
 0x41d   : > { %v743_v60 = vpop.f32.mrf.mxu1 }
 0x41f   : > { %v1245_v61 = vpop.f32.mrf.mxu1 }
 0x421   : > { %v852_v62 = vpop.f32.mrf.mxu1 }
 0x422   : > { %975 = vrot.lane.b32.xlu1 %v852_v62, %s1340_s29 }
 0x423   : > { %v1256_v63 = vpop.f32.mrf.mxu1 }
 0x425   : > { %v855_v0 = vpop.f32.mrf.mxu1 }
 0x427   : > { %v1257_v2 = vpop.f32.mrf.mxu1 }
 0x429   : > { %v964_v3 = vpop.f32.mrf.mxu1 }
 0x42a   : > { %979 = vrot.lane.b32.xlu0 %v964_v3, %s1341_s30 }
 0x42b   : > { %v1268_v1 = vpop.f32.mrf.mxu1 }
 0x42d   : > { %v967_v4 = vpop.f32.mrf.mxu1 }
 0x42f   : > { %v1269_v6 = vpop.f32.mrf.mxu1 }
 0x48c   : > { %v972_v7 = vpop.permute.xlu0 %971 }
 0x48d   : > { %v982_v9 = vsel %vm522_vm2, %v627_v52, %v972_v7 }
 0x494   : > { %v976_v8 = vpop.permute.xlu1 %975 }
 0x495   : > { %v984_v10 = vsel %vm983_vm5, %v982_v9, %v976_v8 }
 0x49c   : > { %v980_v11 = vpop.permute.xlu0 %979 }
 0x49d   : > { %v986_v12 = vsel %vm985_vm6, %v984_v10, %v980_v11 }
 0x49e   : > { %v987_v13 = vpack.c.bf16 %v986_v12, %v986_v12 }
 0x4a0   : > { %1275 = vmatmul.mubr.msk.bf16.vlgmr.msra.gmra.mxu0 %vm395_vm1, %v987_v13 }
 0x560   : > { %v1048_v16 = vpop.f32.mrf.mxu0 }
 0x561   : > { %v1049_v17 = vadd.f32 %v1173_v14, %v1048_v16 }
 0x562   : > { %v1276_v18 = vpop.f32.mrf.mxu0 }
 0x563   : > { %v1054_v19 = vadd.f32 %v1049_v17, %v1434_v5  ;;  %v1177_v5 = vld [vmem:[%s1549_s8] ss:$0 sm:$0xff] }
 0x564   : > { %v1051_v20 = vpop.f32.mrf.mxu0 }
 0x565   : > { %v1055_v21 = vsel %vm395_vm1, %v1054_v19, 0.0 }
 0x566   : > { %1056 = vadd.xlane.f32.xlu1 %v1055_v21  ;;  %v1277_v22 = vpop.f32.mrf.mxu0 }
 0x5ef   : > { %v1057_v23 = vpop.xlane.xlu1 %1056 }
 0x5f0   : > { %v1059_v24 = vmul.f32 0.03125, %v1057_v23 }
 0x5f2   : > { %v1060_v25 = vsub.f32 %v1054_v19, %v1059_v24 }
 0x5f4   : > { %v1061_v26 = vmul.f32 %v1060_v25, %v1060_v25 }
 0x5f6   : > { %v1062_v27 = vsel %vm395_vm1, %v1061_v26, 0.0 }
 0x5f7   : > { %1063 = vadd.xlane.f32.xlu0 %v1062_v27 }
 0x680   : > { %v1064_v28 = vpop.xlane.xlu0 %1063 }
 0x681   : > { %v1065_v29 = vmul.f32 0.03125, %v1064_v28 }
 0x683   : > { %v1066_v30 = vadd.f32 1e-05, %v1065_v29 }
 0x685   : > { %1320 = vrsqrt.f32 %v1066_v30 }
 0x692   : > { %v1321_v31 = vpop.eup %1320 }
 0x693   : > { %v1068_v32 = vmul.f32 %v1321_v31, %v1060_v25 }
 0x695   : > { %v1076_v34 = vmul.f32 %v1177_v5, %v1068_v32 }
 0x697   : > { %v1084_v35 = vadd.f32 %v1178_v33, %v1076_v34 }
 0x699   : > { %1085 = vst.msk [vmem:[%s368_s21] sm:$0xff] %vm395_vm1, %v1084_v35 }
 0x69a PF: > { %s20_s13 = sadd.s32 1, %s1328_s13  }
 0x69b   : > { %p17_p4 = scmp.ge.s32.totalorder %s20_s13, 4  }
 0x69d   :  { %19 = sbr.rel (!%p17_p4) target bundleno = 1 (0x1), region = 93 }

// kernel: _lambda_.16
= control target key start
LH: loop header
LB: loop body
LE: loop exit
PB: predicated region body
PF: predicated region fallthrough
CT: control target
= control target key end

     0   :  { %s1454_s17 = smov 0   ;;  %s1601_s0 = inlined_call_operand.vmem [shape: f32[2,8,32], index: 0, kind: input, shape index: {}]   ;;  %s1602_s1 = inlined_call_operand.vmem [shape: f32[2,8,32], index: 1, kind: input, shape index: {}]   ;;  %s1603_s2 = inlined_call_operand.vmem [shape: f32[2,1,8], index: 2, kind: input, shape index: {}]   ;;  %s1604_s3 = inlined_call_operand.vmem [shape: bf16[32,32], index: 3, kind: input, shape index: {}]   ;;  %s1605_s4 = inlined_call_operand.vmem [shape: f32[1,32], index: 4, kind: input, shape index: {}]   ;;  %s1606_s5 = inlined_call_operand.vmem [shape: bf16[32,64], index: 5, kind: input, shape index: {}]   ;;  %s1607_s6 = inlined_call_operand.vmem [shape: f32[1,64], index: 6, kind: input, shape index: {}]   ;;  %s1608_s7 = inlined_call_operand.vmem [shape: bf16[32,32], index: 7, kind: input, shape index: {}]   ;;  %s1609_s8 = inlined_call_operand.vmem [shape: f32[1,32], index: 8, kind: input, shape index: {}]   ;;  %s1610_s9 = inlined_call_operand.vmem [shape: f32[1,32], index: 9, kind: input, shape index: {}]   ;;  %s1611_s10 = inlined_call_operand.vmem [shape: f32[1,32], index: 10, kind: input, shape index: {}]   ;;  %s1612_s11 = inlined_call_operand.vmem [shape: f32[2,8,32], index: 11, kind: output, shape index: {}]  }
   0x1 LB: > { %s1200_s18 = sadd.s32 4294967295, %s1380_s17   ;;  %p1204_p0 = scmp.ge.s32.totalorder %s1380_s17, 1  ;;  %s1380_s17 = sphi %s1454_s17, %s21_s17  }
   0x2   : > { %p353_p1 = scmp.lt.s32.totalorder %s1380_s17, 3 }
   0x4   : > { %p354_p2 = pnand %p1204_p0, %p353_p1 }
   0x5   : > { %p398_p3 = scmp.lt.s32.totalorder (!%p354_p2), %s1200_s18, 1  ;;  %s1384_s21 = smov (!%p354_p2), 112  }
   0x6   : > { %357 = sbr.rel (%p354_p2) target bundleno = 1690 (0x69a), region = 64  ;;  %s1385_s22 = smov (!%p354_p2), 120  }
   0x7   : > { %s1386_s23 = smov (!%p354_p2), 104   ;;  %s1388_s28 = smov (!%p354_p2), 80  }
   0x8   : > { %s1389_s29 = smov (!%p354_p2), 72   ;;  %s1392_s19 = smov (!%p354_p2), 16  }
   0x9   : > { %s1393_s20 = smov (!%p354_p2), 24  }
   0xb   : > { %v1350_v0 = vld [vmem:[%s1606_s5 + $0x8] sm:$0xff]   ;;  %v1382_v1 = vmov 0.0   ;;  %v1352_v3 = vld [vmem:[%s1606_s5] sm:$0xff]   ;;  %vm1383_vm0 = vmmov 0   ;;  %s1614_s18 = smov (!%p398_p3, %s1200_s18), 1  ;;  %vm440_vm1 = vcmask 261120   ;;  %v605_v33 = vlaneseq }
   0xc   : > { %1266 = vmatprep.subr.bf16.mxu1 %v1382_v1  ;;  %1258 = vmatprep.subr.bf16.mxu0 %v1382_v1  ;;  %v1351_v2 = vld [vmem:[%s1604_s3 + $0x8] sm:$0xff]   ;;  %v1353_v4 = vld [vmem:[%s1604_s3] sm:$0xff]   ;;  %s1485_s27 = sshll.u32 %s1614_s18, 3  ;;  %vm556_vm2 = vcmask 64512   ;;  %s408_s26 = scalar_lea.vmem %s1603_s2, %s1614_s18  ;;  %vm629_vm3 = vcmask 1043456   ;;  %vm1023_vm4 = vcmask 130048  }
   0xd   : > { %1267 = vmatpush3.bf16.msra.mxu1 %v1350_v0  ;;  %1270 = vmatprep.mubr.msk.bf16.mxu1 %vm1383_vm0, %v1382_v1  ;;  %s405_s30 = scalar_lea.vmem %s1602_s1, %s1485_s27  ;;  %s401_s14 = scalar_lea.vmem %s1601_s0, %s1485_s27  ;;  %v1212_v9 = vld [vmem:[%s1607_s6] ss:$0 sm:$0xff]  ;;  %v606_v36 = vshrl.u32 %v605_v33, 7  ;;  %vm1025_vm5 = vcmask 195584  }
   0xe   : > { %1259 = vmatpush3.bf16.msra.mxu0 %v1351_v2  ;;  %1268 = vmatprep.subr.bf16.mxu1 %v1382_v1  ;;  %v415_v5 = vld [vmem:[%s405_s30] sm:$0xff]  ;;  %s1387_s18 = smov 96   ;;  %s1390_s30 = smov 88  }
   0xf   : > { %1260 = vmatprep.subr.bf16.mxu0 %v1382_v1  ;;  %1262 = vmatprep.mubr.msk.bf16.mxu0 %vm1383_vm0, %v1382_v1  ;;  %v484_v6 = vpack.c.bf16 %v415_v5, %v415_v5  ;;  %v1497_v7 = vld [vmem:[%s401_s14] sm:$0xff]  ;;  %v607_v38 = vsub.s32 0, %v606_v36  ;;  %s1391_s14 = smov 8  }
  0x10   : > { %v416_v8 = vpack.c.bf16 %v1497_v7, %v1497_v7  ;;  %v1208_v10 = vld [vmem:[%s1605_s4] ss:$0 sm:$0xff] }
  0x11   : > { %1269 = vmatpush3.bf16.msra.mxu1 %v1352_v3  ;;  %v553_v34 = vld [vmem:[%s408_s26] sm:$0x1] }
  0x12   : > { %1261 = vmatpush3.bf16.msra.mxu0 %v1353_v4  ;;  %1280 = vmatprep.subr.bf16.mxu1 %v1382_v1  ;;  %v1216_v35 = vadd.f32 -1.0, %v553_v34 }
  0x13   : > { %1274 = vmatprep.subr.bf16.mxu0 %v1382_v1 }
  0x14   : > { %1271 = vmatmul.mubr.msk.bf16.vlgmr.msra.gmra.mxu1 %vm440_vm1, %v484_v6  ;;  %v555_v37 = vmul.f32 1e+09, %v1216_v35 }
  0x15   : > { %1263 = vmatmul.mubr.msk.bf16.vlgmr.msra.gmra.mxu0 %vm440_vm1, %v416_v8  ;;  %1282 = vmatprep.mubr.msk.bf16.mxu1 %vm1383_vm0, %v1382_v1 }
  0x16   : > { %1276 = vmatprep.mubr.msk.bf16.mxu0 %vm1383_vm0, %v1382_v1  ;;  %v608_v39 = vrot.slane %v555_v37, %v607_v38 }
  0xd4   : > { %v545_v11 = vpop.f32.mrf.mxu1 }
  0xd5   : > { %v546_v12 = vadd.f32 %v1212_v9, %v545_v11  ;;  %v478_v13 = vpop.f32.mrf.mxu0 }
  0xd6   : > { %v479_v14 = vadd.f32 %v1208_v10, %v478_v13  ;;  %v1272_v15 = vpop.f32.mrf.mxu1 }
  0xd7   : > { %v1513_v16 = vpack.c.bf16 %v546_v12, %v546_v12  ;;  %v1264_v17 = vpop.f32.mrf.mxu0 }
  0xd8   : > { %v548_v18 = vpop.f32.mrf.mxu1  ;;  %v551_v19 = vpack.c.bf16 %v479_v14, %v479_v14 }
  0xd9   : > { %788 = vrot.lane.b32.xlu1 %v1513_v16, %s1384_s21  ;;  %676 = vrot.lane.b32.xlu0 %v1513_v16, %s1385_s22  ;;  %v481_v20 = vpop.f32.mrf.mxu0  ;;  %v561_v21 = vsel %vm556_vm2, %v1513_v16, 0 }
  0xda   : > { %v1273_v22 = vpop.f32.mrf.mxu1  ;;  %1275 = vmatpush3.bf16.xpose.msra.mxu0 %v561_v21 }
  0xdb   : > { %v1265_v23 = vpop.f32.mrf.mxu0  ;;  %1286 = vmatprep.subr.bf16.mxu0 %v1382_v1 }
  0xdd   : > { %786 = vrot.lane.b32.xlu1 %v551_v19, %s1384_s21  ;;  %674 = vrot.lane.b32.xlu0 %v551_v19, %s1385_s22 }
  0xe1   : > { %898 = vrot.lane.b32.xlu1 %v551_v19, %s1386_s23  ;;  %900 = vrot.lane.b32.xlu0 %v1513_v16, %s1386_s23 }
  0xe2   : > { %1277 = vmatmul.mubr.msk.bf16.vlgmr.msra.gmra.mxu0 %vm556_vm2, %v551_v19 }
  0xe3   : > { %1288 = vmatprep.mubr.msk.bf16.mxu0 %vm1383_vm0, %v1382_v1 }
 0x14b   : > { %v677_v24 = vpop.permute.xlu0 %676  ;;  %v789_v26 = vpop.permute.xlu1 %788 }
 0x14c   : > { %v682_v25 = vsel %vm556_vm2, %v677_v24, 0  ;;  %v794_v28 = vsel %vm556_vm2, %v789_v26, 0 }
 0x14d   : > { %1287 = vmatpush3.bf16.xpose.msra.mxu0 %v682_v25 }
 0x14e   : > { %1298 = vmatprep.subr.bf16.mxu0 %v1382_v1 }
 0x14f   : > { %v675_v27 = vpop.permute.xlu0 %674  ;;  %v787_v30 = vpop.permute.xlu1 %786 }
 0x153   : > { %v901_v29 = vpop.permute.xlu0 %900  ;;  %v899_v32 = vpop.permute.xlu1 %898 }
 0x154   : > { %1289 = vmatmul.mubr.msk.bf16.vlgmr.msra.gmra.mxu0 %vm556_vm2, %v675_v27  ;;  %v906_v31 = vsel %vm556_vm2, %v901_v29, 0 }
 0x155   : > { %1299 = vmatpush3.bf16.xpose.msra.mxu0 %v794_v28  ;;  %1300 = vmatprep.mubr.msk.bf16.mxu0 %vm1383_vm0, %v1382_v1 }
 0x156   : > { %1310 = vmatprep.subr.bf16.mxu0 %v1382_v1 }
 0x15c   : > { %1301 = vmatmul.mubr.msk.bf16.vlgmr.msra.gmra.mxu0 %vm556_vm2, %v787_v30 }
 0x15d   : > { %1311 = vmatpush3.bf16.xpose.msra.mxu0 %v906_v31  ;;  %1312 = vmatprep.mubr.msk.bf16.mxu0 %vm1383_vm0, %v1382_v1 }
 0x15e   : > { %1322 = vmatprep.subr.bf16.mxu0 %v1382_v1 }
 0x164   : > { %1313 = vmatmul.mubr.msk.bf16.vlgmr.msra.gmra.mxu0 %vm556_vm2, %v899_v32 }
 0x165   : > { %1326 = vmatprep.mubr.msk.bf16.mxu0 %vm1383_vm0, %v1382_v1 }
 0x1a2   : > { %v597_v40 = vpop.f32.mrf.mxu0 }
 0x1a3   : > { %v603_v41 = vmul.f32 0.35355338, %v597_v40 }
 0x1a4   : > { %v1278_v42 = vpop.f32.mrf.mxu0 }
 0x1a5   : > { %v610_v43 = vadd.f32 %v608_v39, %v603_v41 }
 0x1a6   : > { %v600_v44 = vpop.f32.mrf.mxu0 }
 0x1a7   : > { %v611_v45 = vsel %vm556_vm2, %v610_v43, -inf }
 0x1a8   : > { %612 = vmax.xlane.f32.xlu0 %v611_v45  ;;  %v1279_v46 = vpop.f32.mrf.mxu0 }
 0x214   : > { %v718_v47 = vpop.f32.mrf.mxu0 }
 0x215   : > { %v724_v48 = vmul.f32 0.35355338, %v718_v47 }
 0x216   : > { %v1290_v49 = vpop.f32.mrf.mxu0 }
 0x217   : > { %v725_v50 = vadd.f32 %v724_v48, %v608_v39 }
 0x218   : > { %v721_v51 = vpop.f32.mrf.mxu0 }
 0x219   : > { %v726_v52 = vsel %vm556_vm2, %v725_v50, -inf }
 0x21a   : > { %727 = vmax.xlane.f32.xlu1 %v726_v52  ;;  %v1291_v53 = vpop.f32.mrf.mxu0 }
 0x21c   : > { %v830_v54 = vpop.f32.mrf.mxu0 }
 0x21d   : > { %v836_v55 = vmul.f32 0.35355338, %v830_v54  ;;  %v1354_v54 = vld [vmem:[%s1608_s7 + $0x8] sm:$0xff]  }
 0x21e   : > { %v1302_v56 = vpop.f32.mrf.mxu0  ;;  %1323 = vmatpush3.bf16.msra.mxu0 %v1354_v54 }
 0x21f   : > { %v837_v57 = vadd.f32 %v836_v55, %v608_v39  ;;  %1324 = vmatprep.subr.bf16.mxu0 %v1382_v1 }
 0x220   : > { %v833_v58 = vpop.f32.mrf.mxu0 }
 0x221   : > { %v838_v59 = vsel %vm556_vm2, %v837_v57, -inf }
 0x222   : > { %839 = vmax.xlane.f32.xlu0 %v838_v59  ;;  %v1303_v60 = vpop.f32.mrf.mxu0 }
 0x224   : > { %v942_v61 = vpop.f32.mrf.mxu0 }
 0x225   : > { %v948_v62 = vmul.f32 0.35355338, %v942_v61 }
 0x226   : > { %v1314_v63 = vpop.f32.mrf.mxu0 }
 0x227   : > { %v949_v0 = vadd.f32 %v948_v62, %v608_v39 }
 0x228   : > { %v945_v2 = vpop.f32.mrf.mxu0 }
 0x229   : > { %v950_v3 = vsel %vm556_vm2, %v949_v0, -inf }
 0x22a   : > { %951 = vmax.xlane.f32.xlu0 %v950_v3  ;;  %v1315_v4 = vpop.f32.mrf.mxu0 }
 0x231   : > { %v613_v5 = vpop.xlane.xlu0 %612 }
 0x232   : > { %v614_v6 = vsub.f32 %v610_v43, %v613_v5 }
 0x234   : > { %v615_v8 = vmul.f32 1.442695, %v614_v6 }
 0x236   : > { %1356 = vpow2.f32 %v615_v8 }
 0x243   : > { %v1357_v9 = vpop.eup %1356 }
 0x244   : > { %v617_v10 = vsel %vm556_vm2, %v1357_v9, 0.0 }
 0x245   : > { %618 = vadd.xlane.f32.xlu1 %v617_v10 }
 0x256   : > { %624 = vrot.lane.b32.xlu1 %v1513_v16, %s1387_s18 }
 0x2a3   : > { %v728_v11 = vpop.xlane.xlu1 %727 }
 0x2a4   : > { %v729_v12 = vsub.f32 %v725_v50, %v728_v11 }
 0x2a6   : > { %v730_v13 = vmul.f32 1.442695, %v729_v12  ;;  %v1225_v12 = vld [vmem:[%s1609_s8] ss:$0 sm:$0xff] }
 0x2a8   : > { %1358 = vpow2.f32 %v730_v13 }
 0x2ab   : > { %v840_v14 = vpop.xlane.xlu0 %839 }
 0x2ac   : > { %v841_v15 = vsub.f32 %v837_v57, %v840_v14  ;;  %v1355_v57 = vld [vmem:[%s1608_s7] sm:$0xff]  }
 0x2ad   : > { %1325 = vmatpush3.bf16.msra.mxu0 %v1355_v57 }
 0x2ae   : > { %v842_v17 = vmul.f32 1.442695, %v841_v15 }
 0x2b0   : > { %1360 = vpow2.f32 %v842_v17 }
 0x2b3   : > { %v952_v18 = vpop.xlane.xlu0 %951 }
 0x2b4   : > { %v953_v19 = vsub.f32 %v949_v0, %v952_v18 }
 0x2b5   : > { %v1359_v20 = vpop.eup %1358 }
 0x2b6   : > { %v954_v21 = vmul.f32 1.442695, %v953_v19  ;;  %v732_v22 = vsel %vm556_vm2, %v1359_v20, 0.0 }
 0x2b7   : > { %733 = vadd.xlane.f32.xlu0 %v732_v22 }
 0x2b8   : > { %1362 = vpow2.f32 %v954_v21 }
 0x2bd   : > { %v1361_v23 = vpop.eup %1360 }
 0x2be   : > { %v844_v24 = vsel %vm556_vm2, %v1361_v23, 0.0 }
 0x2bf   : > { %845 = vadd.xlane.f32.xlu1 %v844_v24 }
 0x2c5   : > { %v1363_v25 = vpop.eup %1362 }
 0x2c6   : > { %v956_v26 = vsel %vm556_vm2, %v1363_v25, 0.0 }
 0x2c7   : > { %957 = vadd.xlane.f32.xlu0 %v956_v26 }
 0x2ce   : > { %v619_v27 = vpop.xlane.xlu1 %618 }
 0x2cf   : > { %1364 = vrcp.f32 %v619_v27 }
 0x2d0   : > { %850 = vrot.lane.b32.xlu1 %v1513_v16, %s1388_s28 }
 0x2d2   : > { %v625_v28 = vpop.permute.xlu1 %624 }
 0x2d3   : > { %v631_v29 = vsel %vm629_vm3, %v625_v28, 0 }
 0x2d4   : > { %1281 = vmatpush3.bf16.msra.mxu1 %v631_v29  ;;  %962 = vrot.lane.b32.xlu1 %v1513_v16, %s1389_s29  ;;  %s412_s29 = scalar_lea.vmem %s1612_s11, %s1485_s27 }
 0x2d5   : > { %1292 = vmatprep.subr.bf16.mxu1 %v1382_v1 }
 0x2dc   : > { %v1365_v30 = vpop.eup %1364 }
 0x2dd   : > { %738 = vrot.lane.b32.xlu0 %v1513_v16, %s1390_s30  ;;  %v621_v31 = vmul.f32 %v1365_v30, %v1357_v9 }
 0x2df   : > { %v622_v32 = vpack.c.bf16 %v621_v31, %v621_v31  ;;  %v1230_v31 = vld [vmem:[%s1611_s10] ss:$0 sm:$0xff] }
 0x2e1   : > { %1283 = vmatmul.mubr.msk.bf16.vlgmr.msra.gmra.mxu1 %vm556_vm2, %v622_v32 }
 0x2e2   : > { %1294 = vmatprep.mubr.msk.bf16.mxu1 %vm1383_vm0, %v1382_v1 }
 0x340   : > { %v734_v33 = vpop.xlane.xlu0 %733 }
 0x341   : > { %1366 = vrcp.f32 %v734_v33 }
 0x348   : > { %v846_v34 = vpop.xlane.xlu1 %845 }
 0x349   : > { %1368 = vrcp.f32 %v846_v34 }
 0x34c   : > { %v851_v40 = vpop.permute.xlu1 %850 }
 0x34d   : > { %v856_v42 = vsel %vm629_vm3, %v851_v40, 0 }
 0x34e   : > { %v1367_v35 = vpop.eup %1366 }
 0x34f   : > { %v736_v37 = vmul.f32 %v1367_v35, %v1359_v20 }
 0x350   : > { %v958_v36 = vpop.xlane.xlu0 %957  ;;  %v963_v44 = vpop.permute.xlu1 %962 }
 0x351   : > { %1370 = vrcp.f32 %v958_v36  ;;  %v737_v16 = vpack.c.bf16 %v736_v37, %v736_v37  ;;  %v968_v47 = vsel %vm629_vm3, %v963_v44, 0 }
 0x354   : > { %v739_v38 = vpop.permute.xlu0 %738 }
 0x355   : > { %v744_v39 = vsel %vm629_vm3, %v739_v38, 0 }
 0x356   : > { %1293 = vmatpush3.bf16.msra.mxu1 %v744_v39  ;;  %v1369_v41 = vpop.eup %1368 }
 0x357   : > { %1304 = vmatprep.subr.bf16.mxu1 %v1382_v1  ;;  %v848_v43 = vmul.f32 %v1369_v41, %v1361_v23 }
 0x359   : > { %1295 = vmatmul.mubr.msk.bf16.vlgmr.msra.gmra.mxu1 %vm556_vm2, %v737_v16  ;;  %v849_v45 = vpack.c.bf16 %v848_v43, %v848_v43 }
 0x35a   : > { %1305 = vmatpush3.bf16.msra.mxu1 %v856_v42  ;;  %1306 = vmatprep.mubr.msk.bf16.mxu1 %vm1383_vm0, %v1382_v1 }
 0x35b   : > { %1316 = vmatprep.subr.bf16.mxu1 %v1382_v1 }
 0x35e   : > { %v1371_v46 = vpop.eup %1370 }
 0x35f   : > { %v960_v48 = vmul.f32 %v1371_v46, %v1363_v25 }
 0x361   : > { %1307 = vmatmul.mubr.msk.bf16.vlgmr.msra.gmra.mxu1 %vm556_vm2, %v849_v45  ;;  %v961_v49 = vpack.c.bf16 %v960_v48, %v960_v48 }
 0x362   : > { %1317 = vmatpush3.bf16.msra.mxu1 %v968_v47  ;;  %1318 = vmatprep.mubr.msk.bf16.mxu1 %vm1383_vm0, %v1382_v1 }
 0x369   : > { %1319 = vmatmul.mubr.msk.bf16.vlgmr.msra.gmra.mxu1 %vm556_vm2, %v961_v49 }
 0x3a1   : > { %v667_v50 = vpop.f32.mrf.mxu1 }
 0x3a3   : > { %v1284_v51 = vpop.f32.mrf.mxu1 }
 0x3a5   : > { %v670_v52 = vpop.f32.mrf.mxu1 }
 0x3a7   : > { %v1285_v53 = vpop.f32.mrf.mxu1 }
 0x419   : > { %v780_v55 = vpop.f32.mrf.mxu1 }
 0x41a   : > { %1011 = vrot.lane.b32.xlu0 %v780_v55, %s1391_s14 }
 0x41b   : > { %v1296_v56 = vpop.f32.mrf.mxu1 }
 0x41d   : > { %v783_v58 = vpop.f32.mrf.mxu1 }
 0x41f   : > { %v1297_v59 = vpop.f32.mrf.mxu1 }
 0x421   : > { %v892_v60 = vpop.f32.mrf.mxu1 }
 0x422   : > { %1015 = vrot.lane.b32.xlu1 %v892_v60, %s1392_s19 }
 0x423   : > { %v1308_v61 = vpop.f32.mrf.mxu1 }
 0x425   : > { %v895_v62 = vpop.f32.mrf.mxu1 }
 0x427   : > { %v1309_v63 = vpop.f32.mrf.mxu1 }
 0x429   : > { %v1004_v0 = vpop.f32.mrf.mxu1 }
 0x42a   : > { %1019 = vrot.lane.b32.xlu0 %v1004_v0, %s1393_s20 }
 0x42b   : > { %v1320_v1 = vpop.f32.mrf.mxu1 }
 0x42d   : > { %v1007_v2 = vpop.f32.mrf.mxu1 }
 0x42f   : > { %v1321_v3 = vpop.f32.mrf.mxu1 }
 0x48c   : > { %v1012_v4 = vpop.permute.xlu0 %1011 }
 0x48d   : > { %v1022_v6 = vsel %vm556_vm2, %v667_v50, %v1012_v4 }
 0x494   : > { %v1016_v5 = vpop.permute.xlu1 %1015 }
 0x495   : > { %v1024_v8 = vsel %vm1023_vm4, %v1022_v6, %v1016_v5 }
 0x49c   : > { %v1020_v9 = vpop.permute.xlu0 %1019 }
 0x49d   : > { %v1026_v10 = vsel %vm1025_vm5, %v1024_v8, %v1020_v9 }
 0x49e   : > { %v1027_v11 = vpack.c.bf16 %v1026_v10, %v1026_v10 }
 0x4a0   : > { %1327 = vmatmul.mubr.msk.bf16.vlgmr.msra.gmra.mxu0 %vm440_vm1, %v1027_v11 }
 0x560   : > { %v1088_v13 = vpop.f32.mrf.mxu0 }
 0x561   : > { %v1089_v14 = vadd.f32 %v1225_v12, %v1088_v13 }
 0x562   : > { %v1328_v15 = vpop.f32.mrf.mxu0 }
 0x563   : > { %v1094_v17 = vadd.f32 %v1089_v14, %v1497_v7  ;;  %v1229_v7 = vld [vmem:[%s1610_s9] ss:$0 sm:$0xff] }
 0x564   : > { %v1091_v18 = vpop.f32.mrf.mxu0 }
 0x565   : > { %v1095_v19 = vsel %vm440_vm1, %v1094_v17, 0.0 }
 0x566   : > { %1096 = vadd.xlane.f32.xlu1 %v1095_v19  ;;  %v1329_v20 = vpop.f32.mrf.mxu0 }
 0x5ef   : > { %v1097_v21 = vpop.xlane.xlu1 %1096 }
 0x5f0   : > { %v1099_v22 = vmul.f32 0.03125, %v1097_v21 }
 0x5f2   : > { %v1100_v23 = vsub.f32 %v1094_v17, %v1099_v22 }
 0x5f4   : > { %v1101_v24 = vmul.f32 %v1100_v23, %v1100_v23 }
 0x5f6   : > { %v1102_v25 = vsel %vm440_vm1, %v1101_v24, 0.0 }
 0x5f7   : > { %1103 = vadd.xlane.f32.xlu0 %v1102_v25 }
 0x680   : > { %v1104_v26 = vpop.xlane.xlu0 %1103 }
 0x681   : > { %v1105_v27 = vmul.f32 0.03125, %v1104_v26 }
 0x683   : > { %v1106_v28 = vadd.f32 1e-05, %v1105_v27 }
 0x685   : > { %1372 = vrsqrt.f32 %v1106_v28 }
 0x692   : > { %v1373_v29 = vpop.eup %1372 }
 0x693   : > { %v1108_v30 = vmul.f32 %v1373_v29, %v1100_v23 }
 0x695   : > { %v1116_v32 = vmul.f32 %v1229_v7, %v1108_v30 }
 0x697   : > { %v1124_v33 = vadd.f32 %v1230_v31, %v1116_v32 }
 0x699   : > { %1125 = vst.msk [vmem:[%s412_s29] sm:$0xff] %vm440_vm1, %v1124_v33 }
 0x69a PF: > { %s21_s17 = sadd.s32 1, %s1380_s17  }
 0x69b   : > { %p18_p4 = scmp.ge.s32.totalorder %s21_s17, 4  }
 0x69d   :  { %20 = sbr.rel (!%p18_p4) target bundleno = 1 (0x1), region = 100 }

// kernel: _lambda_.21
= control target key start
LH: loop header
LB: loop body
LE: loop exit
PB: predicated region body
PF: predicated region fallthrough
CT: control target
= control target key end

     0   :  { %v130_v0 = vmov 0.0   ;;  %vm131_vm0 = vmmov 0   ;;  %vm42_vm1 = vcmask 261120   ;;  %s173_s1 = inlined_call_operand.vmem [shape: bf16[32,128], index: 1, kind: input, shape index: {}]   ;;  %s174_s0 = inlined_call_operand.vmem [shape: f32[16,32], index: 0, kind: input, shape index: {}]   ;;  %s175_s2 = inlined_call_operand.vmem [shape: f32[1,128], index: 2, kind: input, shape index: {}]   ;;  %s176_s3 = inlined_call_operand.vmem [shape: f32[16,128], index: 3, kind: output, shape index: {}]  }
   0x1   :  { %118 = vmatprep.subr.bf16.mxu0 %v130_v0  ;;  %v128_v1 = vld [vmem:[%s173_s1 + $0x8] sm:$0xff]   ;;  %122 = vmatprep.mubr.msk.bf16.mxu0 %vm131_vm0, %v130_v0  ;;  %v129_v2 = vld [vmem:[%s173_s1] sm:$0xff]  }
   0x2   :  { %119 = vmatpush3.bf16.msra.mxu0 %v128_v1  ;;  %v23_v3 = vld [vmem:[%s174_s0] sm:$0xff]  ;;  %v24_v4 = vld [vmem:[%s174_s0 + $0x8] sm:$0xff] }
   0x3   :  { %120 = vmatprep.subr.bf16.mxu0 %v130_v0  ;;  %v25_v5 = vpack.c.bf16 %v24_v4, %v23_v3  ;;  %v114_v6 = vld [vmem:[%s175_s2] ss:$0 sm:$0xff] }
   0x6   :  { %121 = vmatpush3.bf16.msra.mxu0 %v129_v2 }
   0x9   :  { %123 = vmatmul.mubr.msk.bf16.vlgmr.msra.gmra.mxu0 %vm42_vm1, %v25_v5 }
  0xc9   :  { %v80_v7 = vpop.f32.mrf.mxu0 }
  0xca   :  { %v103_v8 = vadd.f32 %v114_v6, %v80_v7 }
  0xcb   :  { %v124_v9 = vpop.f32.mrf.mxu0 }
  0xcc   :  { %105 = vst [vmem:[%s176_s3] sm:$0xff] %v103_v8 }
  0xcd   :  { %v83_v10 = vpop.f32.mrf.mxu0 }
  0xce   :  { %v104_v11 = vadd.f32 %v114_v6, %v83_v10 }
  0xcf   :  { %v125_v12 = vpop.f32.mrf.mxu0 }
  0xd0   :  { %106 = vst [vmem:[%s176_s3 + $0x8] sm:$0xff] %v104_v11 }

</bundles_post_ra>
